<compile_context>
chip_gen: v7x
topology: tpu7x:2x2x1
jax: 0.10.0
libtpu: 0.0.40
codegen_flags: <defaults>
</compile_context>

<pallas_src>
import functools

import numpy as np
import jax
import jax.numpy as jnp
from jax import lax
from jax.experimental import pallas as pl
from jax.experimental.pallas import tpu as pltpu


def lstm_1d_7_kernel(num_dirs,
                     x_ref,        # (C, B, L)   f32 VMEM, channel-major
                     times_ref,    # (B, 1)      f32 VMEM
                     conv_ref,     # (C+1,)      f32 SMEM  [conv weights | conv bias]
                     vecs_ref,     # (3+layers, 4*GH) f32 VMEM [t2v_w | t2v_b | b_out | layer biases]
                     w_stack_ref,  # (layers, in_max+GH, 4*GH) f32 VMEM [W_ih ; W_hh block-diag]
                     w_out_ref,    # (num_dirs*H, OUT) f32 VMEM
                     sig_ref, logits_ref):
    C, B, L = x_ref.shape
    num_layers, rows, GW = w_stack_ref.shape
    GH = GW // 4                      # fused per-gate block width = num_dirs * H
    in_max = rows - GH
    H = GH // num_dirs                # hidden size per direction
    D = L                             # == input_dim
    OUT = w_out_ref.shape[1]
    hp = lax.Precision.HIGHEST

    # ---- softconv: 1x1 Conv1d(cnn_dim -> 1): per-channel scalar MAC on the VPU ----
    feat = x_ref[0] * conv_ref[0]
    for cc in range(1, C):
        feat = feat + x_ref[cc] * conv_ref[cc]
    feat = feat + conv_ref[C]                                       # (B, L)

    # ---- Time2Vec (SineActivation-style): K=1 product on the VPU, MXU left free ----
    # TODO(synk): TimeEncoding internals not given; assumed sin on first D-1 cols, linear last.
    tau = times_ref[...]                                            # (B, 1)
    t2v_w = vecs_ref[0:1, :][:, 0:D]                                # (1, D)
    t2v_b = vecs_ref[1:2, :][:, 0:D]
    lin = tau * t2v_w + t2v_b                                       # (B, D)
    colD = lax.broadcasted_iota(jnp.int32, (B, D), 1)
    times_vec = jnp.where(colD < D - 1, jnp.sin(lin), lin)
    feature = feat + 0.001 * times_vec                              # (B, D)

    # ---- hoisted lane constants (built once, reused by every step of every layer) ----
    lane = lax.broadcasted_iota(jnp.int32, (1, GW), 1)
    is_g = (lane >= 2 * GH) & (lane < 3 * GH)                       # g-gate lanes
    g_scale = jnp.where(is_g, 2.0, 1.0)                             # tanh(x) = 2*sigmoid(2x) - 1
    g_offset = jnp.where(is_g, -1.0, 0.0)                           # (x2 pre-folded into weights)
    fwd_mask = lane < 0                                             # all-False start
    for g in range(4):                                              # fwd lanes of each gate block
        fwd_mask = fwd_mask | ((lane >= g * GH) & (lane < g * GH + H))
    row_gh = lax.broadcasted_iota(jnp.int32, (B, GH), 0)
    col_gh = lax.broadcasted_iota(jnp.int32, (B, GH), 1)

    def pad_cols(a, width):
        # no-op in this config (in_max == GH); kept for generality.
        if a.shape[1] < width:
            a = jnp.concatenate(
                [a, jnp.zeros((a.shape[0], width - a.shape[1]), jnp.float32)], axis=1)
        return a

    def reverse_rows(a):
        # exact sublane reversal via static slices + concat (robust, preamble-only).
        n = a.shape[0]
        return jnp.concatenate([a[n - 1 - i:n - i, :] for i in range(n)], axis=0)

    layer_in = pad_cols(feature, in_max)                            # (B, in_max)
    layer_out = layer_in
    for layer in range(num_layers):
        w_l = w_stack_ref[layer]                                    # (in_max+GH, GW)
        w_ih_l = w_l[0:in_max, :]
        w_hh_l = w_l[in_max:in_max + GH, :]                         # block-diag over directions
        bias_l = vecs_ref[3 + layer:4 + layer, :]                   # (1, GW)

        # Hoisted input-side projection + bias: one lane-dense GEMM per layer.
        gx = jnp.dot(layer_in, w_ih_l,
                     preferred_element_type=jnp.float32, precision=hp) + bias_l   # (B, GW)
        if num_dirs == 2:
            # Hoisted direction select: fwd lanes read row s, bwd lanes read row B-1-s.
            gx_sel = jnp.where(fwd_mask, gx, reverse_rows(gx))
        else:
            gx_sel = gx

        h = jnp.zeros((1, GH), jnp.float32)
        c = jnp.zeros((1, GH), jnp.float32)
        out_acc = jnp.zeros((B, GH), jnp.float32)
        for s in range(B):
            # TODO(synk): on v6e/v7x, keep w_hh_l resident in the MXU across steps
            # (matmul_push_rhs once, matmul_acc_lhs/pop per step) for a shorter chain.
            gates = gx_sel[s:s + 1, :] + jnp.dot(
                h, w_hh_l, preferred_element_type=jnp.float32)      # (1, GW)
            # single 128-lane sigmoid pass + hoisted per-lane FMA (g lanes -> tanh)
            act = jax.nn.sigmoid(gates) * g_scale + g_offset
            i_g = act[:, 0 * GH:1 * GH]
            f_g = act[:, 1 * GH:2 * GH]
            g_g = act[:, 2 * GH:3 * GH]
            o_g = act[:, 3 * GH:4 * GH]
            c = f_g * c + i_g * g_g
            h = o_g * jnp.tanh(c)                                   # (1, GH) = [h_fwd | h_bwd]
            # in-register scatter of this step's hidden rows (static s -> constant mask)
            if num_dirs == 2:
                wm = ((row_gh == s) & (col_gh < H)) | ((row_gh == B - 1 - s) & (col_gh >= H))
            else:
                wm = row_gh == s
            out_acc = jnp.where(wm, h, out_acc)

        layer_out = out_acc                                         # (B, GH)
        # inter-layer Dropout(p=0.4): identity at inference
        layer_in = pad_cols(layer_out, in_max)

    # ---- output head: Linear + Sigmoid ----
    b_out = vecs_ref[2:3, :][:, 0:OUT]                              # (1, OUT)
    logits = jnp.dot(layer_out, w_out_ref[...],
                     preferred_element_type=jnp.float32, precision=hp) + b_out
    logits_ref[...] = logits
    sig_ref[...] = jax.nn.sigmoid(logits)


def lstm_1d_7_forward(inputs, times, conv_params, vecs, w_stack, w_out, *, num_dirs):
    B = inputs.shape[0]
    out_dim = w_out.shape[1]
    x_cbl = jnp.transpose(inputs, (1, 0, 2))     # channel-major -> softconv is pure VPU MACs
    vmem = pl.BlockSpec(memory_space=pltpu.MemorySpace.VMEM)
    smem = pl.BlockSpec(memory_space=pltpu.MemorySpace.SMEM)
    kernel = functools.partial(lstm_1d_7_kernel, num_dirs)
    return pl.pallas_call(
        kernel,
        out_shape=(jax.ShapeDtypeStruct((B, out_dim), jnp.float32),
                   jax.ShapeDtypeStruct((B, out_dim), jnp.float32)),
        in_specs=[vmem, vmem, smem, vmem, vmem, vmem],
        out_specs=(vmem, vmem),
    )(x_cbl, times, conv_params, vecs, w_stack, w_out)


def reference_forward(inputs, times, conv_w, conv_b, t2v_w, t2v_b, raw,
                      w_out, b_out, *, num_layers, num_dirs, hidden_per_dir, seq_len):
    """Pure-JAX unfused reference with the same math (numerical sanity check)."""
    hp = jax.lax.Precision.HIGHEST
    H, B = hidden_per_dir, seq_len
    feature = jnp.sum(inputs * conv_w, axis=1) + conv_b
    lin = jnp.dot(times, t2v_w, precision=hp) + t2v_b
    D = lin.shape[1]
    times_vec = jnp.concatenate([jnp.sin(lin[:, :D - 1]), lin[:, D - 1:]], axis=1)
    x = feature + 0.001 * times_vec
    for l in range(num_layers):
        outs = []
        for d in range(num_dirs):
            W_ih, W_hh, bb = raw[(l, d)]
            h = jnp.zeros((H,), jnp.float32)
            c = jnp.zeros((H,), jnp.float32)
            hs = [None] * B
            order = range(B) if d == 0 else range(B - 1, -1, -1)
            for t in order:
                g = (jnp.dot(x[t], W_ih, precision=hp)
                     + jnp.dot(h, W_hh, precision=hp) + bb)
                i_g = jax.nn.sigmoid(g[0:H])
                f_g = jax.nn.sigmoid(g[H:2 * H])
                g_g = jnp.tanh(g[2 * H:3 * H])
                o_g = jax.nn.sigmoid(g[3 * H:4 * H])
                c = f_g * c + i_g * g_g
                h = o_g * jnp.tanh(c)
                hs[t] = h
            outs.append(jnp.stack(hs, axis=0))
        x = jnp.concatenate(outs, axis=1)
    logits = jnp.dot(x, w_out, precision=hp) + b_out
    return jax.nn.sigmoid(logits), logits


if __name__ == "__main__":
    # Module hyperparameters (small, consistent with the forward):
    CNN_DIM, INPUT_DIM, HIDDEN_DIM, OUTPUT_DIM = 4, 32, 32, 3
    LAYER_NUM, BIDIR = 2, True
    B = 8                                   # conv batch == (unbatched) LSTM sequence length
    NDIR = 2 if BIDIR else 1
    H = HIDDEN_DIM // NDIR                  # hidden per direction
    GH = NDIR * H                           # fused per-gate block width == LSTM output width
    GW = 4 * GH                             # fused gate vector width (128)
    IN_MAX = max(INPUT_DIM, GH)
    assert INPUT_DIM <= GW and OUTPUT_DIM <= GW

    key = jax.random.PRNGKey(0)
    ks = jax.random.split(key, 12)

    # --- example inputs ---
    inputs = jax.random.normal(ks[0], (B, CNN_DIM, INPUT_DIM), jnp.float32)
    times = jax.random.uniform(ks[1], (B, 1), jnp.float32)

    # --- softconv weight/bias ---
    # TODO(synk): Weibull(1,3) sampling replaced by deterministic positive init (no checkpoint).
    conv_w = jnp.abs(jax.random.normal(ks[2], (1, CNN_DIM, 1), jnp.float32)) + 0.5
    conv_b = jax.random.normal(ks[3], (1, 1), jnp.float32) * 0.1

    # --- Time2Vec (SineActivation(1, input_dim)) ---
    t2v_w = jax.random.normal(ks[4], (1, INPUT_DIM), jnp.float32)
    t2v_b = jax.random.normal(ks[5], (1, INPUT_DIM), jnp.float32)

    # --- raw per-(layer, direction) LSTM weights (right-multiply layout, gate order i,f,g,o;
    #     b_ih + b_hh folded into one bias) ---
    scale = float(1.0 / np.sqrt(H))
    raw = {}
    sub = jax.random.split(ks[6], LAYER_NUM * NDIR * 3)
    k_i = 0
    for l in range(LAYER_NUM):
        in_size = INPUT_DIM if l == 0 else GH
        for d in range(NDIR):
            W_ih = jax.random.uniform(sub[k_i], (in_size, 4 * H), jnp.float32, -scale, scale); k_i += 1
            W_hh = jax.random.uniform(sub[k_i], (H, 4 * H), jnp.float32, -scale, scale); k_i += 1
            bb = jax.random.uniform(sub[k_i], (4 * H,), jnp.float32, -2 * scale, 2 * scale); k_i += 1
            raw[(l, d)] = (W_ih, W_hh, bb)

    # --- output head Linear(hidden_dim -> output_dim), pre-transposed ---
    w_out = jax.random.uniform(ks[7], (HIDDEN_DIM, OUTPUT_DIM), jnp.float32, -scale, scale)
    b_out = jax.random.uniform(ks[8], (1, OUTPUT_DIM), jnp.float32, -scale, scale)

    # --- pack weights for the fused kernel ---
    # gate blocks [i|f|g|o] of width GH, within each block [fwd H | bwd H];
    # W_hh block-diagonal over directions; W_ih and W_hh stacked per layer.
    w_stack_np = np.zeros((LAYER_NUM, IN_MAX + GH, GW), np.float32)
    vecs_np = np.zeros((3 + LAYER_NUM, GW), np.float32)
    for l in range(LAYER_NUM):
        in_size = INPUT_DIM if l == 0 else GH
        for d in range(NDIR):
            W_ih, W_hh, bb = (np.asarray(a) for a in raw[(l, d)])
            for g in range(4):
                c0 = g * GH + d * H
                w_stack_np[l, :in_size, c0:c0 + H] = W_ih[:, g * H:(g + 1) * H]
                w_stack_np[l, IN_MAX + d * H:IN_MAX + (d + 1) * H, c0:c0 + H] = \
                    W_hh[:, g * H:(g + 1) * H]
                vecs_np[3 + l, c0:c0 + H] = bb[g * H:(g + 1) * H]
    # tanh-as-sigmoid trick: fold x2 into the g-gate (block 2) columns so the kernel
    # needs only one sigmoid pass per step.
    w_stack_np[:, :, 2 * GH:3 * GH] *= 2.0
    vecs_np[3:, 2 * GH:3 * GH] *= 2.0
    # small vectors packed into the same buffer: t2v_w, t2v_b, b_out
    vecs_np[0, :INPUT_DIM] = np.asarray(t2v_w)[0]
    vecs_np[1, :INPUT_DIM] = np.asarray(t2v_b)[0]
    vecs_np[2, :OUTPUT_DIM] = np.asarray(b_out)[0]
    # conv weight + bias as one small SMEM vector
    conv_np = np.concatenate([np.asarray(conv_w).reshape(-1),
                              np.asarray(conv_b).reshape(-1)]).astype(np.float32)

    w_stack = jnp.asarray(w_stack_np)
    vecs = jnp.asarray(vecs_np)
    conv_params = jnp.asarray(conv_np)

    sig, logits = lstm_1d_7_forward(inputs, times, conv_params, vecs, w_stack, w_out,
                                    num_dirs=NDIR)
    jax.block_until_ready((sig, logits))

    # numerical sanity check against the unfused pure-JAX reference
    ref_sig, ref_logits = reference_forward(
        inputs, times, conv_w, conv_b, t2v_w, t2v_b, raw, w_out, b_out,
        num_layers=LAYER_NUM, num_dirs=NDIR, hidden_per_dir=H, seq_len=B)
    np.testing.assert_allclose(np.asarray(logits), np.asarray(ref_logits), rtol=5e-3, atol=5e-3)
    np.testing.assert_allclose(np.asarray(sig), np.asarray(ref_sig), rtol=5e-3, atol=5e-3)

    assert sig.shape == (B, OUTPUT_DIM) and logits.shape == (B, OUTPUT_DIM)
    assert bool(jnp.all(jnp.isfinite(logits))) and bool(jnp.all((sig >= 0) & (sig <= 1)))
    print("KERNEL_OK")
</pallas_src>

<mosaic_0001>
module attributes {stable_mosaic.version = 11 : i64} {
  func.func @lstm_1d_7_kernel(%arg0: memref<4x8x32xf32, #tpu.memory_space<vmem>>, %arg1: memref<8x1xf32, #tpu.memory_space<vmem>>, %arg2: memref<5xf32, #tpu.memory_space<smem>>, %arg3: memref<5x128xf32, #tpu.memory_space<vmem>>, %arg4: memref<2x64x128xf32, #tpu.memory_space<vmem>>, %arg5: memref<32x3xf32, #tpu.memory_space<vmem>>, %arg6: memref<8x3xf32, #tpu.memory_space<vmem>>, %arg7: memref<8x3xf32, #tpu.memory_space<vmem>>) attributes {dimension_semantics = [], scalar_prefetch = 0 : i64, scratch_operands = 0 : i64, tpu.core_type = #tpu.core_type<tc>} {
    %c0 = arith.constant 0 : index
    %c0_0 = arith.constant 0 : index
    %c0_1 = arith.constant 0 : index
    %0 = vector.load %arg0[%c0, %c0_0, %c0_1] : memref<4x8x32xf32, #tpu.memory_space<vmem>>, vector<1x8x32xf32>
    %1 = vector.shape_cast %0 : vector<1x8x32xf32> to vector<8x32xf32>
    %c0_2 = arith.constant 0 : index
    %2 = memref.load %arg2[%c0_2] : memref<5xf32, #tpu.memory_space<smem>>
    %3 = vector.broadcast %2 : f32 to vector<8x32xf32>
    %4 = arith.mulf %1, %3 : vector<8x32xf32>
    %c1 = arith.constant 1 : index
    %c0_3 = arith.constant 0 : index
    %c0_4 = arith.constant 0 : index
    %5 = vector.load %arg0[%c1, %c0_3, %c0_4] : memref<4x8x32xf32, #tpu.memory_space<vmem>>, vector<1x8x32xf32>
    %6 = vector.shape_cast %5 : vector<1x8x32xf32> to vector<8x32xf32>
    %c1_5 = arith.constant 1 : index
    %7 = memref.load %arg2[%c1_5] : memref<5xf32, #tpu.memory_space<smem>>
    %8 = vector.broadcast %7 : f32 to vector<8x32xf32>
    %9 = arith.mulf %6, %8 : vector<8x32xf32>
    %10 = arith.addf %4, %9 : vector<8x32xf32>
    %c2 = arith.constant 2 : index
    %c0_6 = arith.constant 0 : index
    %c0_7 = arith.constant 0 : index
    %11 = vector.load %arg0[%c2, %c0_6, %c0_7] : memref<4x8x32xf32, #tpu.memory_space<vmem>>, vector<1x8x32xf32>
    %12 = vector.shape_cast %11 : vector<1x8x32xf32> to vector<8x32xf32>
    %c2_8 = arith.constant 2 : index
    %13 = memref.load %arg2[%c2_8] : memref<5xf32, #tpu.memory_space<smem>>
    %14 = vector.broadcast %13 : f32 to vector<8x32xf32>
    %15 = arith.mulf %12, %14 : vector<8x32xf32>
    %16 = arith.addf %10, %15 : vector<8x32xf32>
    %c3 = arith.constant 3 : index
    %c0_9 = arith.constant 0 : index
    %c0_10 = arith.constant 0 : index
    %17 = vector.load %arg0[%c3, %c0_9, %c0_10] : memref<4x8x32xf32, #tpu.memory_space<vmem>>, vector<1x8x32xf32>
    %18 = vector.shape_cast %17 : vector<1x8x32xf32> to vector<8x32xf32>
    %c3_11 = arith.constant 3 : index
    %19 = memref.load %arg2[%c3_11] : memref<5xf32, #tpu.memory_space<smem>>
    %20 = vector.broadcast %19 : f32 to vector<8x32xf32>
    %21 = arith.mulf %18, %20 : vector<8x32xf32>
    %22 = arith.addf %16, %21 : vector<8x32xf32>
    %c4 = arith.constant 4 : index
    %23 = memref.load %arg2[%c4] : memref<5xf32, #tpu.memory_space<smem>>
    %24 = vector.broadcast %23 : f32 to vector<8x32xf32>
    %25 = arith.addf %22, %24 : vector<8x32xf32>
    %c0_12 = arith.constant 0 : index
    %c0_13 = arith.constant 0 : index
    %26 = vector.load %arg1[%c0_12, %c0_13] : memref<8x1xf32, #tpu.memory_space<vmem>>, vector<8x1xf32>
    %c0_14 = arith.constant 0 : index
    %c0_15 = arith.constant 0 : index
    %27 = vector.load %arg3[%c0_14, %c0_15] : memref<5x128xf32, #tpu.memory_space<vmem>>, vector<1x128xf32>
    %28 = vector.extract_strided_slice %27 {offsets = [0, 0], sizes = [1, 32], strides = [1, 1]} : vector<1x128xf32> to vector<1x32xf32>
    %c1_16 = arith.constant 1 : index
    %c0_17 = arith.constant 0 : index
    %29 = vector.load %arg3[%c1_16, %c0_17] : memref<5x128xf32, #tpu.memory_space<vmem>>, vector<1x128xf32>
    %30 = vector.extract_strided_slice %29 {offsets = [0, 0], sizes = [1, 32], strides = [1, 1]} : vector<1x128xf32> to vector<1x32xf32>
    %31 = vector.broadcast %26 : vector<8x1xf32> to vector<8x32xf32>
    %32 = vector.broadcast %28 : vector<1x32xf32> to vector<8x32xf32>
    %33 = arith.mulf %31, %32 : vector<8x32xf32>
    %34 = vector.broadcast %30 : vector<1x32xf32> to vector<8x32xf32>
    %35 = arith.addf %33, %34 : vector<8x32xf32>
    %36 = tpu.iota {dimensions = array<i32: 1>} : vector<8x32xi32>
    %c31_i32 = arith.constant 31 : i32
    %37 = vector.broadcast %c31_i32 : i32 to vector<8x32xi32>
    %38 = arith.cmpi slt, %36, %37 : vector<8x32xi32>
    %39 = math.sin %35 : vector<8x32xf32>
    %40 = arith.select %38, %39, %35 : vector<8x32xi1>, vector<8x32xf32>
    %cst = arith.constant 1.000000e-03 : f32
    %41 = vector.broadcast %cst : f32 to vector<8x32xf32>
    %42 = arith.mulf %41, %40 : vector<8x32xf32>
    %43 = arith.addf %25, %42 : vector<8x32xf32>
    %44 = tpu.iota {dimensions = array<i32: 1>} : vector<1x128xi32>
    %c64_i32 = arith.constant 64 : i32
    %45 = vector.broadcast %c64_i32 : i32 to vector<1x128xi32>
    %46 = arith.cmpi sge, %44, %45 : vector<1x128xi32>
    %c96_i32 = arith.constant 96 : i32
    %47 = vector.broadcast %c96_i32 : i32 to vector<1x128xi32>
    %48 = arith.cmpi slt, %44, %47 : vector<1x128xi32>
    %49 = arith.andi %46, %48 : vector<1x128xi1>
    %cst_18 = arith.constant 2.000000e+00 : f32
    %cst_19 = arith.constant 1.000000e+00 : f32
    %50 = vector.broadcast %cst_18 : f32 to vector<1x128xf32>
    %51 = vector.broadcast %cst_19 : f32 to vector<1x128xf32>
    %52 = arith.select %49, %50, %51 : vector<1x128xi1>, vector<1x128xf32>
    %cst_20 = arith.constant -1.000000e+00 : f32
    %cst_21 = arith.constant 0.000000e+00 : f32
    %53 = vector.broadcast %cst_20 : f32 to vector<1x128xf32>
    %54 = vector.broadcast %cst_21 : f32 to vector<1x128xf32>
    %55 = arith.select %49, %53, %54 : vector<1x128xi1>, vector<1x128xf32>
    %c0_i32 = arith.constant 0 : i32
    %56 = vector.broadcast %c0_i32 : i32 to vector<1x128xi32>
    %57 = arith.cmpi slt, %44, %56 : vector<1x128xi32>
    %c0_i32_22 = arith.constant 0 : i32
    %58 = vector.broadcast %c0_i32_22 : i32 to vector<1x128xi32>
    %59 = arith.cmpi sge, %44, %58 : vector<1x128xi32>
    %c16_i32 = arith.constant 16 : i32
    %60 = vector.broadcast %c16_i32 : i32 to vector<1x128xi32>
    %61 = arith.cmpi slt, %44, %60 : vector<1x128xi32>
    %62 = arith.andi %59, %61 : vector<1x128xi1>
    %63 = arith.ori %57, %62 : vector<1x128xi1>
    %c32_i32 = arith.constant 32 : i32
    %64 = vector.broadcast %c32_i32 : i32 to vector<1x128xi32>
    %65 = arith.cmpi sge, %44, %64 : vector<1x128xi32>
    %c48_i32 = arith.constant 48 : i32
    %66 = vector.broadcast %c48_i32 : i32 to vector<1x128xi32>
    %67 = arith.cmpi slt, %44, %66 : vector<1x128xi32>
    %68 = arith.andi %65, %67 : vector<1x128xi1>
    %69 = arith.ori %63, %68 : vector<1x128xi1>
    %c64_i32_23 = arith.constant 64 : i32
    %70 = vector.broadcast %c64_i32_23 : i32 to vector<1x128xi32>
    %71 = arith.cmpi sge, %44, %70 : vector<1x128xi32>
    %c80_i32 = arith.constant 80 : i32
    %72 = vector.broadcast %c80_i32 : i32 to vector<1x128xi32>
    %73 = arith.cmpi slt, %44, %72 : vector<1x128xi32>
    %74 = arith.andi %71, %73 : vector<1x128xi1>
    %75 = arith.ori %69, %74 : vector<1x128xi1>
    %c96_i32_24 = arith.constant 96 : i32
    %76 = vector.broadcast %c96_i32_24 : i32 to vector<1x128xi32>
    %77 = arith.cmpi sge, %44, %76 : vector<1x128xi32>
    %c112_i32 = arith.constant 112 : i32
    %78 = vector.broadcast %c112_i32 : i32 to vector<1x128xi32>
    %79 = arith.cmpi slt, %44, %78 : vector<1x128xi32>
    %80 = arith.andi %77, %79 : vector<1x128xi1>
    %81 = arith.ori %75, %80 : vector<1x128xi1>
    %82 = tpu.iota {dimensions = array<i32: 0>} : vector<8x32xi32>
    %83 = tpu.iota {dimensions = array<i32: 1>} : vector<8x32xi32>
    %c0_25 = arith.constant 0 : index
    %c0_26 = arith.constant 0 : index
    %c0_27 = arith.constant 0 : index
    %84 = vector.load %arg4[%c0_25, %c0_26, %c0_27] : memref<2x64x128xf32, #tpu.memory_space<vmem>>, vector<1x64x128xf32>
    %85 = vector.shape_cast %84 : vector<1x64x128xf32> to vector<64x128xf32>
    %86 = vector.extract_strided_slice %85 {offsets = [0, 0], sizes = [32, 128], strides = [1, 1]} : vector<64x128xf32> to vector<32x128xf32>
    %87 = vector.extract_strided_slice %85 {offsets = [32, 0], sizes = [32, 128], strides = [1, 1]} : vector<64x128xf32> to vector<32x128xf32>
    %c3_28 = arith.constant 3 : index
    %c0_29 = arith.constant 0 : index
    %88 = vector.load %arg3[%c3_28, %c0_29] : memref<5x128xf32, #tpu.memory_space<vmem>>, vector<1x128xf32>
    %cst_30 = arith.constant dense<0.000000e+00> : vector<8x128xf32>
    %89 = tpu.matmul %43, %86, %cst_30 {dimension_numbers = #tpu.dot_dimension_numbers<[1], [0], [0], [1], [0, 0, 1, 1], [], []>, precision = #tpu.contract_precision<fp32>} : vector<8x32xf32>, vector<32x128xf32>, vector<8x128xf32> -> vector<8x128xf32>
    %90 = vector.broadcast %88 : vector<1x128xf32> to vector<8x128xf32>
    %91 = arith.addf %89, %90 : vector<8x128xf32>
    %92 = vector.extract_strided_slice %91 {offsets = [7, 0], sizes = [1, 128], strides = [1, 1]} : vector<8x128xf32> to vector<1x128xf32>
    %93 = vector.extract_strided_slice %91 {offsets = [6, 0], sizes = [1, 128], strides = [1, 1]} : vector<8x128xf32> to vector<1x128xf32>
    %94 = vector.extract_strided_slice %91 {offsets = [5, 0], sizes = [1, 128], strides = [1, 1]} : vector<8x128xf32> to vector<1x128xf32>
    %95 = vector.extract_strided_slice %91 {offsets = [4, 0], sizes = [1, 128], strides = [1, 1]} : vector<8x128xf32> to vector<1x128xf32>
    %96 = vector.extract_strided_slice %91 {offsets = [3, 0], sizes = [1, 128], strides = [1, 1]} : vector<8x128xf32> to vector<1x128xf32>
    %97 = vector.extract_strided_slice %91 {offsets = [2, 0], sizes = [1, 128], strides = [1, 1]} : vector<8x128xf32> to vector<1x128xf32>
    %98 = vector.extract_strided_slice %91 {offsets = [1, 0], sizes = [1, 128], strides = [1, 1]} : vector<8x128xf32> to vector<1x128xf32>
    %99 = vector.extract_strided_slice %91 {offsets = [0, 0], sizes = [1, 128], strides = [1, 1]} : vector<8x128xf32> to vector<1x128xf32>
    %100 = tpu.concatenate %92, %93, %94, %95, %96, %97, %98, %99 in 0 : vector<1x128xf32>, vector<1x128xf32>, vector<1x128xf32>, vector<1x128xf32>, vector<1x128xf32>, vector<1x128xf32>, vector<1x128xf32>, vector<1x128xf32> -> vector<8x128xf32>
    %101 = vector.shape_cast %81 : vector<1x128xi1> to vector<1x128xi1>
    %102 = vector.broadcast %101 : vector<1x128xi1> to vector<8x128xi1>
    %103 = arith.select %102, %91, %100 : vector<8x128xi1>, vector<8x128xf32>
    %cst_31 = arith.constant 0.000000e+00 : f32
    %104 = vector.broadcast %cst_31 : f32 to vector<1x32xf32>
    %cst_32 = arith.constant 0.000000e+00 : f32
    %105 = vector.broadcast %cst_32 : f32 to vector<1x32xf32>
    %cst_33 = arith.constant 0.000000e+00 : f32
    %106 = vector.broadcast %cst_33 : f32 to vector<8x32xf32>
    %107 = vector.extract_strided_slice %103 {offsets = [0, 0], sizes = [1, 128], strides = [1, 1]} : vector<8x128xf32> to vector<1x128xf32>
    %cst_34 = arith.constant dense<0.000000e+00> : vector<1x128xf32>
    %108 = tpu.matmul %104, %87, %cst_34 {dimension_numbers = #tpu.dot_dimension_numbers<[1], [0], [0], [1], [0, 0, 1, 1], [], []>} : vector<1x32xf32>, vector<32x128xf32>, vector<1x128xf32> -> vector<1x128xf32>
    %109 = arith.addf %107, %108 : vector<1x128xf32>
    %110 = arith.negf %109 : vector<1x128xf32>
    %111 = math.exp %110 : vector<1x128xf32>
    %cst_35 = arith.constant 1.000000e+00 : f32
    %112 = vector.broadcast %cst_35 : f32 to vector<1x128xf32>
    %113 = arith.addf %112, %111 : vector<1x128xf32>
    %114 = arith.divf %112, %113 : vector<1x128xf32>
    %115 = arith.mulf %114, %52 : vector<1x128xf32>
    %116 = arith.addf %115, %55 : vector<1x128xf32>
    %117 = vector.extract_strided_slice %116 {offsets = [0, 0], sizes = [1, 32], strides = [1, 1]} : vector<1x128xf32> to vector<1x32xf32>
    %118 = vector.extract_strided_slice %116 {offsets = [0, 32], sizes = [1, 32], strides = [1, 1]} : vector<1x128xf32> to vector<1x32xf32>
    %119 = vector.extract_strided_slice %116 {offsets = [0, 64], sizes = [1, 32], strides = [1, 1]} : vector<1x128xf32> to vector<1x32xf32>
    %120 = vector.extract_strided_slice %116 {offsets = [0, 96], sizes = [1, 32], strides = [1, 1]} : vector<1x128xf32> to vector<1x32xf32>
    %121 = arith.mulf %118, %105 : vector<1x32xf32>
    %122 = arith.mulf %117, %119 : vector<1x32xf32>
    %123 = arith.addf %121, %122 : vector<1x32xf32>
    %124 = math.tanh %123 : vector<1x32xf32>
    %125 = arith.mulf %120, %124 : vector<1x32xf32>
    %c0_i32_36 = arith.constant 0 : i32
    %126 = vector.broadcast %c0_i32_36 : i32 to vector<8x32xi32>
    %127 = arith.cmpi eq, %82, %126 : vector<8x32xi32>
    %c16_i32_37 = arith.constant 16 : i32
    %128 = vector.broadcast %c16_i32_37 : i32 to vector<8x32xi32>
    %129 = arith.cmpi slt, %83, %128 : vector<8x32xi32>
    %130 = arith.andi %127, %129 : vector<8x32xi1>
    %c7_i32 = arith.constant 7 : i32
    %131 = vector.broadcast %c7_i32 : i32 to vector<8x32xi32>
    %132 = arith.cmpi eq, %82, %131 : vector<8x32xi32>
    %c16_i32_38 = arith.constant 16 : i32
    %133 = vector.broadcast %c16_i32_38 : i32 to vector<8x32xi32>
    %134 = arith.cmpi sge, %83, %133 : vector<8x32xi32>
    %135 = arith.andi %132, %134 : vector<8x32xi1>
    %136 = arith.ori %130, %135 : vector<8x32xi1>
    %137 = vector.shape_cast %125 : vector<1x32xf32> to vector<1x32xf32>
    %138 = vector.broadcast %137 : vector<1x32xf32> to vector<8x32xf32>
    %139 = arith.select %136, %138, %106 : vector<8x32xi1>, vector<8x32xf32>
    %140 = vector.extract_strided_slice %103 {offsets = [1, 0], sizes = [1, 128], strides = [1, 1]} : vector<8x128xf32> to vector<1x128xf32>
    %cst_39 = arith.constant dense<0.000000e+00> : vector<1x128xf32>
    %141 = tpu.matmul %125, %87, %cst_39 {dimension_numbers = #tpu.dot_dimension_numbers<[1], [0], [0], [1], [0, 0, 1, 1], [], []>} : vector<1x32xf32>, vector<32x128xf32>, vector<1x128xf32> -> vector<1x128xf32>
    %142 = arith.addf %140, %141 : vector<1x128xf32>
    %143 = arith.negf %142 : vector<1x128xf32>
    %144 = math.exp %143 : vector<1x128xf32>
    %cst_40 = arith.constant 1.000000e+00 : f32
    %145 = vector.broadcast %cst_40 : f32 to vector<1x128xf32>
    %146 = arith.addf %145, %144 : vector<1x128xf32>
    %147 = arith.divf %145, %146 : vector<1x128xf32>
    %148 = arith.mulf %147, %52 : vector<1x128xf32>
    %149 = arith.addf %148, %55 : vector<1x128xf32>
    %150 = vector.extract_strided_slice %149 {offsets = [0, 0], sizes = [1, 32], strides = [1, 1]} : vector<1x128xf32> to vector<1x32xf32>
    %151 = vector.extract_strided_slice %149 {offsets = [0, 32], sizes = [1, 32], strides = [1, 1]} : vector<1x128xf32> to vector<1x32xf32>
    %152 = vector.extract_strided_slice %149 {offsets = [0, 64], sizes = [1, 32], strides = [1, 1]} : vector<1x128xf32> to vector<1x32xf32>
    %153 = vector.extract_strided_slice %149 {offsets = [0, 96], sizes = [1, 32], strides = [1, 1]} : vector<1x128xf32> to vector<1x32xf32>
    %154 = arith.mulf %151, %123 : vector<1x32xf32>
    %155 = arith.mulf %150, %152 : vector<1x32xf32>
    %156 = arith.addf %154, %155 : vector<1x32xf32>
    %157 = math.tanh %156 : vector<1x32xf32>
    %158 = arith.mulf %153, %157 : vector<1x32xf32>
    %c1_i32 = arith.constant 1 : i32
    %159 = vector.broadcast %c1_i32 : i32 to vector<8x32xi32>
    %160 = arith.cmpi eq, %82, %159 : vector<8x32xi32>
    %c16_i32_41 = arith.constant 16 : i32
    %161 = vector.broadcast %c16_i32_41 : i32 to vector<8x32xi32>
    %162 = arith.cmpi slt, %83, %161 : vector<8x32xi32>
    %163 = arith.andi %160, %162 : vector<8x32xi1>
    %c6_i32 = arith.constant 6 : i32
    %164 = vector.broadcast %c6_i32 : i32 to vector<8x32xi32>
    %165 = arith.cmpi eq, %82, %164 : vector<8x32xi32>
    %c16_i32_42 = arith.constant 16 : i32
    %166 = vector.broadcast %c16_i32_42 : i32 to vector<8x32xi32>
    %167 = arith.cmpi sge, %83, %166 : vector<8x32xi32>
    %168 = arith.andi %165, %167 : vector<8x32xi1>
    %169 = arith.ori %163, %168 : vector<8x32xi1>
    %170 = vector.shape_cast %158 : vector<1x32xf32> to vector<1x32xf32>
    %171 = vector.broadcast %170 : vector<1x32xf32> to vector<8x32xf32>
    %172 = arith.select %169, %171, %139 : vector<8x32xi1>, vector<8x32xf32>
    %173 = vector.extract_strided_slice %103 {offsets = [2, 0], sizes = [1, 128], strides = [1, 1]} : vector<8x128xf32> to vector<1x128xf32>
    %cst_43 = arith.constant dense<0.000000e+00> : vector<1x128xf32>
    %174 = tpu.matmul %158, %87, %cst_43 {dimension_numbers = #tpu.dot_dimension_numbers<[1], [0], [0], [1], [0, 0, 1, 1], [], []>} : vector<1x32xf32>, vector<32x128xf32>, vector<1x128xf32> -> vector<1x128xf32>
    %175 = arith.addf %173, %174 : vector<1x128xf32>
    %176 = arith.negf %175 : vector<1x128xf32>
    %177 = math.exp %176 : vector<1x128xf32>
    %cst_44 = arith.constant 1.000000e+00 : f32
    %178 = vector.broadcast %cst_44 : f32 to vector<1x128xf32>
    %179 = arith.addf %178, %177 : vector<1x128xf32>
    %180 = arith.divf %178, %179 : vector<1x128xf32>
    %181 = arith.mulf %180, %52 : vector<1x128xf32>
    %182 = arith.addf %181, %55 : vector<1x128xf32>
    %183 = vector.extract_strided_slice %182 {offsets = [0, 0], sizes = [1, 32], strides = [1, 1]} : vector<1x128xf32> to vector<1x32xf32>
    %184 = vector.extract_strided_slice %182 {offsets = [0, 32], sizes = [1, 32], strides = [1, 1]} : vector<1x128xf32> to vector<1x32xf32>
    %185 = vector.extract_strided_slice %182 {offsets = [0, 64], sizes = [1, 32], strides = [1, 1]} : vector<1x128xf32> to vector<1x32xf32>
    %186 = vector.extract_strided_slice %182 {offsets = [0, 96], sizes = [1, 32], strides = [1, 1]} : vector<1x128xf32> to vector<1x32xf32>
    %187 = arith.mulf %184, %156 : vector<1x32xf32>
    %188 = arith.mulf %183, %185 : vector<1x32xf32>
    %189 = arith.addf %187, %188 : vector<1x32xf32>
    %190 = math.tanh %189 : vector<1x32xf32>
    %191 = arith.mulf %186, %190 : vector<1x32xf32>
    %c2_i32 = arith.constant 2 : i32
    %192 = vector.broadcast %c2_i32 : i32 to vector<8x32xi32>
    %193 = arith.cmpi eq, %82, %192 : vector<8x32xi32>
    %c16_i32_45 = arith.constant 16 : i32
    %194 = vector.broadcast %c16_i32_45 : i32 to vector<8x32xi32>
    %195 = arith.cmpi slt, %83, %194 : vector<8x32xi32>
    %196 = arith.andi %193, %195 : vector<8x32xi1>
    %c5_i32 = arith.constant 5 : i32
    %197 = vector.broadcast %c5_i32 : i32 to vector<8x32xi32>
    %198 = arith.cmpi eq, %82, %197 : vector<8x32xi32>
    %c16_i32_46 = arith.constant 16 : i32
    %199 = vector.broadcast %c16_i32_46 : i32 to vector<8x32xi32>
    %200 = arith.cmpi sge, %83, %199 : vector<8x32xi32>
    %201 = arith.andi %198, %200 : vector<8x32xi1>
    %202 = arith.ori %196, %201 : vector<8x32xi1>
    %203 = vector.shape_cast %191 : vector<1x32xf32> to vector<1x32xf32>
    %204 = vector.broadcast %203 : vector<1x32xf32> to vector<8x32xf32>
    %205 = arith.select %202, %204, %172 : vector<8x32xi1>, vector<8x32xf32>
    %206 = vector.extract_strided_slice %103 {offsets = [3, 0], sizes = [1, 128], strides = [1, 1]} : vector<8x128xf32> to vector<1x128xf32>
    %cst_47 = arith.constant dense<0.000000e+00> : vector<1x128xf32>
    %207 = tpu.matmul %191, %87, %cst_47 {dimension_numbers = #tpu.dot_dimension_numbers<[1], [0], [0], [1], [0, 0, 1, 1], [], []>} : vector<1x32xf32>, vector<32x128xf32>, vector<1x128xf32> -> vector<1x128xf32>
    %208 = arith.addf %206, %207 : vector<1x128xf32>
    %209 = arith.negf %208 : vector<1x128xf32>
    %210 = math.exp %209 : vector<1x128xf32>
    %cst_48 = arith.constant 1.000000e+00 : f32
    %211 = vector.broadcast %cst_48 : f32 to vector<1x128xf32>
    %212 = arith.addf %211, %210 : vector<1x128xf32>
    %213 = arith.divf %211, %212 : vector<1x128xf32>
    %214 = arith.mulf %213, %52 : vector<1x128xf32>
    %215 = arith.addf %214, %55 : vector<1x128xf32>
    %216 = vector.extract_strided_slice %215 {offsets = [0, 0], sizes = [1, 32], strides = [1, 1]} : vector<1x128xf32> to vector<1x32xf32>
    %217 = vector.extract_strided_slice %215 {offsets = [0, 32], sizes = [1, 32], strides = [1, 1]} : vector<1x128xf32> to vector<1x32xf32>
    %218 = vector.extract_strided_slice %215 {offsets = [0, 64], sizes = [1, 32], strides = [1, 1]} : vector<1x128xf32> to vector<1x32xf32>
    %219 = vector.extract_strided_slice %215 {offsets = [0, 96], sizes = [1, 32], strides = [1, 1]} : vector<1x128xf32> to vector<1x32xf32>
    %220 = arith.mulf %217, %189 : vector<1x32xf32>
    %221 = arith.mulf %216, %218 : vector<1x32xf32>
    %222 = arith.addf %220, %221 : vector<1x32xf32>
    %223 = math.tanh %222 : vector<1x32xf32>
    %224 = arith.mulf %219, %223 : vector<1x32xf32>
    %c3_i32 = arith.constant 3 : i32
    %225 = vector.broadcast %c3_i32 : i32 to vector<8x32xi32>
    %226 = arith.cmpi eq, %82, %225 : vector<8x32xi32>
    %c16_i32_49 = arith.constant 16 : i32
    %227 = vector.broadcast %c16_i32_49 : i32 to vector<8x32xi32>
    %228 = arith.cmpi slt, %83, %227 : vector<8x32xi32>
    %229 = arith.andi %226, %228 : vector<8x32xi1>
    %c4_i32 = arith.constant 4 : i32
    %230 = vector.broadcast %c4_i32 : i32 to vector<8x32xi32>
    %231 = arith.cmpi eq, %82, %230 : vector<8x32xi32>
    %c16_i32_50 = arith.constant 16 : i32
    %232 = vector.broadcast %c16_i32_50 : i32 to vector<8x32xi32>
    %233 = arith.cmpi sge, %83, %232 : vector<8x32xi32>
    %234 = arith.andi %231, %233 : vector<8x32xi1>
    %235 = arith.ori %229, %234 : vector<8x32xi1>
    %236 = vector.shape_cast %224 : vector<1x32xf32> to vector<1x32xf32>
    %237 = vector.broadcast %236 : vector<1x32xf32> to vector<8x32xf32>
    %238 = arith.select %235, %237, %205 : vector<8x32xi1>, vector<8x32xf32>
    %239 = vector.extract_strided_slice %103 {offsets = [4, 0], sizes = [1, 128], strides = [1, 1]} : vector<8x128xf32> to vector<1x128xf32>
    %cst_51 = arith.constant dense<0.000000e+00> : vector<1x128xf32>
    %240 = tpu.matmul %224, %87, %cst_51 {dimension_numbers = #tpu.dot_dimension_numbers<[1], [0], [0], [1], [0, 0, 1, 1], [], []>} : vector<1x32xf32>, vector<32x128xf32>, vector<1x128xf32> -> vector<1x128xf32>
    %241 = arith.addf %239, %240 : vector<1x128xf32>
    %242 = arith.negf %241 : vector<1x128xf32>
    %243 = math.exp %242 : vector<1x128xf32>
    %cst_52 = arith.constant 1.000000e+00 : f32
    %244 = vector.broadcast %cst_52 : f32 to vector<1x128xf32>
    %245 = arith.addf %244, %243 : vector<1x128xf32>
    %246 = arith.divf %244, %245 : vector<1x128xf32>
    %247 = arith.mulf %246, %52 : vector<1x128xf32>
    %248 = arith.addf %247, %55 : vector<1x128xf32>
    %249 = vector.extract_strided_slice %248 {offsets = [0, 0], sizes = [1, 32], strides = [1, 1]} : vector<1x128xf32> to vector<1x32xf32>
    %250 = vector.extract_strided_slice %248 {offsets = [0, 32], sizes = [1, 32], strides = [1, 1]} : vector<1x128xf32> to vector<1x32xf32>
    %251 = vector.extract_strided_slice %248 {offsets = [0, 64], sizes = [1, 32], strides = [1, 1]} : vector<1x128xf32> to vector<1x32xf32>
    %252 = vector.extract_strided_slice %248 {offsets = [0, 96], sizes = [1, 32], strides = [1, 1]} : vector<1x128xf32> to vector<1x32xf32>
    %253 = arith.mulf %250, %222 : vector<1x32xf32>
    %254 = arith.mulf %249, %251 : vector<1x32xf32>
    %255 = arith.addf %253, %254 : vector<1x32xf32>
    %256 = math.tanh %255 : vector<1x32xf32>
    %257 = arith.mulf %252, %256 : vector<1x32xf32>
    %c4_i32_53 = arith.constant 4 : i32
    %258 = vector.broadcast %c4_i32_53 : i32 to vector<8x32xi32>
    %259 = arith.cmpi eq, %82, %258 : vector<8x32xi32>
    %c16_i32_54 = arith.constant 16 : i32
    %260 = vector.broadcast %c16_i32_54 : i32 to vector<8x32xi32>
    %261 = arith.cmpi slt, %83, %260 : vector<8x32xi32>
    %262 = arith.andi %259, %261 : vector<8x32xi1>
    %c3_i32_55 = arith.constant 3 : i32
    %263 = vector.broadcast %c3_i32_55 : i32 to vector<8x32xi32>
    %264 = arith.cmpi eq, %82, %263 : vector<8x32xi32>
    %c16_i32_56 = arith.constant 16 : i32
    %265 = vector.broadcast %c16_i32_56 : i32 to vector<8x32xi32>
    %266 = arith.cmpi sge, %83, %265 : vector<8x32xi32>
    %267 = arith.andi %264, %266 : vector<8x32xi1>
    %268 = arith.ori %262, %267 : vector<8x32xi1>
    %269 = vector.shape_cast %257 : vector<1x32xf32> to vector<1x32xf32>
    %270 = vector.broadcast %269 : vector<1x32xf32> to vector<8x32xf32>
    %271 = arith.select %268, %270, %238 : vector<8x32xi1>, vector<8x32xf32>
    %272 = vector.extract_strided_slice %103 {offsets = [5, 0], sizes = [1, 128], strides = [1, 1]} : vector<8x128xf32> to vector<1x128xf32>
    %cst_57 = arith.constant dense<0.000000e+00> : vector<1x128xf32>
    %273 = tpu.matmul %257, %87, %cst_57 {dimension_numbers = #tpu.dot_dimension_numbers<[1], [0], [0], [1], [0, 0, 1, 1], [], []>} : vector<1x32xf32>, vector<32x128xf32>, vector<1x128xf32> -> vector<1x128xf32>
    %274 = arith.addf %272, %273 : vector<1x128xf32>
    %275 = arith.negf %274 : vector<1x128xf32>
    %276 = math.exp %275 : vector<1x128xf32>
    %cst_58 = arith.constant 1.000000e+00 : f32
    %277 = vector.broadcast %cst_58 : f32 to vector<1x128xf32>
    %278 = arith.addf %277, %276 : vector<1x128xf32>
    %279 = arith.divf %277, %278 : vector<1x128xf32>
    %280 = arith.mulf %279, %52 : vector<1x128xf32>
    %281 = arith.addf %280, %55 : vector<1x128xf32>
    %282 = vector.extract_strided_slice %281 {offsets = [0, 0], sizes = [1, 32], strides = [1, 1]} : vector<1x128xf32> to vector<1x32xf32>
    %283 = vector.extract_strided_slice %281 {offsets = [0, 32], sizes = [1, 32], strides = [1, 1]} : vector<1x128xf32> to vector<1x32xf32>
    %284 = vector.extract_strided_slice %281 {offsets = [0, 64], sizes = [1, 32], strides = [1, 1]} : vector<1x128xf32> to vector<1x32xf32>
    %285 = vector.extract_strided_slice %281 {offsets = [0, 96], sizes = [1, 32], strides = [1, 1]} : vector<1x128xf32> to vector<1x32xf32>
    %286 = arith.mulf %283, %255 : vector<1x32xf32>
    %287 = arith.mulf %282, %284 : vector<1x32xf32>
    %288 = arith.addf %286, %287 : vector<1x32xf32>
    %289 = math.tanh %288 : vector<1x32xf32>
    %290 = arith.mulf %285, %289 : vector<1x32xf32>
    %c5_i32_59 = arith.constant 5 : i32
    %291 = vector.broadcast %c5_i32_59 : i32 to vector<8x32xi32>
    %292 = arith.cmpi eq, %82, %291 : vector<8x32xi32>
    %c16_i32_60 = arith.constant 16 : i32
    %293 = vector.broadcast %c16_i32_60 : i32 to vector<8x32xi32>
    %294 = arith.cmpi slt, %83, %293 : vector<8x32xi32>
    %295 = arith.andi %292, %294 : vector<8x32xi1>
    %c2_i32_61 = arith.constant 2 : i32
    %296 = vector.broadcast %c2_i32_61 : i32 to vector<8x32xi32>
    %297 = arith.cmpi eq, %82, %296 : vector<8x32xi32>
    %c16_i32_62 = arith.constant 16 : i32
    %298 = vector.broadcast %c16_i32_62 : i32 to vector<8x32xi32>
    %299 = arith.cmpi sge, %83, %298 : vector<8x32xi32>
    %300 = arith.andi %297, %299 : vector<8x32xi1>
    %301 = arith.ori %295, %300 : vector<8x32xi1>
    %302 = vector.shape_cast %290 : vector<1x32xf32> to vector<1x32xf32>
    %303 = vector.broadcast %302 : vector<1x32xf32> to vector<8x32xf32>
    %304 = arith.select %301, %303, %271 : vector<8x32xi1>, vector<8x32xf32>
    %305 = vector.extract_strided_slice %103 {offsets = [6, 0], sizes = [1, 128], strides = [1, 1]} : vector<8x128xf32> to vector<1x128xf32>
    %cst_63 = arith.constant dense<0.000000e+00> : vector<1x128xf32>
    %306 = tpu.matmul %290, %87, %cst_63 {dimension_numbers = #tpu.dot_dimension_numbers<[1], [0], [0], [1], [0, 0, 1, 1], [], []>} : vector<1x32xf32>, vector<32x128xf32>, vector<1x128xf32> -> vector<1x128xf32>
    %307 = arith.addf %305, %306 : vector<1x128xf32>
    %308 = arith.negf %307 : vector<1x128xf32>
    %309 = math.exp %308 : vector<1x128xf32>
    %cst_64 = arith.constant 1.000000e+00 : f32
    %310 = vector.broadcast %cst_64 : f32 to vector<1x128xf32>
    %311 = arith.addf %310, %309 : vector<1x128xf32>
    %312 = arith.divf %310, %311 : vector<1x128xf32>
    %313 = arith.mulf %312, %52 : vector<1x128xf32>
    %314 = arith.addf %313, %55 : vector<1x128xf32>
    %315 = vector.extract_strided_slice %314 {offsets = [0, 0], sizes = [1, 32], strides = [1, 1]} : vector<1x128xf32> to vector<1x32xf32>
    %316 = vector.extract_strided_slice %314 {offsets = [0, 32], sizes = [1, 32], strides = [1, 1]} : vector<1x128xf32> to vector<1x32xf32>
    %317 = vector.extract_strided_slice %314 {offsets = [0, 64], sizes = [1, 32], strides = [1, 1]} : vector<1x128xf32> to vector<1x32xf32>
    %318 = vector.extract_strided_slice %314 {offsets = [0, 96], sizes = [1, 32], strides = [1, 1]} : vector<1x128xf32> to vector<1x32xf32>
    %319 = arith.mulf %316, %288 : vector<1x32xf32>
    %320 = arith.mulf %315, %317 : vector<1x32xf32>
    %321 = arith.addf %319, %320 : vector<1x32xf32>
    %322 = math.tanh %321 : vector<1x32xf32>
    %323 = arith.mulf %318, %322 : vector<1x32xf32>
    %c6_i32_65 = arith.constant 6 : i32
    %324 = vector.broadcast %c6_i32_65 : i32 to vector<8x32xi32>
    %325 = arith.cmpi eq, %82, %324 : vector<8x32xi32>
    %c16_i32_66 = arith.constant 16 : i32
    %326 = vector.broadcast %c16_i32_66 : i32 to vector<8x32xi32>
    %327 = arith.cmpi slt, %83, %326 : vector<8x32xi32>
    %328 = arith.andi %325, %327 : vector<8x32xi1>
    %c1_i32_67 = arith.constant 1 : i32
    %329 = vector.broadcast %c1_i32_67 : i32 to vector<8x32xi32>
    %330 = arith.cmpi eq, %82, %329 : vector<8x32xi32>
    %c16_i32_68 = arith.constant 16 : i32
    %331 = vector.broadcast %c16_i32_68 : i32 to vector<8x32xi32>
    %332 = arith.cmpi sge, %83, %331 : vector<8x32xi32>
    %333 = arith.andi %330, %332 : vector<8x32xi1>
    %334 = arith.ori %328, %333 : vector<8x32xi1>
    %335 = vector.shape_cast %323 : vector<1x32xf32> to vector<1x32xf32>
    %336 = vector.broadcast %335 : vector<1x32xf32> to vector<8x32xf32>
    %337 = arith.select %334, %336, %304 : vector<8x32xi1>, vector<8x32xf32>
    %338 = vector.extract_strided_slice %103 {offsets = [7, 0], sizes = [1, 128], strides = [1, 1]} : vector<8x128xf32> to vector<1x128xf32>
    %cst_69 = arith.constant dense<0.000000e+00> : vector<1x128xf32>
    %339 = tpu.matmul %323, %87, %cst_69 {dimension_numbers = #tpu.dot_dimension_numbers<[1], [0], [0], [1], [0, 0, 1, 1], [], []>} : vector<1x32xf32>, vector<32x128xf32>, vector<1x128xf32> -> vector<1x128xf32>
    %340 = arith.addf %338, %339 : vector<1x128xf32>
    %341 = arith.negf %340 : vector<1x128xf32>
    %342 = math.exp %341 : vector<1x128xf32>
    %cst_70 = arith.constant 1.000000e+00 : f32
    %343 = vector.broadcast %cst_70 : f32 to vector<1x128xf32>
    %344 = arith.addf %343, %342 : vector<1x128xf32>
    %345 = arith.divf %343, %344 : vector<1x128xf32>
    %346 = arith.mulf %345, %52 : vector<1x128xf32>
    %347 = arith.addf %346, %55 : vector<1x128xf32>
    %348 = vector.extract_strided_slice %347 {offsets = [0, 0], sizes = [1, 32], strides = [1, 1]} : vector<1x128xf32> to vector<1x32xf32>
    %349 = vector.extract_strided_slice %347 {offsets = [0, 32], sizes = [1, 32], strides = [1, 1]} : vector<1x128xf32> to vector<1x32xf32>
    %350 = vector.extract_strided_slice %347 {offsets = [0, 64], sizes = [1, 32], strides = [1, 1]} : vector<1x128xf32> to vector<1x32xf32>
    %351 = vector.extract_strided_slice %347 {offsets = [0, 96], sizes = [1, 32], strides = [1, 1]} : vector<1x128xf32> to vector<1x32xf32>
    %352 = arith.mulf %349, %321 : vector<1x32xf32>
    %353 = arith.mulf %348, %350 : vector<1x32xf32>
    %354 = arith.addf %352, %353 : vector<1x32xf32>
    %355 = math.tanh %354 : vector<1x32xf32>
    %356 = arith.mulf %351, %355 : vector<1x32xf32>
    %c7_i32_71 = arith.constant 7 : i32
    %357 = vector.broadcast %c7_i32_71 : i32 to vector<8x32xi32>
    %358 = arith.cmpi eq, %82, %357 : vector<8x32xi32>
    %c16_i32_72 = arith.constant 16 : i32
    %359 = vector.broadcast %c16_i32_72 : i32 to vector<8x32xi32>
    %360 = arith.cmpi slt, %83, %359 : vector<8x32xi32>
    %361 = arith.andi %358, %360 : vector<8x32xi1>
    %c0_i32_73 = arith.constant 0 : i32
    %362 = vector.broadcast %c0_i32_73 : i32 to vector<8x32xi32>
    %363 = arith.cmpi eq, %82, %362 : vector<8x32xi32>
    %c16_i32_74 = arith.constant 16 : i32
    %364 = vector.broadcast %c16_i32_74 : i32 to vector<8x32xi32>
    %365 = arith.cmpi sge, %83, %364 : vector<8x32xi32>
    %366 = arith.andi %363, %365 : vector<8x32xi1>
    %367 = arith.ori %361, %366 : vector<8x32xi1>
    %368 = vector.shape_cast %356 : vector<1x32xf32> to vector<1x32xf32>
    %369 = vector.broadcast %368 : vector<1x32xf32> to vector<8x32xf32>
    %370 = arith.select %367, %369, %337 : vector<8x32xi1>, vector<8x32xf32>
    %c1_75 = arith.constant 1 : index
    %c0_76 = arith.constant 0 : index
    %c0_77 = arith.constant 0 : index
    %371 = vector.load %arg4[%c1_75, %c0_76, %c0_77] : memref<2x64x128xf32, #tpu.memory_space<vmem>>, vector<1x64x128xf32>
    %372 = vector.shape_cast %371 : vector<1x64x128xf32> to vector<64x128xf32>
    %373 = vector.extract_strided_slice %372 {offsets = [0, 0], sizes = [32, 128], strides = [1, 1]} : vector<64x128xf32> to vector<32x128xf32>
    %374 = vector.extract_strided_slice %372 {offsets = [32, 0], sizes = [32, 128], strides = [1, 1]} : vector<64x128xf32> to vector<32x128xf32>
    %c4_78 = arith.constant 4 : index
    %c0_79 = arith.constant 0 : index
    %375 = vector.load %arg3[%c4_78, %c0_79] : memref<5x128xf32, #tpu.memory_space<vmem>>, vector<1x128xf32>
    %cst_80 = arith.constant dense<0.000000e+00> : vector<8x128xf32>
    %376 = tpu.matmul %370, %373, %cst_80 {dimension_numbers = #tpu.dot_dimension_numbers<[1], [0], [0], [1], [0, 0, 1, 1], [], []>, precision = #tpu.contract_precision<fp32>} : vector<8x32xf32>, vector<32x128xf32>, vector<8x128xf32> -> vector<8x128xf32>
    %377 = vector.broadcast %375 : vector<1x128xf32> to vector<8x128xf32>
    %378 = arith.addf %376, %377 : vector<8x128xf32>
    %379 = vector.extract_strided_slice %378 {offsets = [7, 0], sizes = [1, 128], strides = [1, 1]} : vector<8x128xf32> to vector<1x128xf32>
    %380 = vector.extract_strided_slice %378 {offsets = [6, 0], sizes = [1, 128], strides = [1, 1]} : vector<8x128xf32> to vector<1x128xf32>
    %381 = vector.extract_strided_slice %378 {offsets = [5, 0], sizes = [1, 128], strides = [1, 1]} : vector<8x128xf32> to vector<1x128xf32>
    %382 = vector.extract_strided_slice %378 {offsets = [4, 0], sizes = [1, 128], strides = [1, 1]} : vector<8x128xf32> to vector<1x128xf32>
    %383 = vector.extract_strided_slice %378 {offsets = [3, 0], sizes = [1, 128], strides = [1, 1]} : vector<8x128xf32> to vector<1x128xf32>
    %384 = vector.extract_strided_slice %378 {offsets = [2, 0], sizes = [1, 128], strides = [1, 1]} : vector<8x128xf32> to vector<1x128xf32>
    %385 = vector.extract_strided_slice %378 {offsets = [1, 0], sizes = [1, 128], strides = [1, 1]} : vector<8x128xf32> to vector<1x128xf32>
    %386 = vector.extract_strided_slice %378 {offsets = [0, 0], sizes = [1, 128], strides = [1, 1]} : vector<8x128xf32> to vector<1x128xf32>
    %387 = tpu.concatenate %379, %380, %381, %382, %383, %384, %385, %386 in 0 : vector<1x128xf32>, vector<1x128xf32>, vector<1x128xf32>, vector<1x128xf32>, vector<1x128xf32>, vector<1x128xf32>, vector<1x128xf32>, vector<1x128xf32> -> vector<8x128xf32>
    %388 = vector.shape_cast %81 : vector<1x128xi1> to vector<1x128xi1>
    %389 = vector.broadcast %388 : vector<1x128xi1> to vector<8x128xi1>
    %390 = arith.select %389, %378, %387 : vector<8x128xi1>, vector<8x128xf32>
    %cst_81 = arith.constant 0.000000e+00 : f32
    %391 = vector.broadcast %cst_81 : f32 to vector<1x32xf32>
    %cst_82 = arith.constant 0.000000e+00 : f32
    %392 = vector.broadcast %cst_82 : f32 to vector<1x32xf32>
    %cst_83 = arith.constant 0.000000e+00 : f32
    %393 = vector.broadcast %cst_83 : f32 to vector<8x32xf32>
    %394 = vector.extract_strided_slice %390 {offsets = [0, 0], sizes = [1, 128], strides = [1, 1]} : vector<8x128xf32> to vector<1x128xf32>
    %cst_84 = arith.constant dense<0.000000e+00> : vector<1x128xf32>
    %395 = tpu.matmul %391, %374, %cst_84 {dimension_numbers = #tpu.dot_dimension_numbers<[1], [0], [0], [1], [0, 0, 1, 1], [], []>} : vector<1x32xf32>, vector<32x128xf32>, vector<1x128xf32> -> vector<1x128xf32>
    %396 = arith.addf %394, %395 : vector<1x128xf32>
    %397 = arith.negf %396 : vector<1x128xf32>
    %398 = math.exp %397 : vector<1x128xf32>
    %cst_85 = arith.constant 1.000000e+00 : f32
    %399 = vector.broadcast %cst_85 : f32 to vector<1x128xf32>
    %400 = arith.addf %399, %398 : vector<1x128xf32>
    %401 = arith.divf %399, %400 : vector<1x128xf32>
    %402 = arith.mulf %401, %52 : vector<1x128xf32>
    %403 = arith.addf %402, %55 : vector<1x128xf32>
    %404 = vector.extract_strided_slice %403 {offsets = [0, 0], sizes = [1, 32], strides = [1, 1]} : vector<1x128xf32> to vector<1x32xf32>
    %405 = vector.extract_strided_slice %403 {offsets = [0, 32], sizes = [1, 32], strides = [1, 1]} : vector<1x128xf32> to vector<1x32xf32>
    %406 = vector.extract_strided_slice %403 {offsets = [0, 64], sizes = [1, 32], strides = [1, 1]} : vector<1x128xf32> to vector<1x32xf32>
    %407 = vector.extract_strided_slice %403 {offsets = [0, 96], sizes = [1, 32], strides = [1, 1]} : vector<1x128xf32> to vector<1x32xf32>
    %408 = arith.mulf %405, %392 : vector<1x32xf32>
    %409 = arith.mulf %404, %406 : vector<1x32xf32>
    %410 = arith.addf %408, %409 : vector<1x32xf32>
    %411 = math.tanh %410 : vector<1x32xf32>
    %412 = arith.mulf %407, %411 : vector<1x32xf32>
    %c0_i32_86 = arith.constant 0 : i32
    %413 = vector.broadcast %c0_i32_86 : i32 to vector<8x32xi32>
    %414 = arith.cmpi eq, %82, %413 : vector<8x32xi32>
    %c16_i32_87 = arith.constant 16 : i32
    %415 = vector.broadcast %c16_i32_87 : i32 to vector<8x32xi32>
    %416 = arith.cmpi slt, %83, %415 : vector<8x32xi32>
    %417 = arith.andi %414, %416 : vector<8x32xi1>
    %c7_i32_88 = arith.constant 7 : i32
    %418 = vector.broadcast %c7_i32_88 : i32 to vector<8x32xi32>
    %419 = arith.cmpi eq, %82, %418 : vector<8x32xi32>
    %c16_i32_89 = arith.constant 16 : i32
    %420 = vector.broadcast %c16_i32_89 : i32 to vector<8x32xi32>
    %421 = arith.cmpi sge, %83, %420 : vector<8x32xi32>
    %422 = arith.andi %419, %421 : vector<8x32xi1>
    %423 = arith.ori %417, %422 : vector<8x32xi1>
    %424 = vector.shape_cast %412 : vector<1x32xf32> to vector<1x32xf32>
    %425 = vector.broadcast %424 : vector<1x32xf32> to vector<8x32xf32>
    %426 = arith.select %423, %425, %393 : vector<8x32xi1>, vector<8x32xf32>
    %427 = vector.extract_strided_slice %390 {offsets = [1, 0], sizes = [1, 128], strides = [1, 1]} : vector<8x128xf32> to vector<1x128xf32>
    %cst_90 = arith.constant dense<0.000000e+00> : vector<1x128xf32>
    %428 = tpu.matmul %412, %374, %cst_90 {dimension_numbers = #tpu.dot_dimension_numbers<[1], [0], [0], [1], [0, 0, 1, 1], [], []>} : vector<1x32xf32>, vector<32x128xf32>, vector<1x128xf32> -> vector<1x128xf32>
    %429 = arith.addf %427, %428 : vector<1x128xf32>
    %430 = arith.negf %429 : vector<1x128xf32>
    %431 = math.exp %430 : vector<1x128xf32>
    %cst_91 = arith.constant 1.000000e+00 : f32
    %432 = vector.broadcast %cst_91 : f32 to vector<1x128xf32>
    %433 = arith.addf %432, %431 : vector<1x128xf32>
    %434 = arith.divf %432, %433 : vector<1x128xf32>
    %435 = arith.mulf %434, %52 : vector<1x128xf32>
    %436 = arith.addf %435, %55 : vector<1x128xf32>
    %437 = vector.extract_strided_slice %436 {offsets = [0, 0], sizes = [1, 32], strides = [1, 1]} : vector<1x128xf32> to vector<1x32xf32>
    %438 = vector.extract_strided_slice %436 {offsets = [0, 32], sizes = [1, 32], strides = [1, 1]} : vector<1x128xf32> to vector<1x32xf32>
    %439 = vector.extract_strided_slice %436 {offsets = [0, 64], sizes = [1, 32], strides = [1, 1]} : vector<1x128xf32> to vector<1x32xf32>
    %440 = vector.extract_strided_slice %436 {offsets = [0, 96], sizes = [1, 32], strides = [1, 1]} : vector<1x128xf32> to vector<1x32xf32>
    %441 = arith.mulf %438, %410 : vector<1x32xf32>
    %442 = arith.mulf %437, %439 : vector<1x32xf32>
    %443 = arith.addf %441, %442 : vector<1x32xf32>
    %444 = math.tanh %443 : vector<1x32xf32>
    %445 = arith.mulf %440, %444 : vector<1x32xf32>
    %c1_i32_92 = arith.constant 1 : i32
    %446 = vector.broadcast %c1_i32_92 : i32 to vector<8x32xi32>
    %447 = arith.cmpi eq, %82, %446 : vector<8x32xi32>
    %c16_i32_93 = arith.constant 16 : i32
    %448 = vector.broadcast %c16_i32_93 : i32 to vector<8x32xi32>
    %449 = arith.cmpi slt, %83, %448 : vector<8x32xi32>
    %450 = arith.andi %447, %449 : vector<8x32xi1>
    %c6_i32_94 = arith.constant 6 : i32
    %451 = vector.broadcast %c6_i32_94 : i32 to vector<8x32xi32>
    %452 = arith.cmpi eq, %82, %451 : vector<8x32xi32>
    %c16_i32_95 = arith.constant 16 : i32
    %453 = vector.broadcast %c16_i32_95 : i32 to vector<8x32xi32>
    %454 = arith.cmpi sge, %83, %453 : vector<8x32xi32>
    %455 = arith.andi %452, %454 : vector<8x32xi1>
    %456 = arith.ori %450, %455 : vector<8x32xi1>
    %457 = vector.shape_cast %445 : vector<1x32xf32> to vector<1x32xf32>
    %458 = vector.broadcast %457 : vector<1x32xf32> to vector<8x32xf32>
    %459 = arith.select %456, %458, %426 : vector<8x32xi1>, vector<8x32xf32>
    %460 = vector.extract_strided_slice %390 {offsets = [2, 0], sizes = [1, 128], strides = [1, 1]} : vector<8x128xf32> to vector<1x128xf32>
    %cst_96 = arith.constant dense<0.000000e+00> : vector<1x128xf32>
    %461 = tpu.matmul %445, %374, %cst_96 {dimension_numbers = #tpu.dot_dimension_numbers<[1], [0], [0], [1], [0, 0, 1, 1], [], []>} : vector<1x32xf32>, vector<32x128xf32>, vector<1x128xf32> -> vector<1x128xf32>
    %462 = arith.addf %460, %461 : vector<1x128xf32>
    %463 = arith.negf %462 : vector<1x128xf32>
    %464 = math.exp %463 : vector<1x128xf32>
    %cst_97 = arith.constant 1.000000e+00 : f32
    %465 = vector.broadcast %cst_97 : f32 to vector<1x128xf32>
    %466 = arith.addf %465, %464 : vector<1x128xf32>
    %467 = arith.divf %465, %466 : vector<1x128xf32>
    %468 = arith.mulf %467, %52 : vector<1x128xf32>
    %469 = arith.addf %468, %55 : vector<1x128xf32>
    %470 = vector.extract_strided_slice %469 {offsets = [0, 0], sizes = [1, 32], strides = [1, 1]} : vector<1x128xf32> to vector<1x32xf32>
    %471 = vector.extract_strided_slice %469 {offsets = [0, 32], sizes = [1, 32], strides = [1, 1]} : vector<1x128xf32> to vector<1x32xf32>
    %472 = vector.extract_strided_slice %469 {offsets = [0, 64], sizes = [1, 32], strides = [1, 1]} : vector<1x128xf32> to vector<1x32xf32>
    %473 = vector.extract_strided_slice %469 {offsets = [0, 96], sizes = [1, 32], strides = [1, 1]} : vector<1x128xf32> to vector<1x32xf32>
    %474 = arith.mulf %471, %443 : vector<1x32xf32>
    %475 = arith.mulf %470, %472 : vector<1x32xf32>
    %476 = arith.addf %474, %475 : vector<1x32xf32>
    %477 = math.tanh %476 : vector<1x32xf32>
    %478 = arith.mulf %473, %477 : vector<1x32xf32>
    %c2_i32_98 = arith.constant 2 : i32
    %479 = vector.broadcast %c2_i32_98 : i32 to vector<8x32xi32>
    %480 = arith.cmpi eq, %82, %479 : vector<8x32xi32>
    %c16_i32_99 = arith.constant 16 : i32
    %481 = vector.broadcast %c16_i32_99 : i32 to vector<8x32xi32>
    %482 = arith.cmpi slt, %83, %481 : vector<8x32xi32>
    %483 = arith.andi %480, %482 : vector<8x32xi1>
    %c5_i32_100 = arith.constant 5 : i32
    %484 = vector.broadcast %c5_i32_100 : i32 to vector<8x32xi32>
    %485 = arith.cmpi eq, %82, %484 : vector<8x32xi32>
    %c16_i32_101 = arith.constant 16 : i32
    %486 = vector.broadcast %c16_i32_101 : i32 to vector<8x32xi32>
    %487 = arith.cmpi sge, %83, %486 : vector<8x32xi32>
    %488 = arith.andi %485, %487 : vector<8x32xi1>
    %489 = arith.ori %483, %488 : vector<8x32xi1>
    %490 = vector.shape_cast %478 : vector<1x32xf32> to vector<1x32xf32>
    %491 = vector.broadcast %490 : vector<1x32xf32> to vector<8x32xf32>
    %492 = arith.select %489, %491, %459 : vector<8x32xi1>, vector<8x32xf32>
    %493 = vector.extract_strided_slice %390 {offsets = [3, 0], sizes = [1, 128], strides = [1, 1]} : vector<8x128xf32> to vector<1x128xf32>
    %cst_102 = arith.constant dense<0.000000e+00> : vector<1x128xf32>
    %494 = tpu.matmul %478, %374, %cst_102 {dimension_numbers = #tpu.dot_dimension_numbers<[1], [0], [0], [1], [0, 0, 1, 1], [], []>} : vector<1x32xf32>, vector<32x128xf32>, vector<1x128xf32> -> vector<1x128xf32>
    %495 = arith.addf %493, %494 : vector<1x128xf32>
    %496 = arith.negf %495 : vector<1x128xf32>
    %497 = math.exp %496 : vector<1x128xf32>
    %cst_103 = arith.constant 1.000000e+00 : f32
    %498 = vector.broadcast %cst_103 : f32 to vector<1x128xf32>
    %499 = arith.addf %498, %497 : vector<1x128xf32>
    %500 = arith.divf %498, %499 : vector<1x128xf32>
    %501 = arith.mulf %500, %52 : vector<1x128xf32>
    %502 = arith.addf %501, %55 : vector<1x128xf32>
    %503 = vector.extract_strided_slice %502 {offsets = [0, 0], sizes = [1, 32], strides = [1, 1]} : vector<1x128xf32> to vector<1x32xf32>
    %504 = vector.extract_strided_slice %502 {offsets = [0, 32], sizes = [1, 32], strides = [1, 1]} : vector<1x128xf32> to vector<1x32xf32>
    %505 = vector.extract_strided_slice %502 {offsets = [0, 64], sizes = [1, 32], strides = [1, 1]} : vector<1x128xf32> to vector<1x32xf32>
    %506 = vector.extract_strided_slice %502 {offsets = [0, 96], sizes = [1, 32], strides = [1, 1]} : vector<1x128xf32> to vector<1x32xf32>
    %507 = arith.mulf %504, %476 : vector<1x32xf32>
    %508 = arith.mulf %503, %505 : vector<1x32xf32>
    %509 = arith.addf %507, %508 : vector<1x32xf32>
    %510 = math.tanh %509 : vector<1x32xf32>
    %511 = arith.mulf %506, %510 : vector<1x32xf32>
    %c3_i32_104 = arith.constant 3 : i32
    %512 = vector.broadcast %c3_i32_104 : i32 to vector<8x32xi32>
    %513 = arith.cmpi eq, %82, %512 : vector<8x32xi32>
    %c16_i32_105 = arith.constant 16 : i32
    %514 = vector.broadcast %c16_i32_105 : i32 to vector<8x32xi32>
    %515 = arith.cmpi slt, %83, %514 : vector<8x32xi32>
    %516 = arith.andi %513, %515 : vector<8x32xi1>
    %c4_i32_106 = arith.constant 4 : i32
    %517 = vector.broadcast %c4_i32_106 : i32 to vector<8x32xi32>
    %518 = arith.cmpi eq, %82, %517 : vector<8x32xi32>
    %c16_i32_107 = arith.constant 16 : i32
    %519 = vector.broadcast %c16_i32_107 : i32 to vector<8x32xi32>
    %520 = arith.cmpi sge, %83, %519 : vector<8x32xi32>
    %521 = arith.andi %518, %520 : vector<8x32xi1>
    %522 = arith.ori %516, %521 : vector<8x32xi1>
    %523 = vector.shape_cast %511 : vector<1x32xf32> to vector<1x32xf32>
    %524 = vector.broadcast %523 : vector<1x32xf32> to vector<8x32xf32>
    %525 = arith.select %522, %524, %492 : vector<8x32xi1>, vector<8x32xf32>
    %526 = vector.extract_strided_slice %390 {offsets = [4, 0], sizes = [1, 128], strides = [1, 1]} : vector<8x128xf32> to vector<1x128xf32>
    %cst_108 = arith.constant dense<0.000000e+00> : vector<1x128xf32>
    %527 = tpu.matmul %511, %374, %cst_108 {dimension_numbers = #tpu.dot_dimension_numbers<[1], [0], [0], [1], [0, 0, 1, 1], [], []>} : vector<1x32xf32>, vector<32x128xf32>, vector<1x128xf32> -> vector<1x128xf32>
    %528 = arith.addf %526, %527 : vector<1x128xf32>
    %529 = arith.negf %528 : vector<1x128xf32>
    %530 = math.exp %529 : vector<1x128xf32>
    %cst_109 = arith.constant 1.000000e+00 : f32
    %531 = vector.broadcast %cst_109 : f32 to vector<1x128xf32>
    %532 = arith.addf %531, %530 : vector<1x128xf32>
    %533 = arith.divf %531, %532 : vector<1x128xf32>
    %534 = arith.mulf %533, %52 : vector<1x128xf32>
    %535 = arith.addf %534, %55 : vector<1x128xf32>
    %536 = vector.extract_strided_slice %535 {offsets = [0, 0], sizes = [1, 32], strides = [1, 1]} : vector<1x128xf32> to vector<1x32xf32>
    %537 = vector.extract_strided_slice %535 {offsets = [0, 32], sizes = [1, 32], strides = [1, 1]} : vector<1x128xf32> to vector<1x32xf32>
    %538 = vector.extract_strided_slice %535 {offsets = [0, 64], sizes = [1, 32], strides = [1, 1]} : vector<1x128xf32> to vector<1x32xf32>
    %539 = vector.extract_strided_slice %535 {offsets = [0, 96], sizes = [1, 32], strides = [1, 1]} : vector<1x128xf32> to vector<1x32xf32>
    %540 = arith.mulf %537, %509 : vector<1x32xf32>
    %541 = arith.mulf %536, %538 : vector<1x32xf32>
    %542 = arith.addf %540, %541 : vector<1x32xf32>
    %543 = math.tanh %542 : vector<1x32xf32>
    %544 = arith.mulf %539, %543 : vector<1x32xf32>
    %c4_i32_110 = arith.constant 4 : i32
    %545 = vector.broadcast %c4_i32_110 : i32 to vector<8x32xi32>
    %546 = arith.cmpi eq, %82, %545 : vector<8x32xi32>
    %c16_i32_111 = arith.constant 16 : i32
    %547 = vector.broadcast %c16_i32_111 : i32 to vector<8x32xi32>
    %548 = arith.cmpi slt, %83, %547 : vector<8x32xi32>
    %549 = arith.andi %546, %548 : vector<8x32xi1>
    %c3_i32_112 = arith.constant 3 : i32
    %550 = vector.broadcast %c3_i32_112 : i32 to vector<8x32xi32>
    %551 = arith.cmpi eq, %82, %550 : vector<8x32xi32>
    %c16_i32_113 = arith.constant 16 : i32
    %552 = vector.broadcast %c16_i32_113 : i32 to vector<8x32xi32>
    %553 = arith.cmpi sge, %83, %552 : vector<8x32xi32>
    %554 = arith.andi %551, %553 : vector<8x32xi1>
    %555 = arith.ori %549, %554 : vector<8x32xi1>
    %556 = vector.shape_cast %544 : vector<1x32xf32> to vector<1x32xf32>
    %557 = vector.broadcast %556 : vector<1x32xf32> to vector<8x32xf32>
    %558 = arith.select %555, %557, %525 : vector<8x32xi1>, vector<8x32xf32>
    %559 = vector.extract_strided_slice %390 {offsets = [5, 0], sizes = [1, 128], strides = [1, 1]} : vector<8x128xf32> to vector<1x128xf32>
    %cst_114 = arith.constant dense<0.000000e+00> : vector<1x128xf32>
    %560 = tpu.matmul %544, %374, %cst_114 {dimension_numbers = #tpu.dot_dimension_numbers<[1], [0], [0], [1], [0, 0, 1, 1], [], []>} : vector<1x32xf32>, vector<32x128xf32>, vector<1x128xf32> -> vector<1x128xf32>
    %561 = arith.addf %559, %560 : vector<1x128xf32>
    %562 = arith.negf %561 : vector<1x128xf32>
    %563 = math.exp %562 : vector<1x128xf32>
    %cst_115 = arith.constant 1.000000e+00 : f32
    %564 = vector.broadcast %cst_115 : f32 to vector<1x128xf32>
    %565 = arith.addf %564, %563 : vector<1x128xf32>
    %566 = arith.divf %564, %565 : vector<1x128xf32>
    %567 = arith.mulf %566, %52 : vector<1x128xf32>
    %568 = arith.addf %567, %55 : vector<1x128xf32>
    %569 = vector.extract_strided_slice %568 {offsets = [0, 0], sizes = [1, 32], strides = [1, 1]} : vector<1x128xf32> to vector<1x32xf32>
    %570 = vector.extract_strided_slice %568 {offsets = [0, 32], sizes = [1, 32], strides = [1, 1]} : vector<1x128xf32> to vector<1x32xf32>
    %571 = vector.extract_strided_slice %568 {offsets = [0, 64], sizes = [1, 32], strides = [1, 1]} : vector<1x128xf32> to vector<1x32xf32>
    %572 = vector.extract_strided_slice %568 {offsets = [0, 96], sizes = [1, 32], strides = [1, 1]} : vector<1x128xf32> to vector<1x32xf32>
    %573 = arith.mulf %570, %542 : vector<1x32xf32>
    %574 = arith.mulf %569, %571 : vector<1x32xf32>
    %575 = arith.addf %573, %574 : vector<1x32xf32>
    %576 = math.tanh %575 : vector<1x32xf32>
    %577 = arith.mulf %572, %576 : vector<1x32xf32>
    %c5_i32_116 = arith.constant 5 : i32
    %578 = vector.broadcast %c5_i32_116 : i32 to vector<8x32xi32>
    %579 = arith.cmpi eq, %82, %578 : vector<8x32xi32>
    %c16_i32_117 = arith.constant 16 : i32
    %580 = vector.broadcast %c16_i32_117 : i32 to vector<8x32xi32>
    %581 = arith.cmpi slt, %83, %580 : vector<8x32xi32>
    %582 = arith.andi %579, %581 : vector<8x32xi1>
    %c2_i32_118 = arith.constant 2 : i32
    %583 = vector.broadcast %c2_i32_118 : i32 to vector<8x32xi32>
    %584 = arith.cmpi eq, %82, %583 : vector<8x32xi32>
    %c16_i32_119 = arith.constant 16 : i32
    %585 = vector.broadcast %c16_i32_119 : i32 to vector<8x32xi32>
    %586 = arith.cmpi sge, %83, %585 : vector<8x32xi32>
    %587 = arith.andi %584, %586 : vector<8x32xi1>
    %588 = arith.ori %582, %587 : vector<8x32xi1>
    %589 = vector.shape_cast %577 : vector<1x32xf32> to vector<1x32xf32>
    %590 = vector.broadcast %589 : vector<1x32xf32> to vector<8x32xf32>
    %591 = arith.select %588, %590, %558 : vector<8x32xi1>, vector<8x32xf32>
    %592 = vector.extract_strided_slice %390 {offsets = [6, 0], sizes = [1, 128], strides = [1, 1]} : vector<8x128xf32> to vector<1x128xf32>
    %cst_120 = arith.constant dense<0.000000e+00> : vector<1x128xf32>
    %593 = tpu.matmul %577, %374, %cst_120 {dimension_numbers = #tpu.dot_dimension_numbers<[1], [0], [0], [1], [0, 0, 1, 1], [], []>} : vector<1x32xf32>, vector<32x128xf32>, vector<1x128xf32> -> vector<1x128xf32>
    %594 = arith.addf %592, %593 : vector<1x128xf32>
    %595 = arith.negf %594 : vector<1x128xf32>
    %596 = math.exp %595 : vector<1x128xf32>
    %cst_121 = arith.constant 1.000000e+00 : f32
    %597 = vector.broadcast %cst_121 : f32 to vector<1x128xf32>
    %598 = arith.addf %597, %596 : vector<1x128xf32>
    %599 = arith.divf %597, %598 : vector<1x128xf32>
    %600 = arith.mulf %599, %52 : vector<1x128xf32>
    %601 = arith.addf %600, %55 : vector<1x128xf32>
    %602 = vector.extract_strided_slice %601 {offsets = [0, 0], sizes = [1, 32], strides = [1, 1]} : vector<1x128xf32> to vector<1x32xf32>
    %603 = vector.extract_strided_slice %601 {offsets = [0, 32], sizes = [1, 32], strides = [1, 1]} : vector<1x128xf32> to vector<1x32xf32>
    %604 = vector.extract_strided_slice %601 {offsets = [0, 64], sizes = [1, 32], strides = [1, 1]} : vector<1x128xf32> to vector<1x32xf32>
    %605 = vector.extract_strided_slice %601 {offsets = [0, 96], sizes = [1, 32], strides = [1, 1]} : vector<1x128xf32> to vector<1x32xf32>
    %606 = arith.mulf %603, %575 : vector<1x32xf32>
    %607 = arith.mulf %602, %604 : vector<1x32xf32>
    %608 = arith.addf %606, %607 : vector<1x32xf32>
    %609 = math.tanh %608 : vector<1x32xf32>
    %610 = arith.mulf %605, %609 : vector<1x32xf32>
    %c6_i32_122 = arith.constant 6 : i32
    %611 = vector.broadcast %c6_i32_122 : i32 to vector<8x32xi32>
    %612 = arith.cmpi eq, %82, %611 : vector<8x32xi32>
    %c16_i32_123 = arith.constant 16 : i32
    %613 = vector.broadcast %c16_i32_123 : i32 to vector<8x32xi32>
    %614 = arith.cmpi slt, %83, %613 : vector<8x32xi32>
    %615 = arith.andi %612, %614 : vector<8x32xi1>
    %c1_i32_124 = arith.constant 1 : i32
    %616 = vector.broadcast %c1_i32_124 : i32 to vector<8x32xi32>
    %617 = arith.cmpi eq, %82, %616 : vector<8x32xi32>
    %c16_i32_125 = arith.constant 16 : i32
    %618 = vector.broadcast %c16_i32_125 : i32 to vector<8x32xi32>
    %619 = arith.cmpi sge, %83, %618 : vector<8x32xi32>
    %620 = arith.andi %617, %619 : vector<8x32xi1>
    %621 = arith.ori %615, %620 : vector<8x32xi1>
    %622 = vector.shape_cast %610 : vector<1x32xf32> to vector<1x32xf32>
    %623 = vector.broadcast %622 : vector<1x32xf32> to vector<8x32xf32>
    %624 = arith.select %621, %623, %591 : vector<8x32xi1>, vector<8x32xf32>
    %625 = vector.extract_strided_slice %390 {offsets = [7, 0], sizes = [1, 128], strides = [1, 1]} : vector<8x128xf32> to vector<1x128xf32>
    %cst_126 = arith.constant dense<0.000000e+00> : vector<1x128xf32>
    %626 = tpu.matmul %610, %374, %cst_126 {dimension_numbers = #tpu.dot_dimension_numbers<[1], [0], [0], [1], [0, 0, 1, 1], [], []>} : vector<1x32xf32>, vector<32x128xf32>, vector<1x128xf32> -> vector<1x128xf32>
    %627 = arith.addf %625, %626 : vector<1x128xf32>
    %628 = arith.negf %627 : vector<1x128xf32>
    %629 = math.exp %628 : vector<1x128xf32>
    %cst_127 = arith.constant 1.000000e+00 : f32
    %630 = vector.broadcast %cst_127 : f32 to vector<1x128xf32>
    %631 = arith.addf %630, %629 : vector<1x128xf32>
    %632 = arith.divf %630, %631 : vector<1x128xf32>
    %633 = arith.mulf %632, %52 : vector<1x128xf32>
    %634 = arith.addf %633, %55 : vector<1x128xf32>
    %635 = vector.extract_strided_slice %634 {offsets = [0, 0], sizes = [1, 32], strides = [1, 1]} : vector<1x128xf32> to vector<1x32xf32>
    %636 = vector.extract_strided_slice %634 {offsets = [0, 32], sizes = [1, 32], strides = [1, 1]} : vector<1x128xf32> to vector<1x32xf32>
    %637 = vector.extract_strided_slice %634 {offsets = [0, 64], sizes = [1, 32], strides = [1, 1]} : vector<1x128xf32> to vector<1x32xf32>
    %638 = vector.extract_strided_slice %634 {offsets = [0, 96], sizes = [1, 32], strides = [1, 1]} : vector<1x128xf32> to vector<1x32xf32>
    %639 = arith.mulf %636, %608 : vector<1x32xf32>
    %640 = arith.mulf %635, %637 : vector<1x32xf32>
    %641 = arith.addf %639, %640 : vector<1x32xf32>
    %642 = math.tanh %641 : vector<1x32xf32>
    %643 = arith.mulf %638, %642 : vector<1x32xf32>
    %c7_i32_128 = arith.constant 7 : i32
    %644 = vector.broadcast %c7_i32_128 : i32 to vector<8x32xi32>
    %645 = arith.cmpi eq, %82, %644 : vector<8x32xi32>
    %c16_i32_129 = arith.constant 16 : i32
    %646 = vector.broadcast %c16_i32_129 : i32 to vector<8x32xi32>
    %647 = arith.cmpi slt, %83, %646 : vector<8x32xi32>
    %648 = arith.andi %645, %647 : vector<8x32xi1>
    %c0_i32_130 = arith.constant 0 : i32
    %649 = vector.broadcast %c0_i32_130 : i32 to vector<8x32xi32>
    %650 = arith.cmpi eq, %82, %649 : vector<8x32xi32>
    %c16_i32_131 = arith.constant 16 : i32
    %651 = vector.broadcast %c16_i32_131 : i32 to vector<8x32xi32>
    %652 = arith.cmpi sge, %83, %651 : vector<8x32xi32>
    %653 = arith.andi %650, %652 : vector<8x32xi1>
    %654 = arith.ori %648, %653 : vector<8x32xi1>
    %655 = vector.shape_cast %643 : vector<1x32xf32> to vector<1x32xf32>
    %656 = vector.broadcast %655 : vector<1x32xf32> to vector<8x32xf32>
    %657 = arith.select %654, %656, %624 : vector<8x32xi1>, vector<8x32xf32>
    %c2_132 = arith.constant 2 : index
    %c0_133 = arith.constant 0 : index
    %658 = vector.load %arg3[%c2_132, %c0_133] : memref<5x128xf32, #tpu.memory_space<vmem>>, vector<1x128xf32>
    %659 = vector.extract_strided_slice %658 {offsets = [0, 0], sizes = [1, 3], strides = [1, 1]} : vector<1x128xf32> to vector<1x3xf32>
    %c0_134 = arith.constant 0 : index
    %c0_135 = arith.constant 0 : index
    %660 = vector.load %arg5[%c0_134, %c0_135] : memref<32x3xf32, #tpu.memory_space<vmem>>, vector<32x3xf32>
    %cst_136 = arith.constant dense<0.000000e+00> : vector<8x3xf32>
    %661 = tpu.matmul %657, %660, %cst_136 {dimension_numbers = #tpu.dot_dimension_numbers<[1], [0], [0], [1], [0, 0, 1, 1], [], []>, precision = #tpu.contract_precision<fp32>} : vector<8x32xf32>, vector<32x3xf32>, vector<8x3xf32> -> vector<8x3xf32>
    %662 = vector.broadcast %659 : vector<1x3xf32> to vector<8x3xf32>
    %663 = arith.addf %661, %662 : vector<8x3xf32>
    %c0_137 = arith.constant 0 : index
    %c0_138 = arith.constant 0 : index
    %664 = vector.load %arg7[%c0_137, %c0_138] : memref<8x3xf32, #tpu.memory_space<vmem>>, vector<8x3xf32>
    tpu.vector_store %arg7[%c0_137, %c0_138], %663 {strides = array<i32>} : memref<8x3xf32, #tpu.memory_space<vmem>>, vector<8x3xf32>,
    %665 = arith.negf %663 : vector<8x3xf32>
    %666 = math.exp %665 : vector<8x3xf32>
    %cst_139 = arith.constant 1.000000e+00 : f32
    %667 = vector.broadcast %cst_139 : f32 to vector<8x3xf32>
    %668 = arith.addf %667, %666 : vector<8x3xf32>
    %669 = arith.divf %667, %668 : vector<8x3xf32>
    %c0_140 = arith.constant 0 : index
    %c0_141 = arith.constant 0 : index
    %670 = vector.load %arg6[%c0_140, %c0_141] : memref<8x3xf32, #tpu.memory_space<vmem>>, vector<8x3xf32>
    tpu.vector_store %arg6[%c0_140, %c0_141], %669 {strides = array<i32>} : memref<8x3xf32, #tpu.memory_space<vmem>>, vector<8x3xf32>,
    return
  }
}

</mosaic_0001>

<bundles_post_ra>
// kernel: tpu_custom_call.1
= control target key start
LH: loop header
LB: loop body
LE: loop exit
PB: predicated region body
PF: predicated region fallthrough
CT: control target
= control target key end

     0   :  { %13 = vsyncpa [#allocation4], 0  ;;  %s5629_s0 = inlined_call_operand.vmem [shape: f32[4,8,32], index: 0, kind: input, shape index: {}]   ;;  %s5630_s1 = inlined_call_operand.vmem [shape: f32[8,1], index: 1, kind: input, shape index: {}]   ;;  %s5631_s2 = inlined_call_operand.vmem [shape: f32[5], index: 2, kind: input, shape index: {}]   ;;  %s5632_s3 = inlined_call_operand.vmem [shape: f32[5,128], index: 3, kind: input, shape index: {}]   ;;  %s5633_s4 = inlined_call_operand.hbm [shape: f32[2,64,128], index: 4, kind: input, shape index: {}]   ;;  %s5634_s5 = inlined_call_operand.vmem [shape: f32[32,3], index: 5, kind: input, shape index: {}]   ;;  %s5635_s6 = inlined_call_operand.vmem [shape: f32[8,3], index: 6, kind: output, shape index: {0}]   ;;  %s5636_s7 = inlined_call_operand.vmem [shape: f32[8,3], index: 7, kind: output, shape index: {1}]  }
   0x1   :  { %s25_s26 = sshll.u32 %s5631_s2, 4  ;;  %s26_s26 = int_to_ptr.vmem [resolvable:$true] %s25_s26 }
   0x2   :  { %14 = vsyncpa [#allocation3], 0  ;;  %s4626_s27 = scalar_lea.vmem %s26_s26, 16  ;;  %p4631_p1 = scmp.lt.s32.totalorder %s26_s26, %s26_s26 }
   0x3   :  { %p4627_p0 = scmp.ne.s32.totalorder %s26_s26, %s4626_s27  ;;  %p4632_p2 = scmp.lt.s32.totalorder %s4626_s27, %s4626_s27 }
   0x5   :  { %p4633_p3 = por %p4632_p2, %p4631_p1 }
   0x7   :  { %p4634_p4 = pnand %p4633_p3, %p4627_p0 }
   0x9   :  { %4637 = shalt.err (!%p4634_p4)
}
   0xa   :  { %s4664_s28 = smov [#allocation2]   ;;  %s4665_s29 = smov [#allocation5]  }
   0xb   :  { %28 = dma.vmem_to_smem %s26_s26, 16, %s4664_s28, [#allocation4]  }
   0xc   :  { %s36_s30 = sshll.u32 %s4665_s29, 4  ;;  %s4638_s10 = scalar_lea.hbm %s5633_s4, 2048  ;;  %s37_s30 = int_to_ptr.vmem [resolvable:$true] %s36_s30 }
   0xd   :  { %p4639_p5 = scmp.ne.s32.totalorder %s5633_s4, %s4638_s10  ;;  %p4642_p6 = scmp.lt.u32.totalorder %s4638_s10, %s5633_s4 }
   0xf   :  { %p4644_p7 = pnand %p4642_p6, %p4639_p5 }
  0x11   :  { %4647 = shalt.err (!%p4644_p7)
}
  0x12   :  { %s4648_s14 = scalar_lea.vmem %s37_s30, 2048  ;;  %p4653_p9 = scmp.lt.s32.totalorder %s37_s30, %s37_s30 }
  0x13   :  { %p4649_p8 = scmp.ne.s32.totalorder %s37_s30, %s4648_s14  ;;  %p4654_p10 = scmp.lt.s32.totalorder %s4648_s14, %s4648_s14 }
  0x15   :  { %p4655_p11 = por %p4654_p10, %p4653_p9 }
  0x17   :  { %p4656_p12 = pnand %p4655_p11, %p4649_p8 }
  0x19   :  { %4659 = shalt.err (!%p4656_p12)
}
  0x1a   :  { %s4666_s15 = smov 128   ;;  %s4667_s16 = smov 8  }
  0x1b   :  { %42 = dma.hbm_to_vmem [thread:$0]  %s5633_s4, 2048, %s37_s30, [#allocation3], %s4666_s15, %s4666_s15, %s4667_s16  }
  0x1c   :  { %4660 = dma.done.wait [#allocation4], 16  }
  0x1d   :  { %4661 = vsyncadd [#allocation4], 4294967280 }
  0x1e   :  { %4662 = dma.done.wait [#allocation3], 2048  }
  0x1f   :  { %4663 = vsyncadd [#allocation3], 4294965248 }
  0x20   :  { %51 = sfence }
  0x21   :  { %v77_v0 = vld [vmem:[%s5630_s1] sm:$0xff]  ;;  %v4668_v1 = vmov 0   ;;  %v229_v3 = vld [vmem:[#allocation5 + $0x8] sm:$0xff]  ;;  %v230_v4 = vld [vmem:[#allocation5 + $0x10] sm:$0xff]  ;;  %v4669_v5 = vmov 0.0|0.0   ;;  %vm5645_vm0 = vmmov 0  }
  0x22   :  { %4521 = vset.pattern.permute.xlu0 %v4668_v1  ;;  %v228_v2 = vld [vmem:[#allocation5] sm:$0xff]  ;;  %4282 = vmatprep.subr.bf16.mxu0 %v4669_v5  ;;  %v249_v7 = vand.u32 4294901760, %v229_v3  ;;  %v231_v8 = vld [vmem:[#allocation5 + $0x18] sm:$0xff]  ;;  %v252_v9 = vand.u32 4294901760, %v230_v4  ;;  %v4671_v11 = vmov 0.0   ;;  %s53_s23 = sld [smem:[#allocation2]] }
  0x23   :  { %82 = vperm.xlu0 %4521, %v77_v0   ;;  %v246_v6 = vand.u32 4294901760, %v228_v2  ;;  %4264 = vmatprep.subr.bf16.mxu1 %v4669_v5  ;;  %v255_v10 = vand.u32 4294901760, %v231_v8  ;;  %v3680_v36 = vld [vmem:[%s5632_s3] ss:$0 sm:$0xff]  ;;  %v3681_v37 = vld [vmem:[%s5632_s3 + $0x1] ss:$0 sm:$0xff] }
  0x24   :  { %3931 = vmatprep.mubr.msk.f32.mxu0 %vm5645_vm0, %v4671_v11  ;;  %3898 = vmatprep.mubr.msk.f32.mxu1 %vm5645_vm0, %v4671_v11  ;;  %v4750_v14 = vsub.f32 %v229_v3, %v249_v7  ;;  %v4752_v15 = vsub.f32 %v230_v4, %v252_v9  ;;  %v4672_v51 = vmov 683565275   ;;  %v4673_v53 = vmov 2475754826   ;;  %s3674_s24 = sld [smem:[#allocation2 + $0x1]]  ;;  %s3676_s25 = sld [smem:[#allocation2 + $0x2]] }
  0x25   :  { %v4746_v12 = vpack.c.bf16 %v249_v7, %v246_v6  ;;  %v4748_v13 = vsub.f32 %v228_v2, %v246_v6  ;;  %v4754_v16 = vsub.f32 %v231_v8, %v255_v10  ;;  %v4758_v17 = vpack.c.bf16 %v255_v10, %v252_v9  ;;  %s3678_s30 = sld [smem:[#allocation2 + $0x3]]  ;;  %s3679_s2 = sld [smem:[#allocation2 + $0x4]] }
  0x26   :  { %v334_v19 = vand.u32 4294901760, %v4750_v14  ;;  %v341_v25 = vand.u32 4294901760, %v4752_v15  ;;  %v4674_v56 = vmov 2131351028   ;;  %v4675_v59 = vmov 2102212464  }
  0x27   :  { %4284 = vmatpush3.bf16.msra.mxu0 %v4746_v12  ;;  %4266 = vmatpush3.bf16.msra.mxu1 %v4746_v12  ;;  %v327_v18 = vand.u32 4294901760, %v4748_v13  ;;  %v348_v26 = vand.u32 4294901760, %v4754_v16  ;;  %v4277_v34 = vpack.c.bf16 %v4750_v14, %v4748_v13  ;;  %v4280_v35 = vpack.c.bf16 %v4754_v16, %v4752_v15  ;;  %s4679_s13 = smov 64   ;;  %s4680_s14 = smov 32  }
  0x28   :  { %4285 = vmatprep.subr.bf16.mxu0 %v4669_v5  ;;  %4267 = vmatprep.subr.bf16.mxu1 %v4669_v5  ;;  %v335_v22 = vsub.f32 %v4750_v14, %v334_v19  ;;  %v342_v29 = vsub.f32 %v4752_v15, %v341_v25  ;;  %v4676_v62 = vmov 920167782   ;;  %v4677_v2 = vmov 1326507024  }
  0x29   :  { %v4768_v20 = vpack.c.bf16 %v334_v19, %v327_v18  ;;  %v328_v21 = vsub.f32 %v4748_v13, %v327_v18  ;;  %v4776_v28 = vpack.c.bf16 %v348_v26, %v341_v25  ;;  %v349_v30 = vsub.f32 %v4754_v16, %v348_v26  ;;  %v3686_v16 = vld [vmem:[%s5632_s3 + $0x3] ss:$0 sm:$0xff] }
  0x2a   :  { %v336_v24 = vand.u32 4294901760, %v335_v22  ;;  %v343_v31 = vand.u32 4294901760, %v342_v29  ;;  %vm5647_vm15 = vcmask 261120  }
  0x2b   :  { %4287 = vmatpush3.bf16.msra.mxu0 %v4758_v17  ;;  %4269 = vmatpush3.bf16.msra.mxu1 %v4758_v17  ;;  %v329_v23 = vand.u32 4294901760, %v328_v21  ;;  %v350_v32 = vand.u32 4294901760, %v349_v30 }
  0x2c   :  { %4288 = vmatprep.subr.bf16.mxu0 %v4669_v5  ;;  %4270 = vmatprep.subr.bf16.mxu1 %v4669_v5 }
  0x2d   :  { %v4774_v27 = vpack.c.bf16 %v336_v24, %v329_v23  ;;  %v4780_v33 = vpack.c.bf16 %v350_v32, %v343_v31 }
  0xa2   :  { %v83_v38 = vpop.permute.xlu0 %82 }
  0xa3   :  { %v89_v39 = vmul.f32 %v3680_v36, %v83_v38 }
  0xa5   :  { %v4792_v40 = vadd.f32 %v3681_v37, %v89_v39 }
  0xa7   :  { %v101_v41 = vand.u32 2139095040, %v4792_v40  ;;  %v98_v45 = vand.u32 2147483647, %v4792_v40  ;;  %vm100_vm8 = vcmp.lt.s32.totalorder %v4792_v40, 0  ;;  %vm190_vm14 = vweird.f32 %v4792_v40 }
  0xa9   :  { %v102_v42 = vshrl.u32 %v101_v41, 23  ;;  %v105_v48 = vand.u32 8388607, %v98_v45  ;;  %vm99_vm9 = vcmp.le.f32.partialorder %v98_v45, 0.7853982  ;;  %v3677_v45 = vld [vmem:[%s5629_s0 + $0x18] sm:$0xff] }
  0xab   :  { %v3682_v43 = vadd.s32 4294967169, %v102_v42  ;;  %v106_v4 = vor.u32 8388608, %v105_v48 }
  0xad   :  { %v108_v44 = vadd.s32 1, %v3682_v43  ;;  %v146_v29 = vshll.u32 %v106_v4, 8 }
  0xaf   :  { %vm109_vm1 = vcmp.gt.s32.totalorder %v108_v44, 0 }
  0xb0   :  { %v110_v46 = vsel %vm109_vm1, %v108_v44, 0 }
  0xb1   :  { %v112_v47 = vand.u32 31, %v110_v46  ;;  %v111_v50 = vshrl.u32 %v110_v46, 5 }
  0xb3   :  { %v113_v49 = vsub.s32 32, %v112_v47  ;;  %v115_v52 = vshll.u32 %v4672_v51, %v112_v47  ;;  %v118_v54 = vshll.u32 %v4673_v53, %v112_v47  ;;  %v121_v58 = vshll.u32 %v4674_v56, %v112_v47 }
  0xb4   :  { %v124_v61 = vshll.u32 %v4675_v59, %v112_v47  ;;  %v127_v0 = vshll.u32 %v4676_v62, %v112_v47  ;;  %vm130_vm2 = vcmp.lt.s32.totalorder %v111_v50, 1  ;;  %vm133_vm3 = vcmp.lt.s32.totalorder %v111_v50, 4 }
  0xb5   :  { %v116_v55 = vshrl.u32 %v4673_v53, %v113_v49  ;;  %v119_v57 = vshrl.u32 %v4674_v56, %v113_v49  ;;  %v122_v60 = vshrl.u32 %v4675_v59, %v113_v49  ;;  %v125_v63 = vshrl.u32 %v4676_v62, %v113_v49 }
  0xb6   :  { %v128_v3 = vshrl.u32 %v4677_v2, %v113_v49  ;;  %v114_v22 = vshrl.u32 %v4672_v51, %v113_v49  ;;  %vm132_vm4 = vcmp.lt.s32.totalorder %v111_v50, 3  ;;  %vm131_vm5 = vcmp.lt.s32.totalorder %v111_v50, 2 }
  0xb7   :  { %v117_v6 = vor.u32 %v116_v55, %v115_v52  ;;  %v120_v7 = vor.u32 %v119_v57, %v118_v54  ;;  %v123_v8 = vor.u32 %v122_v60, %v121_v58  ;;  %v126_v9 = vor.u32 %v125_v63, %v124_v61 }
  0xb8   :  { %v129_v10 = vor.u32 %v128_v3, %v127_v0 }
  0xb9   :  { %v135_v18 = vsel %vm133_vm3, %v123_v8, 2102212464  ;;  %v138_v19 = vsel %vm130_vm2, %v117_v6, %v120_v7  ;;  %v142_v21 = vsel %vm130_vm2, %v120_v7, %v123_v8  ;;  %v139_v23 = vsel %vm133_vm3, %v126_v9, 920167782 }
  0xba   :  { %v143_v24 = vsel %vm133_vm3, %v129_v10, 1326507024  ;;  %v140_v25 = vsel %vm132_vm4, %v123_v8, %v139_v23  ;;  %v134_v30 = vsel %vm130_vm2, %v114_v22, %v117_v6  ;;  %v136_v31 = vsel %vm132_vm4, %v120_v7, %v135_v18  ;;  %v3673_v18 = vld [vmem:[%s5629_s0 + $0x8] sm:$0xff] }
  0xbb   :  { %v144_v26 = vsel %vm132_vm4, %v126_v9, %v143_v24  ;;  %v141_v32 = vsel %vm131_vm5, %v138_v19, %v140_v25  ;;  %v137_v42 = vsel %vm131_vm5, %v134_v30, %v136_v31  ;;  %v52_v9 = vld [vmem:[%s5629_s0] sm:$0xff]  ;;  %v54_v10 = vstv %s53_s23 }
  0xbc   :  { %v145_v36 = vsel %vm131_vm5, %v142_v21, %v144_v26  ;;  %v4801_v39 = vmul.u32.u64.low %v146_v29, %v141_v32  ;;  %v4802_v41 = vmul.u32.u64.high %v146_v29, %v141_v32, %v4801_v39  ;;  %v153_v44 = vmul.u32 %v146_v29, %v137_v42 }
  0xbd   :  { %v4798_v37 = vmul.u32.u64.low %v146_v29, %v145_v36  ;;  %v4799_v38 = vmul.u32.u64.high %v146_v29, %v145_v36, %v4798_v37  ;;  %v59_v19 = vstv %s3674_s24  ;;  %v55_v24 = vmul.f32 %v54_v10, %v52_v9  ;;  %v3675_v29 = vld [vmem:[%s5629_s0 + $0x10] sm:$0xff] }
  0xbe   :  { %v156_v43 = vadd.s32 1, %v4802_v41  ;;  %v60_v25 = vmul.f32 %v3673_v18, %v59_v19  ;;  %v65_v30 = vstv %s3676_s25  ;;  %v71_v37 = vstv %s3678_s30 }
  0xbf   :  { %vm155_vm6 = vc.u32 %v4799_v38, %v4801_v39  ;;  %v154_v57 = vadd.s32 %v4801_v39, %v4799_v38  ;;  %v66_v36 = vmul.f32 %v3675_v29, %v65_v30  ;;  %v95_v38 = vlaneseq }
  0xc0   :  { %v157_v46 = vsel %vm155_vm6, %v156_v43, %v4802_v41  ;;  %v61_v32 = vadd.f32 %v60_v25, %v55_v24  ;;  %v72_v41 = vmul.f32 %v3677_v45, %v71_v37 }
  0xc1   :  { %v158_v47 = vadd.s32 %v157_v46, %v153_v44  ;;  %v4825_v44 = vand.u32 127, %v95_v38 }
  0xc2   :  { %v67_v39 = vadd.f32 %v66_v36, %v61_v32 }
  0xc3   :  { %v159_v48 = vadd.s32 536870912, %v158_v47  ;;  %vm97_vm12 = vcmp.lt.s32.totalorder %v4825_v44, 31  ;;  %vm215_vm1 = vcmp.ge.s32.totalorder %v4825_v44, 32  ;;  %vm216_vm2 = vcmp.lt.s32.totalorder %v4825_v44, 48 }
  0xc4   :  { %vm212_vm3 = vcmp.lt.s32.totalorder %v4825_v44, 16  ;;  %vm217_vm4 = vmand %vm215_vm1, %vm216_vm2  ;;  %vm205_vm5 = vcmp.ge.s32.totalorder %v4825_v44, 64  ;;  %vm219_vm6 = vcmp.lt.s32.totalorder %v4825_v44, 80  ;;  %vm5643_vm1 = vcmask 1041408  }
  0xc5   :  { %v160_v49 = vshrl.u32 %v159_v48, 30  ;;  %v73_v48 = vadd.f32 %v72_v41, %v67_v39  ;;  %vm5642_vm2 = vcmask 1042432  }
  0xc7   :  { %v161_v50 = vshll.u32 %v160_v49, 30  ;;  %v184_v7 = vsub.s32 4, %v160_v49 }
  0xc9   :  { %v162_v51 = vsub.s32 %v158_v47, %v161_v50  ;;  %v185_v22 = vsel %vm100_vm8, %v184_v7, %v160_v49  ;;  %v75_v50 = vstv %s3679_s2 }
  0xca   :  { %v187_v26 = vsel %vm99_vm9, 0, %v185_v22 }
  0xcb   :  { %v164_v52 = vsub.s32 0, %v162_v51  ;;  %v191_v31 = vadd.s32 3, %v187_v26 }
  0xcd   :  { %v3683_v53 = vmin.u32 %v164_v52, %v162_v51  ;;  %v192_v42 = vand.u32 3, %v191_v31  ;;  %v4678_v31 = vmov 1.0  }
  0xcf   :  { %v166_v54 = vclz %v3683_v53  ;;  %vm197_vm10 = vcmp.eq.s32.totalorder %v192_v42, 2  ;;  %vm194_vm11 = vcmp.eq.s32.totalorder %v192_v42, 0  ;;  %vm193_vm13 = vcmp.lt.s32.totalorder %v192_v42, 2 }
  0xd1   :  { %v3684_v55 = vadd.s32 4294967294, %v166_v54  ;;  %v76_v54 = vadd.f32 %v75_v50, %v73_v48 }
  0xd3   :  { %vm3685_vm7 = vcmp.lt.s32.totalorder %v3684_v55, 0 }
  0xd4   :  { %v169_v56 = vsel %vm3685_vm7, 0, %v3684_v55  ;;  %vm218_vm7 = vmor %vm212_vm3, %vm217_vm4  ;;  %vm5641_vm4 = vcmask 1043456  }
  0xd5   :  { %v170_v58 = vsub.s32 32, %v169_v56  ;;  %v174_v59 = vsub.s32 4294967266, %v169_v56  ;;  %v171_v60 = vshll.u32 %v162_v51, %v169_v56 }
  0xd7   :  { %v172_v61 = vshrl.u32 %v154_v57, %v170_v58  ;;  %v175_v62 = vadd.s32 127, %v174_v59 }
  0xd9   :  { %v173_v63 = vor.u32 %v172_v61, %v171_v60  ;;  %v176_v0 = vshll.u32 %v175_v62, 23 }
  0xdb   :  { %v177_v2 = vor.u32 4788187, %v176_v0  ;;  %v180_v4 = vcvt.s32.f32 %v173_v63 }
  0xdd   :  { %v178_v3 = vand.u32 2147483647, %v177_v2 }
  0xdf   :  { %v181_v6 = vmul.f32 %v180_v4, %v178_v3 }
  0xe1   :  { %v182_v8 = vxor.u32 2147483648, %v181_v6 }
  0xe3   :  { %v183_v21 = vsel %vm100_vm8, %v182_v8, %v181_v6  ;;  %vm220_vm8 = vmand %vm205_vm5, %vm219_vm6  ;;  %vm5640_vm6 = vcmask 1044480  }
  0xe4   :  { %v186_v23 = vsel %vm99_vm9, %v4792_v40, %v183_v21  ;;  %vm222_vm9 = vcmp.ge.s32.totalorder %v4825_v44, 96 }
  0xe5   :  { %4522 = vcosq.f32 %v186_v23 }
  0xe6   :  { %4524 = vsinq.f32 %v186_v23 }
  0xef   :  { %v4523_v43 = vpop.eup %4522 }
  0xf0   :  { %v4525_v46 = vpop.eup %4524  ;;  %v198_v47 = vxor.u32 2147483648, %v4523_v43 }
  0xf1   :  { %v195_v49 = vxor.u32 2147483648, %v4525_v46 }
  0xf2   :  { %v199_v51 = vsel %vm197_vm10, %v198_v47, %v4525_v46  ;;  %vm223_vm10 = vcmp.lt.s32.totalorder %v4825_v44, 112 }
  0xf3   :  { %v196_v52 = vsel %vm194_vm11, %v4523_v43, %v195_v49  ;;  %vm221_vm11 = vmor %vm218_vm7, %vm220_vm8  ;;  %vm5639_vm7 = vcmask 1045504   ;;  %vm5638_vm8 = vcmask 1046528  }
  0xf4   :  { %v200_v53 = vsel %vm193_vm13, %v196_v52, %v199_v51  ;;  %vm5644_vm13 = vcmask 1040384  }
  0xf5   :  { %v201_v55 = vsel %vm190_vm14, nan, %v200_v53 }
  0xf6   :  { %v202_v56 = vsel %vm97_vm12, %v201_v55, %v4792_v40  ;;  %vm224_vm12 = vmand %vm222_vm9, %vm223_vm10  ;;  %vm206_vm10 = vcmp.lt.s32.totalorder %v4825_v44, 96 }
  0xf7   :  { %v203_v57 = vmul.f32 0.001, %v202_v56  ;;  %vm225_vm14 = vmor %vm221_vm11, %vm224_vm12 }
  0xf8   :  { %v4898_v8 = vsel %vm225_vm14, 1, %v4668_v1  ;;  %vm207_vm11 = vmand %vm205_vm5, %vm206_vm10  ;;  %vm5653_vm14 = vcmp.ge.s32.totalorder %v4825_v44, 16 }
  0xf9   :  { %v204_v58 = vadd.f32 %v203_v57, %v76_v54  ;;  %vm5637_vm9 = vcmp.eq.s32.totalorder %v4898_v8, 1  ;;  %v4915_v32 = vsel %vm207_vm11, 2.0, %v4678_v31  ;;  %v4918_v45 = vsel %vm207_vm11, -1.0, %v4671_v11 }
  0xfb   :  { %v243_v59 = vsel %vm5647_vm15, %v204_v58, 0 }
  0xfc   :  { %v314_v60 = vand.u32 4294901760, %v243_v59 }
  0xfe   :  { %v315_v61 = vsub.f32 %v243_v59, %v314_v60 }
 0x100   :  { %v316_v62 = vand.u32 4294901760, %v315_v61 }
 0x102   :  { %3932 = vmatmul.mubr.f32.vlgmr.msra.gmra.mrb[0].mxu0 %v316_v62  ;;  %v317_v63 = vsub.f32 %v315_v61, %v316_v62 }
 0x103   :  { %4290 = vmatpush3.bf16.msra.mxu0 %v4768_v20  ;;  %3942 = vmatprep.mubr.msk.f32.mxu0 %vm5645_vm0, %v4671_v11  ;;  %v232_v20 = vld [vmem:[#allocation5 + $0x20] sm:$0xff] }
 0x104   :  { %v318_v0 = vand.u32 4294901760, %v317_v63  ;;  %4291 = vmatprep.subr.bf16.mxu0 %v4669_v5 }
 0x106   :  { %3899 = vmatmul.mubr.f32.vlgmr.msra.gmra.mrb[0].mxu1 %v318_v0 }
 0x107   :  { %4272 = vmatpush3.bf16.msra.mxu1 %v4774_v27  ;;  %4293 = vmatpush3.bf16.msra.mxu0 %v4776_v28  ;;  %v233_v27 = vld [vmem:[#allocation5 + $0x28] sm:$0xff]  ;;  %v234_v28 = vld [vmem:[#allocation5 + $0x30] sm:$0xff] }
 0x108   :  { %4273 = vmatprep.subr.bf16.mxu1 %v4669_v5  ;;  %4294 = vmatprep.subr.bf16.mxu0 %v4669_v5 }
 0x109   :  { %3909 = vmatprep.mubr.msk.f32.mxu1 %vm5645_vm0, %v4671_v11 }
 0x10a   :  { %3943 = vmatmul.mubr.f32.vlgmr.msra.gmra.mrb[0].mxu0 %v314_v60 }
 0x10b   :  { %4275 = vmatpush3.bf16.msra.mxu1 %v4780_v33  ;;  %4296 = vmatpush3.bf16.msra.mxu0 %v4746_v12  ;;  %v4854_v12 = vpack.c.bf16 %v233_v27, %v232_v20  ;;  %v235_v33 = vld [vmem:[#allocation5 + $0x38] sm:$0xff] }
 0x10c   :  { %4276 = vmatprep.subr.bf16.mxu1 %v4669_v5  ;;  %4297 = vmatprep.subr.bf16.mxu0 %v4669_v5  ;;  %v4865_v13 = vpack.c.bf16 %v235_v33, %v234_v28 }
 0x10d   :  { %3953 = vmatprep.mubr.msk.f32.mxu0 %vm5645_vm0, %v4671_v11 }
 0x10e   :  { %3910 = vmatmul.mubr.f32.vlgmr.msra.gmra.mrb[0].mxu1 %v314_v60 }
 0x10f   :  { %4278 = vmatpush3.bf16.msra.mxu1 %v4277_v34  ;;  %4299 = vmatpush3.bf16.msra.mxu0 %v4758_v17 }
 0x110   :  { %4279 = vmatprep.subr.bf16.mxu1 %v4669_v5  ;;  %3920 = vmatprep.mubr.msk.f32.mxu1 %vm5645_vm0, %v4671_v11 }
 0x111   :  { %4336 = vmatprep.subr.bf16.mxu0 %v4669_v5 }
 0x112   :  { %3954 = vmatmul.mubr.f32.vlgmr.msra.gmra.mrb[0].mxu0 %v314_v60 }
 0x113   :  { %4281 = vmatpush3.bf16.msra.mxu1 %v4280_v35  ;;  %4338 = vmatpush3.bf16.msra.mxu0 %v4854_v12 }
 0x114   :  { %4300 = vmatprep.subr.bf16.mxu1 %v4669_v5  ;;  %4339 = vmatprep.subr.bf16.mxu0 %v4669_v5 }
 0x115   :  { %4030 = vmatprep.mubr.msk.f32.mxu0 %vm5645_vm0, %v4671_v11 }
 0x116   :  { %3921 = vmatmul.mubr.f32.vlgmr.msra.gmra.mrb[0].mxu1 %v315_v61 }
 0x117   :  { %4302 = vmatpush3.bf16.msra.mxu1 %v4854_v12  ;;  %3964 = vmatprep.mubr.msk.f32.mxu1 %vm5645_vm0, %v4671_v11 }
 0x118   :  { %4303 = vmatprep.subr.bf16.mxu1 %v4669_v5  ;;  %4341 = vmatpush3.bf16.msra.mxu0 %v4865_v13 }
 0x119   :  { %4348 = vmatprep.subr.bf16.mxu0 %v4669_v5 }
 0x11b   :  { %4305 = vmatpush3.bf16.msra.mxu1 %v4865_v13 }
 0x11c   :  { %4306 = vmatprep.subr.bf16.mxu1 %v4669_v5 }
 0x11e   :  { %3965 = vmatmul.mubr.f32.vlgmr.msra.gmra.mrb[2].mxu1 %v4671_v11 }
 0x11f   :  { %4308 = vmatpush3.bf16.msra.mxu1 %v4854_v12  ;;  %3975 = vmatprep.mubr.msk.f32.mxu1 %vm5645_vm0, %v4671_v11 }
 0x120   :  { %4309 = vmatprep.subr.bf16.mxu1 %v4669_v5 }
 0x123   :  { %4311 = vmatpush3.bf16.msra.mxu1 %v4865_v13 }
 0x124   :  { %4312 = vmatprep.subr.bf16.mxu1 %v4669_v5 }
 0x1e5   :  { %v726_v14 = vpop.f32.mrb[0].mxu0 }
 0x1e6   :  { %v3955_v15 = vpop.f32.mrb[1].mxu0 }
 0x1e9   :  { %v491_v17 = vpop.f32.mrb[0].mxu1 }
 0x1ea   :  { %v4468_v34 = vadd.f32 %v3686_v16, %v491_v17  ;;  %v3922_v35 = vpop.f32.mrb[1].mxu1 }
 0x1ec   :  { %v4469_v40 = vadd.f32 %v4468_v34, %v726_v14 }
 0x1ee   :  { %v731_v2 = vrot.slane %v4469_v40, 7  ;;  %v733_v3 = vrot.slane %v4469_v40, 5  ;;  %v735_v4 = vrot.slane %v4469_v40, 3  ;;  %v737_v6 = vrot.slane %v4469_v40, 1 }
 0x1f0   :  { %v740_v7 = vsel %vm5644_vm13, %v731_v2, %v733_v3 }
 0x1f1   :  { %v742_v9 = vsel %vm5643_vm1, %v740_v7, %v735_v4  ;;  %v825_v10 = vpop.f32.mrb[2].mxu1 }
 0x1f2   :  { %v744_v18 = vsel %vm5642_vm2, %v742_v9, %v737_v6  ;;  %v3966_v19 = vpop.f32.mrb[3].mxu1 }
 0x1f3   :  { %v746_v21 = vsel %vm5641_vm4, %v744_v18, %v731_v2 }
 0x1f4   :  { %v748_v22 = vsel %vm5640_vm6, %v746_v21, %v733_v3 }
 0x1f5   :  { %v750_v23 = vsel %vm5639_vm7, %v748_v22, %v735_v4 }
 0x1f6   :  { %v752_v1 = vsel %vm5638_vm8, %v750_v23, %v737_v6 }
 0x1f7   :  { %v4909_v24 = vsel %vm5637_vm9, %v4469_v40, %v752_v1 }
 0x1f8   :  { %v829_v25 = vadd.f32 %v825_v10, %v4909_v24 }
 0x1fa   :  { %v3687_v26 = vmul.f32 -1.442695, %v829_v25 }
 0x1fc   :  { %4526 = vpow2.f32 %v3687_v26 }
 0x206   :  { %v4527_v29 = vpop.eup %4526 }
 0x207   :  { %v833_v30 = vadd.f32 1.0, %v4527_v29 }
 0x209   :  { %4528 = vrcp.f32 %v833_v30 }
 0x213   :  { %v4529_v36 = vpop.eup %4528 }
 0x214   :  { %v836_v37 = vmul.f32 %v4529_v36, %v4915_v32 }
 0x216   :  { %v837_v39 = vadd.f32 %v836_v37, %v4918_v45 }
 0x218   :  { %840 = vrot.lane.b32.xlu0 %v837_v39, %s4679_s13  ;;  %v838_v43 = vmul.f32 0.0, %v837_v39 }
 0x28a   :  { %v841_v41 = vpop.permute.xlu0 %840 }
 0x28b   :  { %v843_v42 = vmul.f32 %v841_v41, %v837_v39 }
 0x28d   :  { %845 = vrot.lane.b32.xlu1 %v843_v42, %s4680_s14 }
 0x2ff   :  { %v846_v46 = vpop.permute.xlu1 %845 }
 0x300   :  { %v848_v47 = vadd.f32 %v846_v46, %v838_v43 }
 0x302   :  { %4530 = vtanh.f32 %v848_v47  ;;  %v958_v0 = vrot.slane %v848_v47, 7 }
 0x30c   :  { %v4531_v48 = vpop.eup %4530 }
 0x30d   :  { %851 = vrot.lane.b32.xlu1 %v4531_v48, %s4679_s13 }
 0x37f   :  { %v852_v49 = vpop.permute.xlu1 %851 }
 0x380   :  { %v4925_v50 = vmul.f32 %v852_v49, %v837_v39 }
 0x382   :  { %871 = vrot.lane.b32.xlu0 %v4925_v50, %s4680_s14 }
 0x3f4   :  { %v872_v51 = vpop.permute.xlu0 %871 }
 0x3f5   :  { %3976 = vmatmul.mubr.msk.f32.vlgmr.msra.gmra.mrb[4].mxu1 %vm5647_vm15, %v872_v51 }
 0x3f6   :  { %4314 = vmatpush3.bf16.msra.mxu1 %v4854_v12  ;;  %3986 = vmatprep.mubr.msk.f32.mxu1 %vm5645_vm0, %v4671_v11 }
 0x3f7   :  { %4315 = vmatprep.subr.bf16.mxu1 %v4669_v5 }
 0x3fa   :  { %4317 = vmatpush3.bf16.msra.mxu1 %v4865_v13 }
 0x3fb   :  { %4318 = vmatprep.subr.bf16.mxu1 %v4669_v5 }
 0x4c8   :  { %v941_v52 = vpop.f32.mrb[4].mxu1 }
 0x4c9   :  { %v946_v53 = vrot.slane %v941_v52, 7  ;;  %v3977_v54 = vpop.f32.mrb[5].mxu1 }
 0x4cb   :  { %v948_v55 = vadd.f32 %v946_v53, %v4909_v24 }
 0x4cd   :  { %v3689_v56 = vmul.f32 -1.442695, %v948_v55 }
 0x4cf   :  { %4532 = vpow2.f32 %v3689_v56 }
 0x4d9   :  { %v4533_v57 = vpop.eup %4532 }
 0x4da   :  { %v952_v58 = vadd.f32 1.0, %v4533_v57 }
 0x4dc   :  { %4534 = vrcp.f32 %v952_v58 }
 0x4e6   :  { %v4535_v59 = vpop.eup %4534 }
 0x4e7   :  { %v955_v60 = vmul.f32 %v4535_v59, %v4915_v32 }
 0x4e9   :  { %v956_v61 = vadd.f32 %v955_v60, %v4918_v45 }
 0x4eb   :  { %962 = vrot.lane.b32.xlu1 %v956_v61, %s4679_s13  ;;  %v960_v20 = vmul.f32 %v958_v0, %v956_v61 }
 0x55d   :  { %v963_v62 = vpop.permute.xlu1 %962 }
 0x55e   :  { %v965_v63 = vmul.f32 %v963_v62, %v956_v61 }
 0x560   :  { %967 = vrot.lane.b32.xlu0 %v965_v63, %s4680_s14 }
 0x5d2   :  { %v968_v27 = vpop.permute.xlu0 %967 }
 0x5d3   :  { %v970_v28 = vadd.f32 %v968_v27, %v960_v20 }
 0x5d5   :  { %4536 = vtanh.f32 %v970_v28  ;;  %v1080_v21 = vrot.slane %v970_v28, 7 }
 0x5df   :  { %v4537_v33 = vpop.eup %4536 }
 0x5e0   :  { %973 = vrot.lane.b32.xlu1 %v4537_v33, %s4679_s13 }
 0x652   :  { %v974_v14 = vpop.permute.xlu1 %973 }
 0x653   :  { %v4942_v15 = vmul.f32 %v974_v14, %v956_v61 }
 0x655   :  { %v992_v16 = vrot.slane %v4942_v15, 1 }
 0x657   :  { %993 = vrot.lane.b32.xlu0 %v992_v16, %s4680_s14 }
 0x6c9   :  { %v994_v17 = vpop.permute.xlu0 %993 }
 0x6ca   :  { %3987 = vmatmul.mubr.msk.f32.vlgmr.msra.gmra.mrb[6].mxu1 %vm5647_vm15, %v994_v17 }
 0x6cb   :  { %4320 = vmatpush3.bf16.msra.mxu1 %v4854_v12  ;;  %3997 = vmatprep.mubr.msk.f32.mxu1 %vm5645_vm0, %v4671_v11 }
 0x6cc   :  { %4321 = vmatprep.subr.bf16.mxu1 %v4669_v5 }
 0x6cf   :  { %4323 = vmatpush3.bf16.msra.mxu1 %v4865_v13 }
 0x6d0   :  { %4324 = vmatprep.subr.bf16.mxu1 %v4669_v5 }
 0x79d   :  { %v1063_v34 = vpop.f32.mrb[6].mxu1 }
 0x79e   :  { %v1068_v35 = vrot.slane %v1063_v34, 6  ;;  %v3988_v40 = vpop.f32.mrb[7].mxu1 }
 0x7a0   :  { %v1070_v2 = vadd.f32 %v1068_v35, %v4909_v24 }
 0x7a2   :  { %v3691_v3 = vmul.f32 -1.442695, %v1070_v2 }
 0x7a4   :  { %4538 = vpow2.f32 %v3691_v3 }
 0x7ae   :  { %v4539_v4 = vpop.eup %4538 }
 0x7af   :  { %v1074_v6 = vadd.f32 1.0, %v4539_v4 }
 0x7b1   :  { %4540 = vrcp.f32 %v1074_v6 }
 0x7bb   :  { %v4541_v7 = vpop.eup %4540 }
 0x7bc   :  { %v1077_v9 = vmul.f32 %v4541_v7, %v4915_v32 }
 0x7be   :  { %v1078_v10 = vadd.f32 %v1077_v9, %v4918_v45 }
 0x7c0   :  { %1084 = vrot.lane.b32.xlu1 %v1078_v10, %s4679_s13  ;;  %v1082_v22 = vmul.f32 %v1080_v21, %v1078_v10 }
 0x832   :  { %v1085_v18 = vpop.permute.xlu1 %1084 }
 0x833   :  { %v1087_v19 = vmul.f32 %v1085_v18, %v1078_v10 }
 0x835   :  { %1089 = vrot.lane.b32.xlu0 %v1087_v19, %s4680_s14 }
 0x8a7   :  { %v1090_v23 = vpop.permute.xlu0 %1089 }
 0x8a8   :  { %v1092_v1 = vadd.f32 %v1090_v23, %v1082_v22 }
 0x8aa   :  { %4542 = vtanh.f32 %v1092_v1  ;;  %v1202_v53 = vrot.slane %v1092_v1, 7 }
 0x8b4   :  { %v4543_v25 = vpop.eup %4542 }
 0x8b5   :  { %1095 = vrot.lane.b32.xlu1 %v4543_v25, %s4679_s13 }
 0x927   :  { %v1096_v26 = vpop.permute.xlu1 %1095 }
 0x928   :  { %v4959_v29 = vmul.f32 %v1096_v26, %v1078_v10 }
 0x92a   :  { %v1114_v30 = vrot.slane %v4959_v29, 2 }
 0x92c   :  { %1115 = vrot.lane.b32.xlu0 %v1114_v30, %s4680_s14 }
 0x99e   :  { %v1116_v31 = vpop.permute.xlu0 %1115 }
 0x99f   :  { %3998 = vmatmul.mubr.msk.f32.vlgmr.msra.gmra.mrb[8].mxu1 %vm5647_vm15, %v1116_v31 }
 0x9a0   :  { %4326 = vmatpush3.bf16.msra.mxu1 %v4854_v12  ;;  %4008 = vmatprep.mubr.msk.f32.mxu1 %vm5645_vm0, %v4671_v11 }
 0x9a1   :  { %4327 = vmatprep.subr.bf16.mxu1 %v4669_v5 }
 0x9a4   :  { %4329 = vmatpush3.bf16.msra.mxu1 %v4865_v13 }
 0x9a5   :  { %4330 = vmatprep.subr.bf16.mxu1 %v4669_v5 }
 0xa72   :  { %v1185_v36 = vpop.f32.mrb[8].mxu1 }
 0xa73   :  { %v1190_v37 = vrot.slane %v1185_v36, 5  ;;  %v3999_v39 = vpop.f32.mrb[9].mxu1 }
 0xa75   :  { %v1192_v41 = vadd.f32 %v1190_v37, %v4909_v24 }
 0xa77   :  { %v3693_v42 = vmul.f32 -1.442695, %v1192_v41 }
 0xa79   :  { %4544 = vpow2.f32 %v3693_v42 }
 0xa83   :  { %v4545_v43 = vpop.eup %4544 }
 0xa84   :  { %v1196_v46 = vadd.f32 1.0, %v4545_v43 }
 0xa86   :  { %4546 = vrcp.f32 %v1196_v46 }
 0xa90   :  { %v4547_v47 = vpop.eup %4546 }
 0xa91   :  { %v1199_v48 = vmul.f32 %v4547_v47, %v4915_v32 }
 0xa93   :  { %v1200_v49 = vadd.f32 %v1199_v48, %v4918_v45 }
 0xa95   :  { %1206 = vrot.lane.b32.xlu1 %v1200_v49, %s4679_s13  ;;  %v1204_v54 = vmul.f32 %v1202_v53, %v1200_v49 }
 0xb07   :  { %v1207_v51 = vpop.permute.xlu1 %1206 }
 0xb08   :  { %v1209_v52 = vmul.f32 %v1207_v51, %v1200_v49 }
 0xb0a   :  { %1211 = vrot.lane.b32.xlu0 %v1209_v52, %s4680_s14 }
 0xb7c   :  { %v1212_v55 = vpop.permute.xlu0 %1211 }
 0xb7d   :  { %v1214_v56 = vadd.f32 %v1212_v55, %v1204_v54 }
 0xb7f   :  { %4548 = vtanh.f32 %v1214_v56  ;;  %v1324_v40 = vrot.slane %v1214_v56, 7 }
 0xb89   :  { %v4549_v57 = vpop.eup %4548 }
 0xb8a   :  { %1217 = vrot.lane.b32.xlu1 %v4549_v57, %s4679_s13 }
 0xbfc   :  { %v1218_v58 = vpop.permute.xlu1 %1217 }
 0xbfd   :  { %v4976_v59 = vmul.f32 %v1218_v58, %v1200_v49 }
 0xbff   :  { %v1236_v60 = vrot.slane %v4976_v59, 3 }
 0xc01   :  { %1237 = vrot.lane.b32.xlu0 %v1236_v60, %s4680_s14 }
 0xc73   :  { %v1238_v61 = vpop.permute.xlu0 %1237 }
 0xc74   :  { %4009 = vmatmul.mubr.msk.f32.vlgmr.msra.gmra.mrb[10].mxu1 %vm5647_vm15, %v1238_v61 }
 0xc75   :  { %4332 = vmatpush3.bf16.msra.mxu1 %v4854_v12  ;;  %4019 = vmatprep.mubr.msk.f32.mxu1 %vm5645_vm0, %v4671_v11 }
 0xc76   :  { %4333 = vmatprep.subr.bf16.mxu1 %v4669_v5 }
 0xc79   :  { %4335 = vmatpush3.bf16.msra.mxu1 %v4865_v13 }
 0xc7a   :  { %4342 = vmatprep.subr.bf16.mxu1 %v4669_v5 }
 0xd47   :  { %v1307_v62 = vpop.f32.mrb[10].mxu1 }
 0xd48   :  { %v1312_v63 = vrot.slane %v1307_v62, 4  ;;  %v4010_v0 = vpop.f32.mrb[11].mxu1 }
 0xd4a   :  { %v1314_v20 = vadd.f32 %v1312_v63, %v4909_v24 }
 0xd4c   :  { %v3695_v27 = vmul.f32 -1.442695, %v1314_v20 }
 0xd4e   :  { %4550 = vpow2.f32 %v3695_v27 }
 0xd58   :  { %v4551_v28 = vpop.eup %4550 }
 0xd59   :  { %v1318_v33 = vadd.f32 1.0, %v4551_v28 }
 0xd5b   :  { %4552 = vrcp.f32 %v1318_v33 }
 0xd65   :  { %v4553_v14 = vpop.eup %4552 }
 0xd66   :  { %v1321_v16 = vmul.f32 %v4553_v14, %v4915_v32 }
 0xd68   :  { %v1322_v17 = vadd.f32 %v1321_v16, %v4918_v45 }
 0xd6a   :  { %1328 = vrot.lane.b32.xlu1 %v1322_v17, %s4679_s13  ;;  %v1326_v2 = vmul.f32 %v1324_v40, %v1322_v17 }
 0xddc   :  { %v1329_v34 = vpop.permute.xlu1 %1328 }
 0xddd   :  { %v1331_v35 = vmul.f32 %v1329_v34, %v1322_v17 }
 0xddf   :  { %1333 = vrot.lane.b32.xlu0 %v1331_v35, %s4680_s14 }
 0xe51   :  { %v1334_v3 = vpop.permute.xlu0 %1333 }
 0xe52   :  { %v1336_v4 = vadd.f32 %v1334_v3, %v1326_v2 }
 0xe54   :  { %4554 = vtanh.f32 %v1336_v4  ;;  %v1444_v37 = vrot.slane %v1336_v4, 7 }
 0xe5e   :  { %v4555_v6 = vpop.eup %4554 }
 0xe5f   :  { %1339 = vrot.lane.b32.xlu1 %v4555_v6, %s4679_s13 }
 0xed1   :  { %v1340_v7 = vpop.permute.xlu1 %1339 }
 0xed2   :  { %v4993_v9 = vmul.f32 %v1340_v7, %v1322_v17 }
 0xed4   :  { %v1356_v10 = vrot.slane %v4993_v9, 4 }
 0xed6   :  { %1357 = vrot.lane.b32.xlu0 %v1356_v10, %s4680_s14 }
 0xf48   :  { %v1358_v18 = vpop.permute.xlu0 %1357 }
 0xf49   :  { %4020 = vmatmul.mubr.msk.f32.vlgmr.msra.gmra.mrb[12].mxu1 %vm5647_vm15, %v1358_v18 }
 0xf4a   :  { %4344 = vmatpush3.bf16.msra.mxu1 %v4854_v12  ;;  %4041 = vmatprep.mubr.msk.f32.mxu1 %vm5645_vm0, %v4671_v11 }
 0xf4b   :  { %4345 = vmatprep.subr.bf16.mxu1 %v4669_v5 }
 0xf4e   :  { %4347 = vmatpush3.bf16.msra.mxu1 %v4865_v13 }
 0xf4f   :  { %4384 = vmatprep.subr.bf16.mxu1 %v4669_v5 }
0x101c   :  { %v1427_v19 = vpop.f32.mrb[12].mxu1 }
0x101d   :  { %v1432_v21 = vrot.slane %v1427_v19, 3  ;;  %v4021_v22 = vpop.f32.mrb[13].mxu1 }
0x101f   :  { %v1434_v23 = vadd.f32 %v1432_v21, %v4909_v24  ;;  %v5032_v21 = vshrl.u32 %v95_v38, 7 }
0x1021   :  { %v3697_v1 = vmul.f32 -1.442695, %v1434_v23  ;;  %v863_v23 = vsub.s32 0, %v5032_v21  ;;  %v1348_v38 = vsub.s32 4, %v5032_v21  ;;  %vm5648_vm5 = vcmp.eq.s32.totalorder %v5032_v21, 0 }
0x1022   :  { %vm857_vm12 = vcmp.eq.s32.totalorder %v5032_v21, 7  ;;  %vm5132_vm10 = vmand %vm5648_vm5, %vm212_vm3  ;;  %vm5649_vm9 = vcmp.eq.s32.totalorder %v5032_v21, 1  ;;  %vm979_vm8 = vcmp.eq.s32.totalorder %v5032_v21, 6  ;;  %vm5650_vm6 = vcmp.eq.s32.totalorder %v5032_v21, 2 }
0x1023   :  { %4556 = vpow2.f32 %v3697_v1  ;;  %vm5140_vm11 = vmand %vm857_vm12, %vm5653_vm14  ;;  %vm5651_vm2 = vcmp.eq.s32.totalorder %v5032_v21, 5  ;;  %vm5652_vm13 = vcmp.eq.s32.totalorder %v5032_v21, 3 }
0x1024   :  { %vm5155_vm4 = vmand %vm5649_vm9, %vm212_vm3 }
0x1025   :  { %vm5164_vm1 = vmand %vm979_vm8, %vm5653_vm14 }
0x1026   :  { %vm5182_vm5 = vmand %vm5651_vm2, %vm5653_vm14 }
0x1027   :  { %vm5190_vm9 = vmand %vm5652_vm13, %vm212_vm3 }
0x1028   :  { %vm5208_vm7 = vmand %vm979_vm8, %vm212_vm3  ;;  %vm5693_vm8 = vcmp.ge.s32.totalorder %v4825_v44, 16 }
0x1029   :  { %vm5689_vm2 = vmor %vm5132_vm10, %vm5140_vm11 }
0x102d   :  { %v4557_v25 = vpop.eup %4556 }
0x102e   :  { %v1438_v26 = vadd.f32 1.0, %v4557_v25  ;;  %v1106_v25 = vsub.s32 2, %v5032_v21 }
0x1030   :  { %4558 = vrcp.f32 %v1438_v26  ;;  %v1107_v26 = vrot.slane %v4959_v29, %v1106_v25 }
0x103a   :  { %v4559_v12 = vpop.eup %4558 }
0x103b   :  { %v1441_v30 = vmul.f32 %v4559_v12, %v4915_v32  ;;  %v1349_v12 = vrot.slane %v4993_v9, %v1348_v38 }
0x103d   :  { %v1442_v31 = vadd.f32 %v1441_v30, %v4918_v45  ;;  %v1588_v30 = vsub.s32 6, %v5032_v21 }
0x103f   :  { %1448 = vrot.lane.b32.xlu1 %v1442_v31, %s4679_s13  ;;  %v1446_v39 = vmul.f32 %v1444_v37, %v1442_v31  ;;  %v984_v37 = vsub.s32 1, %v5032_v21 }
0x1041   :  { %v985_v9 = vrot.slane %v4942_v15, %v984_v37  ;;  %v1717_v15 = vld [vmem:[#allocation5 + $0x48] sm:$0xff] }
0x10b1   :  { %v1449_v13 = vpop.permute.xlu1 %1448 }
0x10b2   :  { %v1451_v36 = vmul.f32 %v1449_v13, %v1442_v31 }
0x10b4   :  { %1453 = vrot.lane.b32.xlu0 %v1451_v36, %s4680_s14 }
0x1126   :  { %v1454_v41 = vpop.permute.xlu0 %1453 }
0x1127   :  { %v1456_v42 = vadd.f32 %v1454_v41, %v1446_v39  ;;  %v1228_v41 = vsub.s32 3, %v5032_v21 }
0x1129   :  { %4560 = vtanh.f32 %v1456_v42  ;;  %v1564_v0 = vrot.slane %v1456_v42, 7  ;;  %v1229_v42 = vrot.slane %v4976_v59, %v1228_v41  ;;  %v1718_v59 = vld [vmem:[#allocation5 + $0x50] sm:$0xff] }
0x1133   :  { %v4561_v43 = vpop.eup %4560 }
0x1134   :  { %1459 = vrot.lane.b32.xlu1 %v4561_v43, %s4679_s13  ;;  %v1468_v43 = vsub.s32 5, %v5032_v21 }
0x11a6   :  { %v1460_v46 = vpop.permute.xlu1 %1459 }
0x11a7   :  { %v5010_v47 = vmul.f32 %v1460_v46, %v1442_v31 }
0x11a9   :  { %v1476_v48 = vrot.slane %v5010_v47, 5  ;;  %v1469_v46 = vrot.slane %v5010_v47, %v1468_v43 }
0x11ab   :  { %1477 = vrot.lane.b32.xlu0 %v1476_v48, %s4680_s14  ;;  %v1716_v48 = vld [vmem:[#allocation5 + $0x40] sm:$0xff] }
0x121d   :  { %v1478_v49 = vpop.permute.xlu0 %1477 }
0x121e   :  { %4031 = vmatmul.mubr.msk.f32.vlgmr.msra.gmra.mrb[2].mxu0 %vm5647_vm15, %v1478_v49  ;;  %v1733_v49 = vand.u32 4294901760, %v1716_v48 }
0x121f   :  { %4052 = vmatprep.mubr.msk.f32.mxu0 %vm5645_vm0, %v4671_v11 }
0x12f1   :  { %v1547_v51 = vpop.f32.mrb[2].mxu0 }
0x12f2   :  { %v1552_v52 = vrot.slane %v1547_v51, 2  ;;  %v4032_v53 = vpop.f32.mrb[3].mxu0  ;;  %v1736_v51 = vand.u32 4294901760, %v1717_v15 }
0x12f3   :  { %v5072_v53 = vsub.f32 %v1716_v48, %v1733_v49 }
0x12f4   :  { %v1554_v54 = vadd.f32 %v1552_v52, %v4909_v24  ;;  %v5070_v52 = vpack.c.bf16 %v1736_v51, %v1733_v49  ;;  %v5685_v49 = vmov 0 }
0x12f5   :  { %v1814_v47 = vand.u32 4294901760, %v5072_v53  ;;  %v5686_v49 = vsel %vm5208_vm7, 4294967295, %v5685_v49 }
0x12f6   :  { %v3699_v55 = vmul.f32 -1.442695, %v1554_v54  ;;  %v5074_v54 = vsub.f32 %v1717_v15, %v1736_v51  ;;  %4350 = vmatpush3.bf16.msra.mxu0 %v5070_v52  ;;  %v5683_v15 = vmov 0  ;;  %v5687_v51 = vmov 0 }
0x12f7   :  { %4351 = vmatprep.subr.bf16.mxu0 %v4669_v5 }
0x12f8   :  { %4562 = vpow2.f32 %v3699_v55  ;;  %v1719_v55 = vld [vmem:[#allocation5 + $0x58] sm:$0xff] }
0x1302   :  { %v4563_v56 = vpop.eup %4562 }
0x1303   :  { %v1558_v57 = vadd.f32 1.0, %v4563_v56  ;;  %v1739_v56 = vand.u32 4294901760, %v1718_v59 }
0x1305   :  { %4564 = vrcp.f32 %v1558_v57  ;;  %v1742_v57 = vand.u32 4294901760, %v1719_v55 }
0x130f   :  { %v4565_v58 = vpop.eup %4564 }
0x1310   :  { %v1561_v60 = vmul.f32 %v4565_v58, %v4915_v32  ;;  %v1821_v58 = vand.u32 4294901760, %v5074_v54 }
0x1312   :  { %v1562_v61 = vadd.f32 %v1561_v60, %v4918_v45  ;;  %v1708_v60 = vsub.s32 7, %v5032_v21 }
0x1314   :  { %1568 = vrot.lane.b32.xlu1 %v1562_v61, %s4679_s13  ;;  %v1566_v20 = vmul.f32 %v1564_v0, %v1562_v61  ;;  %v5085_v0 = vsub.f32 %v1719_v55, %v1742_v57 }
0x1386   :  { %v1569_v62 = vpop.permute.xlu1 %1568 }
0x1387   :  { %v1571_v63 = vmul.f32 %v1569_v62, %v1562_v61  ;;  %v5081_v62 = vpack.c.bf16 %v1742_v57, %v1739_v56 }
0x1389   :  { %1573 = vrot.lane.b32.xlu0 %v1571_v63, %s4680_s14  ;;  %v5083_v63 = vsub.f32 %v1718_v59, %v1739_v56  ;;  %4353 = vmatpush3.bf16.msra.mxu0 %v5081_v62 }
0x138a   :  { %4354 = vmatprep.subr.bf16.mxu0 %v4669_v5 }
0x13fb   :  { %v1574_v27 = vpop.permute.xlu0 %1573 }
0x13fc   :  { %v1576_v28 = vadd.f32 %v1574_v27, %v1566_v20  ;;  %v1815_v20 = vsub.f32 %v5072_v53, %v1814_v47 }
0x13fe   :  { %4566 = vtanh.f32 %v1576_v28  ;;  %v1684_v31 = vrot.slane %v1576_v28, 7  ;;  %v1822_v28 = vsub.f32 %v5074_v54, %v1821_v58 }
0x1408   :  { %v4567_v33 = vpop.eup %4566 }
0x1409   :  { %1579 = vrot.lane.b32.xlu1 %v4567_v33, %s4679_s13  ;;  %v1816_v33 = vand.u32 4294901760, %v1815_v20  ;;  %v5702_v20 = vmov 0 }
0x147b   :  { %v1580_v14 = vpop.permute.xlu1 %1579 }
0x147c   :  { %v1582_v16 = vmul.f32 %v1580_v14, %v1562_v61  ;;  %v1828_v14 = vand.u32 4294901760, %v5083_v63 }
0x147e   :  { %v1596_v17 = vrot.slane %v1582_v16, 6 }
0x1480   :  { %1597 = vrot.lane.b32.xlu0 %v1596_v17, %s4680_s14 }
0x14f2   :  { %v1598_v34 = vpop.permute.xlu0 %1597 }
0x14f3   :  { %4042 = vmatmul.mubr.msk.f32.vlgmr.msra.gmra.mrb[14].mxu1 %vm5647_vm15, %v1598_v34  ;;  %v1823_v34 = vand.u32 4294901760, %v1822_v28  ;;  %vm1223_vm15 = vcmp.eq.s32.totalorder %v5032_v21, 4 }
0x14f4   :  { %4118 = vmatprep.mubr.msk.f32.mxu1 %vm5645_vm0, %v4671_v11  ;;  %vm5235_vm13 = vmand %vm1223_vm15, %vm212_vm3 }
0x15c6   :  { %v1667_v35 = vpop.f32.mrb[14].mxu1 }
0x15c7   :  { %v1672_v40 = vrot.slane %v1667_v35, 1  ;;  %v4043_v2 = vpop.f32.mrb[15].mxu1  ;;  %v1829_v35 = vsub.f32 %v5083_v63, %v1828_v14 }
0x15c8   :  { %v5098_v2 = vpack.c.bf16 %v1823_v34, %v1816_v33 }
0x15c9   :  { %v1674_v3 = vadd.f32 %v1672_v40, %v4909_v24  ;;  %v864_v24 = vrot.slane %v4925_v50, %v863_v23  ;;  %v1589_v50 = vrot.slane %v1582_v16, %v1588_v30  ;;  %v1835_v16 = vand.u32 4294901760, %v5085_v0 }
0x15cb   :  { %v3701_v4 = vmul.f32 -1.442695, %v1674_v3  ;;  %v1836_v40 = vsub.f32 %v5085_v0, %v1835_v16  ;;  %v1830_v3 = vand.u32 4294901760, %v1829_v35 }
0x15cd   :  { %4568 = vpow2.f32 %v3701_v4  ;;  %v1837_v4 = vand.u32 4294901760, %v1836_v40 }
0x15d7   :  { %v4569_v6 = vpop.eup %4568 }
0x15d8   :  { %v1678_v7 = vadd.f32 1.0, %v4569_v6  ;;  %v5100_v6 = vpack.c.bf16 %v1837_v4, %v1830_v3 }
0x15da   :  { %4570 = vrcp.f32 %v1678_v7  ;;  %v4361_v7 = vpack.c.bf16 %v5074_v54, %v5072_v53  ;;  %v3702_v54 = vld [vmem:[%s5632_s3 + $0x4] ss:$0 sm:$0xff] }
0x15e4   :  { %v4571_v10 = vpop.eup %4570 }
0x15e5   :  { %v1681_v18 = vmul.f32 %v4571_v10, %v4915_v32  ;;  %v4364_v10 = vpack.c.bf16 %v5085_v0, %v5083_v63 }
0x15e7   :  { %v1682_v19 = vadd.f32 %v1681_v18, %v4918_v45  ;;  %v5106_v18 = vpack.c.bf16 %v1821_v58, %v1814_v47 }
0x15e9   :  { %1688 = vrot.lane.b32.xlu1 %v1682_v19, %s4679_s13  ;;  %v1686_v13 = vmul.f32 %v1684_v31, %v1682_v19 }
0x165b   :  { %v1689_v22 = vpop.permute.xlu1 %1688 }
0x165c   :  { %v1691_v1 = vmul.f32 %v1689_v22, %v1682_v19  ;;  %v1720_v22 = vld [vmem:[#allocation5 + $0x60] sm:$0xff] }
0x165e   :  { %1693 = vrot.lane.b32.xlu0 %v1691_v1, %s4680_s14  ;;  %v1721_v1 = vld [vmem:[#allocation5 + $0x68] sm:$0xff] }
0x1662   :  { %866 = vrot.lane.b32.xlu0 %v864_v24, %s4680_s14  ;;  %v1722_v24 = vld [vmem:[#allocation5 + $0x70] sm:$0xff] }
0x1666   :  { %1109 = vrot.lane.b32.xlu0 %v1107_v26, %s4680_s14  ;;  %v5110_v26 = vpack.c.bf16 %v1721_v1, %v1720_v22 }
0x1668   :  { %4386 = vmatpush3.bf16.msra.mxu1 %v5110_v26 }
0x1669   :  { %4387 = vmatprep.subr.bf16.mxu1 %v4669_v5 }
0x166a   :  { %1351 = vrot.lane.b32.xlu0 %v1349_v12, %s4680_s14  ;;  %v1723_v12 = vld [vmem:[#allocation5 + $0x78] sm:$0xff] }
0x166e   :  { %1591 = vrot.lane.b32.xlu0 %v1589_v50, %s4680_s14  ;;  %v5113_v50 = vpack.c.bf16 %v1723_v12, %v1722_v24 }
0x1670   :  { %4389 = vmatpush3.bf16.msra.mxu1 %v5113_v50 }
0x1671   :  { %4390 = vmatprep.subr.bf16.mxu1 %v4669_v5 }
0x1673   :  { %4119 = vmatmul.mubr.f32.vlgmr.msra.gmra.mrb[16].mxu1 %v4671_v11 }
0x1674   :  { %4392 = vmatpush3.bf16.msra.mxu1 %v5110_v26  ;;  %4129 = vmatprep.mubr.msk.f32.mxu1 %vm5645_vm0, %v4671_v11  ;;  %vm5173_vm0 = vmand %vm5650_vm6, %vm212_vm3 }
0x1675   :  { %4393 = vmatprep.subr.bf16.mxu1 %v4669_v5  ;;  %vm5196_vm6 = vmand %vm1223_vm15, %vm5653_vm14  ;;  %vm5697_vm15 = vcmp.eq.s32.totalorder %v5032_v21, 5 }
0x1676   :  { %v5684_v15 = vsel %vm5196_vm6, 4294967295, %v5683_v15  ;;  %vm5220_vm14 = vmand %vm857_vm12, %vm212_vm3 }
0x1677   :  { %v5688_v51 = vsel %vm5220_vm14, 4294967295, %v5687_v51  ;;  %vm5692_vm12 = vmor %vm5155_vm4, %vm5164_vm1  ;;  %vm5694_vm14 = vcmp.eq.s32.totalorder %v5032_v21, 3 }
0x1678   :  { %4395 = vmatpush3.bf16.msra.mxu1 %v5113_v50  ;;  %vm5248_vm7 = vmand %vm5694_vm14, %vm5693_vm8 }
0x1679   :  { %4396 = vmatprep.subr.bf16.mxu1 %v4669_v5  ;;  %vm5704_vm14 = vmmov %vm5693_vm8 }
0x16d0   :  { %v1694_v29 = vpop.permute.xlu0 %1693 }
0x16d1   :  { %v1696_v36 = vadd.f32 %v1694_v29, %v1686_v13  ;;  %v5671_v13 = vmov 0  ;;  %v5673_v29 = vmov 0 }
0x16d2   :  { %v5672_v13 = vsel %vm5140_vm11, 4294967295, %v5671_v13  ;;  %v5674_v29 = vsel %vm5155_vm4, 4294967295, %v5673_v29  ;;  %vm5700_vm11 = vmmov %vm5693_vm8  ;;  %vm5705_vm8 = vcmp.eq.s32.totalorder %v5032_v21, 1 }
0x16d3   :  { %4572 = vtanh.f32 %v1696_v36  ;;  %v5675_v36 = vmov 0  ;;  %vm5272_vm4 = vmand %vm5705_vm8, %vm5704_vm14  ;;  %vm5710_vm8 = vcmp.eq.s32.totalorder %v5032_v21, 0 }
0x16d4   :  { %v5676_v36 = vsel %vm5164_vm1, 4294967295, %v5675_v36 }
0x16dd   :  { %v4573_v39 = vpop.eup %4572 }
0x16de   :  { %1699 = vrot.lane.b32.xlu1 %v4573_v39, %s4679_s13  ;;  %v867_v39 = vpop.permute.xlu0 %866 }
0x16df   :  { %v869_v55 = vsel %vm5689_vm2, %v867_v39, 0.0  ;;  %vm5256_vm2 = vmand %vm5697_vm15, %vm212_vm3 }
0x16e0   :  { %vm5708_vm3 = vmor %vm5173_vm0, %vm5182_vm5 }
0x16e1   :  { %vm5661_vm15 = vmor %vm5235_vm13, %vm5248_vm7 }
0x16e2   :  { %987 = vrot.lane.b32.xlu1 %v985_v9, %s4680_s14  ;;  %v1110_v59 = vpop.permute.xlu0 %1109 }
0x16e6   :  { %1231 = vrot.lane.b32.xlu1 %v1229_v42, %s4680_s14  ;;  %v1352_v33 = vpop.permute.xlu0 %1351 }
0x16ea   :  { %1471 = vrot.lane.b32.xlu1 %v1469_v46, %s4680_s14  ;;  %v1592_v44 = vpop.permute.xlu0 %1591 }
0x1750   :  { %v1700_v61 = vpop.permute.xlu1 %1699 }
0x1751   :  { %v1702_v27 = vmul.f32 %v1700_v61, %v1682_v19  ;;  %v5108_v19 = vpack.c.bf16 %v1835_v16, %v1828_v14 }
0x1753   :  { %v1709_v17 = vrot.slane %v1702_v27, %v1708_v60  ;;  %v5706_v27 = vmov 0 }
0x1754   :  { %v988_v42 = vpop.permute.xlu1 %987  ;;  %v5707_v27 = vsel %vm5272_vm4, 4294967295, %v5706_v27 }
0x1755   :  { %1711 = vrot.lane.b32.xlu1 %v1709_v17, %s4680_s14  ;;  %v990_v47 = vsel %vm5692_vm12, %v988_v42, %v869_v55  ;;  %vm5701_vm12 = vcmp.eq.s32.totalorder %v5032_v21, 2  ;;  %v5711_v17 = vmov 0 }
0x1756   :  { %vm5264_vm1 = vmand %vm5701_vm12, %vm5700_vm11  ;;  %v1112_v28 = vsel %vm5708_vm3, %v1110_v59, %v990_v47 }
0x1757   :  { %v5703_v20 = vsel %vm5264_vm1, 4294967295, %v5702_v20  ;;  %vm5709_vm11 = vmor %vm5190_vm9, %vm5196_vm6 }
0x1758   :  { %v1232_v57 = vpop.permute.xlu1 %1231  ;;  %vm5660_vm12 = vmor %vm5256_vm2, %vm5264_vm1  ;;  %vm5724_vm1 = vcmp.eq.s32.totalorder %v4898_v8, 1 }
0x1759   :  { %v1234_v14 = vsel %vm5709_vm11, %v1232_v57, %v1112_v28  ;;  %vm5298_vm3 = vmand %vm5710_vm8, %vm5704_vm14  ;;  %vm5713_vm11 = vnez %v5686_v49  ;;  %vm5714_vm8 = vnez %v5688_v51 }
0x175a   :  { %v5712_v17 = vsel %vm5298_vm3, 4294967295, %v5711_v17  ;;  %v1354_v34 = vsel %vm5661_vm15, %v1352_v33, %v1234_v14  ;;  %vm5663_vm14 = vmor %vm5713_vm11, %vm5272_vm4  ;;  %vm5716_vm15 = vmmov 0   ;;  %vm5722_vm4 = vcmask 1045504  }
0x175b   :  { %vm5662_vm6 = vmor %vm5714_vm8, %vm5298_vm3  ;;  %vm5720_vm3 = vcmask 1043456   ;;  %vm5721_vm8 = vcmask 1044480   ;;  %vm5723_vm11 = vcmask 1046528  }
0x175c   :  { %v1472_v16 = vpop.permute.xlu1 %1471 }
0x175d   :  { %v1474_v35 = vsel %vm5660_vm12, %v1472_v16, %v1354_v34  ;;  %vm5715_vm12 = vcmask 261120  }
0x175e   :  { %v1594_v40 = vsel %vm5663_vm14, %v1592_v44, %v1474_v35  ;;  %vm5719_vm14 = vcmask 1042432  }
0x17c7   :  { %v1712_v3 = vpop.permute.xlu1 %1711 }
0x17c8   :  { %v1714_v4 = vsel %vm5662_vm6, %v1712_v3, %v1594_v40  ;;  %vm5718_vm6 = vcmask 1041408  }
0x17c9   :  { %v1730_v22 = vsel %vm5715_vm12, %v1714_v4, 0  ;;  %vm5717_vm12 = vcmask 1040384  }
0x17ca   :  { %v1801_v1 = vand.u32 4294901760, %v1730_v22 }
0x17cc   :  { %v1802_v24 = vsub.f32 %v1730_v22, %v1801_v1 }
0x17ce   :  { %v1803_v12 = vand.u32 4294901760, %v1802_v24 }
0x17d0   :  { %v1804_v39 = vsub.f32 %v1802_v24, %v1803_v12 }
0x17d2   :  { %v1805_v42 = vand.u32 4294901760, %v1804_v39 }
0x17d4   :  { %4053 = vmatmul.mubr.f32.vlgmr.msra.gmra.mrb[4].mxu0 %v1805_v42 }
0x17d5   :  { %4356 = vmatpush3.bf16.msra.mxu0 %v5098_v2  ;;  %4063 = vmatprep.mubr.msk.f32.mxu0 %vm5716_vm15, %v4671_v11 }
0x17d6   :  { %4357 = vmatprep.subr.bf16.mxu0 %v4669_v5 }
0x17d9   :  { %4359 = vmatpush3.bf16.msra.mxu0 %v5100_v6 }
0x17da   :  { %4360 = vmatprep.subr.bf16.mxu0 %v4669_v5 }
0x17dc   :  { %4064 = vmatmul.mubr.f32.vlgmr.msra.gmra.mrb[4].mxu0 %v1801_v1 }
0x17dd   :  { %4362 = vmatpush3.bf16.msra.mxu0 %v4361_v7  ;;  %4074 = vmatprep.mubr.msk.f32.mxu0 %vm5716_vm15, %v4671_v11 }
0x17de   :  { %4363 = vmatprep.subr.bf16.mxu0 %v4669_v5 }
0x17e1   :  { %4365 = vmatpush3.bf16.msra.mxu0 %v4364_v10 }
0x17e2   :  { %4366 = vmatprep.subr.bf16.mxu0 %v4669_v5 }
0x17e4   :  { %4075 = vmatmul.mubr.f32.vlgmr.msra.gmra.mrb[4].mxu0 %v1802_v24 }
0x17e5   :  { %4368 = vmatpush3.bf16.msra.mxu0 %v5070_v52  ;;  %4085 = vmatprep.mubr.msk.f32.mxu0 %vm5716_vm15, %v4671_v11 }
0x17e6   :  { %4369 = vmatprep.subr.bf16.mxu0 %v4669_v5 }
0x17e9   :  { %4371 = vmatpush3.bf16.msra.mxu0 %v5081_v62 }
0x17ea   :  { %4372 = vmatprep.subr.bf16.mxu0 %v4669_v5 }
0x17ec   :  { %4086 = vmatmul.mubr.f32.vlgmr.msra.gmra.mrb[4].mxu0 %v1803_v12 }
0x17ed   :  { %4374 = vmatpush3.bf16.msra.mxu0 %v5106_v18  ;;  %4096 = vmatprep.mubr.msk.f32.mxu0 %vm5716_vm15, %v4671_v11 }
0x17ee   :  { %4375 = vmatprep.subr.bf16.mxu0 %v4669_v5 }
0x17f1   :  { %4377 = vmatpush3.bf16.msra.mxu0 %v5108_v19 }
0x17f2   :  { %4378 = vmatprep.subr.bf16.mxu0 %v4669_v5 }
0x17f4   :  { %4097 = vmatmul.mubr.f32.vlgmr.msra.gmra.mrb[4].mxu0 %v1801_v1 }
0x17f5   :  { %4380 = vmatpush3.bf16.msra.mxu0 %v5070_v52  ;;  %4107 = vmatprep.mubr.msk.f32.mxu0 %vm5716_vm15, %v4671_v11  ;;  %v2300_v52 = vpop.f32.mrb[16].mxu1 }
0x17f6   :  { %4381 = vmatprep.subr.bf16.mxu0 %v4669_v5  ;;  %v4120_v53 = vpop.f32.mrb[17].mxu1 }
0x17f9   :  { %4383 = vmatpush3.bf16.msra.mxu0 %v5081_v62 }
0x17fa   :  { %4420 = vmatprep.subr.bf16.mxu0 %v4669_v5 }
0x17fc   :  { %4108 = vmatmul.mubr.f32.vlgmr.msra.gmra.mrb[4].mxu0 %v1801_v1 }
0x17fd   :  { %4422 = vmatpush3.bf16.msra.mxu0 %v5110_v26  ;;  %4184 = vmatprep.mubr.msk.f32.mxu0 %vm5716_vm15, %v4671_v11 }
0x17fe   :  { %4423 = vmatprep.subr.bf16.mxu0 %v4669_v5 }
0x1801   :  { %4425 = vmatpush3.bf16.msra.mxu0 %v5113_v50 }
0x1802   :  { %4432 = vmatprep.subr.bf16.mxu0 %v4669_v5 }
0x18cf   :  { %v2213_v62 = vpop.f32.mrb[4].mxu0 }
0x18d0   :  { %v4470_v63 = vadd.f32 %v3702_v54, %v2213_v62  ;;  %v4109_v0 = vpop.f32.mrb[5].mxu0 }
0x18d2   :  { %v2218_v2 = vrot.slane %v4470_v63, 7  ;;  %v2220_v6 = vrot.slane %v4470_v63, 5  ;;  %v2222_v7 = vrot.slane %v4470_v63, 3  ;;  %v2224_v10 = vrot.slane %v4470_v63, 1 }
0x18d4   :  { %v2226_v18 = vsel %vm5717_vm12, %v2218_v2, %v2220_v6  ;;  %vm5732_vm12 = vnez %v5672_v13 }
0x18d5   :  { %v2227_v19 = vsel %vm5718_vm6, %v2226_v18, %v2222_v7 }
0x18d6   :  { %v2228_v59 = vsel %vm5719_vm14, %v2227_v19, %v2224_v10 }
0x18d7   :  { %v2229_v55 = vsel %vm5720_vm3, %v2228_v59, %v2218_v2 }
0x18d8   :  { %v2230_v57 = vsel %vm5721_vm8, %v2229_v55, %v2220_v6 }
0x18d9   :  { %v2231_v47 = vsel %vm5722_vm4, %v2230_v57, %v2222_v7 }
0x18da   :  { %v2232_v28 = vsel %vm5723_vm11, %v2231_v47, %v2224_v10 }
0x18db   :  { %v5383_v33 = vsel %vm5724_vm1, %v4470_v63, %v2232_v28  ;;  %vm5725_vm1 = vcmask 261120  }
0x18dc   :  { %v2304_v14 = vadd.f32 %v2300_v52, %v5383_v33  ;;  %vm5726_vm4 = vmmov %vm5725_vm1 }
0x18dd   :  { %vm5727_vm6 = vmmov %vm5725_vm1 }
0x18de   :  { %v3703_v16 = vmul.f32 -1.442695, %v2304_v14  ;;  %vm5728_vm3 = vmmov %vm5725_vm1 }
0x18df   :  { %vm5729_vm11 = vmmov %vm5725_vm1 }
0x18e0   :  { %4574 = vpow2.f32 %v3703_v16  ;;  %vm5730_vm14 = vmmov %vm5725_vm1 }
0x18e1   :  { %vm5731_vm8 = vmmov %vm5725_vm1 }
0x18ea   :  { %v4575_v34 = vpop.eup %4574 }
0x18eb   :  { %v2308_v35 = vadd.f32 1.0, %v4575_v34 }
0x18ed   :  { %4576 = vrcp.f32 %v2308_v35 }
0x18f7   :  { %v4577_v44 = vpop.eup %4576 }
0x18f8   :  { %v2311_v40 = vmul.f32 %v4577_v44, %v4915_v32 }
0x18fa   :  { %v2312_v3 = vadd.f32 %v2311_v40, %v4918_v45 }
0x18fc   :  { %2315 = vrot.lane.b32.xlu0 %v2312_v3, %s4679_s13  ;;  %v2313_v8 = vmul.f32 0.0, %v2312_v3 }
0x196e   :  { %v2316_v4 = vpop.permute.xlu0 %2315 }
0x196f   :  { %v2318_v22 = vmul.f32 %v2316_v4, %v2312_v3 }
0x1971   :  { %2320 = vrot.lane.b32.xlu1 %v2318_v22, %s4680_s14 }
0x19e3   :  { %v2321_v1 = vpop.permute.xlu1 %2320 }
0x19e4   :  { %v2323_v24 = vadd.f32 %v2321_v1, %v2313_v8 }
0x19e6   :  { %4578 = vtanh.f32 %v2323_v24  ;;  %v2427_v55 = vrot.slane %v2323_v24, 7 }
0x19f0   :  { %v4579_v12 = vpop.eup %4578 }
0x19f1   :  { %2326 = vrot.lane.b32.xlu0 %v4579_v12, %s4679_s13 }
0x1a63   :  { %v2327_v39 = vpop.permute.xlu0 %2326 }
0x1a64   :  { %v5391_v42 = vmul.f32 %v2327_v39, %v2312_v3 }
0x1a66   :  { %2340 = vrot.lane.b32.xlu1 %v5391_v42, %s4680_s14 }
0x1ad8   :  { %v2341_v52 = vpop.permute.xlu1 %2340 }
0x1ad9   :  { %4130 = vmatmul.mubr.msk.f32.vlgmr.msra.gmra.mrb[18].mxu1 %vm5725_vm1, %v2341_v52  ;;  %vm5733_vm1 = vmor %vm5132_vm10, %vm5732_vm12  ;;  %vm5741_vm12 = vnez %v5703_v20 }
0x1ada   :  { %4398 = vmatpush3.bf16.msra.mxu1 %v5110_v26  ;;  %4140 = vmatprep.mubr.msk.f32.mxu1 %vm5716_vm15, %v4671_v11 }
0x1adb   :  { %4399 = vmatprep.subr.bf16.mxu1 %v4669_v5 }
0x1ade   :  { %4401 = vmatpush3.bf16.msra.mxu1 %v5113_v50 }
0x1adf   :  { %4402 = vmatprep.subr.bf16.mxu1 %v4669_v5 }
0x1bac   :  { %v2410_v53 = vpop.f32.mrb[18].mxu1 }
0x1bad   :  { %v2415_v54 = vrot.slane %v2410_v53, 7  ;;  %v4131_v62 = vpop.f32.mrb[19].mxu1 }
0x1baf   :  { %v2417_v63 = vadd.f32 %v2415_v54, %v5383_v33 }
0x1bb1   :  { %v3705_v0 = vmul.f32 -1.442695, %v2417_v63 }
0x1bb3   :  { %4580 = vpow2.f32 %v3705_v0 }
0x1bbd   :  { %v4581_v2 = vpop.eup %4580 }
0x1bbe   :  { %v2421_v6 = vadd.f32 1.0, %v4581_v2 }
0x1bc0   :  { %4582 = vrcp.f32 %v2421_v6 }
0x1bca   :  { %v4583_v7 = vpop.eup %4582 }
0x1bcb   :  { %v2424_v10 = vmul.f32 %v4583_v7, %v4915_v32 }
0x1bcd   :  { %v2425_v18 = vadd.f32 %v2424_v10, %v4918_v45 }
0x1bcf   :  { %2431 = vrot.lane.b32.xlu0 %v2425_v18, %s4679_s13  ;;  %v2429_v57 = vmul.f32 %v2427_v55, %v2425_v18 }
0x1c41   :  { %v2432_v19 = vpop.permute.xlu0 %2431 }
0x1c42   :  { %v2434_v59 = vmul.f32 %v2432_v19, %v2425_v18 }
0x1c44   :  { %2436 = vrot.lane.b32.xlu1 %v2434_v59, %s4680_s14 }
0x1cb6   :  { %v2437_v47 = vpop.permute.xlu1 %2436 }
0x1cb7   :  { %v2439_v28 = vadd.f32 %v2437_v47, %v2429_v57 }
0x1cb9   :  { %4584 = vtanh.f32 %v2439_v28  ;;  %v2544_v62 = vrot.slane %v2439_v28, 7 }
0x1cc3   :  { %v4585_v14 = vpop.eup %4584 }
0x1cc4   :  { %2442 = vrot.lane.b32.xlu0 %v4585_v14, %s4679_s13 }
0x1d36   :  { %v2443_v16 = vpop.permute.xlu0 %2442 }
0x1d37   :  { %v5408_v34 = vmul.f32 %v2443_v16, %v2425_v18 }
0x1d39   :  { %v2456_v35 = vrot.slane %v5408_v34, 1 }
0x1d3b   :  { %2457 = vrot.lane.b32.xlu1 %v2456_v35, %s4680_s14 }
0x1dad   :  { %v2458_v44 = vpop.permute.xlu1 %2457 }
0x1dae   :  { %4141 = vmatmul.mubr.msk.f32.vlgmr.msra.gmra.mrb[20].mxu1 %vm5726_vm4, %v2458_v44  ;;  %vm5734_vm4 = vnez %v5674_v29 }
0x1daf   :  { %4404 = vmatpush3.bf16.msra.mxu1 %v5110_v26  ;;  %4151 = vmatprep.mubr.msk.f32.mxu1 %vm5716_vm15, %v4671_v11 }
0x1db0   :  { %4405 = vmatprep.subr.bf16.mxu1 %v4669_v5 }
0x1db3   :  { %4407 = vmatpush3.bf16.msra.mxu1 %v5113_v50 }
0x1db4   :  { %4408 = vmatprep.subr.bf16.mxu1 %v4669_v5 }
0x1e81   :  { %v2527_v40 = vpop.f32.mrb[20].mxu1 }
0x1e82   :  { %v2532_v3 = vrot.slane %v2527_v40, 6  ;;  %v4142_v4 = vpop.f32.mrb[21].mxu1 }
0x1e84   :  { %v2534_v22 = vadd.f32 %v2532_v3, %v5383_v33 }
0x1e86   :  { %v3707_v8 = vmul.f32 -1.442695, %v2534_v22 }
0x1e88   :  { %4586 = vpow2.f32 %v3707_v8 }
0x1e92   :  { %v4587_v1 = vpop.eup %4586 }
0x1e93   :  { %v2538_v24 = vadd.f32 1.0, %v4587_v1 }
0x1e95   :  { %4588 = vrcp.f32 %v2538_v24 }
0x1e9f   :  { %v4589_v12 = vpop.eup %4588 }
0x1ea0   :  { %v2541_v39 = vmul.f32 %v4589_v12, %v4915_v32 }
0x1ea2   :  { %v2542_v52 = vadd.f32 %v2541_v39, %v4918_v45 }
0x1ea4   :  { %2548 = vrot.lane.b32.xlu0 %v2542_v52, %s4679_s13  ;;  %v2546_v63 = vmul.f32 %v2544_v62, %v2542_v52 }
0x1f16   :  { %v2549_v53 = vpop.permute.xlu0 %2548 }
0x1f17   :  { %v2551_v54 = vmul.f32 %v2549_v53, %v2542_v52 }
0x1f19   :  { %2553 = vrot.lane.b32.xlu1 %v2551_v54, %s4680_s14 }
0x1f8b   :  { %v2554_v0 = vpop.permute.xlu1 %2553 }
0x1f8c   :  { %v2556_v2 = vadd.f32 %v2554_v0, %v2546_v63 }
0x1f8e   :  { %4590 = vtanh.f32 %v2556_v2  ;;  %v2661_v22 = vrot.slane %v2556_v2, 7 }
0x1f98   :  { %v4591_v6 = vpop.eup %4590 }
0x1f99   :  { %2559 = vrot.lane.b32.xlu0 %v4591_v6, %s4679_s13 }
0x200b   :  { %v2560_v7 = vpop.permute.xlu0 %2559 }
0x200c   :  { %v5425_v10 = vmul.f32 %v2560_v7, %v2542_v52 }
0x200e   :  { %v2573_v18 = vrot.slane %v5425_v10, 2 }
0x2010   :  { %2574 = vrot.lane.b32.xlu1 %v2573_v18, %s4680_s14 }
0x2082   :  { %v2575_v19 = vpop.permute.xlu1 %2574 }
0x2083   :  { %4152 = vmatmul.mubr.msk.f32.vlgmr.msra.gmra.mrb[22].mxu1 %vm5727_vm6, %v2575_v19  ;;  %vm5735_vm6 = vnez %v5676_v36 }
0x2084   :  { %4410 = vmatpush3.bf16.msra.mxu1 %v5110_v26  ;;  %4162 = vmatprep.mubr.msk.f32.mxu1 %vm5716_vm15, %v4671_v11 }
0x2085   :  { %4411 = vmatprep.subr.bf16.mxu1 %v4669_v5 }
0x2088   :  { %4413 = vmatpush3.bf16.msra.mxu1 %v5113_v50 }
0x2089   :  { %4414 = vmatprep.subr.bf16.mxu1 %v4669_v5 }
0x2156   :  { %v2644_v59 = vpop.f32.mrb[22].mxu1 }
0x2157   :  { %v2649_v55 = vrot.slane %v2644_v59, 5  ;;  %v4153_v57 = vpop.f32.mrb[23].mxu1 }
0x2159   :  { %v2651_v47 = vadd.f32 %v2649_v55, %v5383_v33 }
0x215b   :  { %v3709_v28 = vmul.f32 -1.442695, %v2651_v47 }
0x215d   :  { %4592 = vpow2.f32 %v3709_v28 }
0x2167   :  { %v4593_v14 = vpop.eup %4592 }
0x2168   :  { %v2655_v16 = vadd.f32 1.0, %v4593_v14 }
0x216a   :  { %4594 = vrcp.f32 %v2655_v16 }
0x2174   :  { %v4595_v35 = vpop.eup %4594 }
0x2175   :  { %v2658_v44 = vmul.f32 %v4595_v35, %v4915_v32 }
0x2177   :  { %v2659_v40 = vadd.f32 %v2658_v44, %v4918_v45 }
0x2179   :  { %2665 = vrot.lane.b32.xlu0 %v2659_v40, %s4679_s13  ;;  %v2663_v8 = vmul.f32 %v2661_v22, %v2659_v40 }
0x21eb   :  { %v2666_v3 = vpop.permute.xlu0 %2665 }
0x21ec   :  { %v2668_v4 = vmul.f32 %v2666_v3, %v2659_v40 }
0x21ee   :  { %2670 = vrot.lane.b32.xlu1 %v2668_v4, %s4680_s14 }
0x2260   :  { %v2671_v1 = vpop.permute.xlu1 %2670 }
0x2261   :  { %v2673_v24 = vadd.f32 %v2671_v1, %v2663_v8 }
0x2263   :  { %4596 = vtanh.f32 %v2673_v24  ;;  %v2778_v28 = vrot.slane %v2673_v24, 7 }
0x226d   :  { %v4597_v12 = vpop.eup %4596 }
0x226e   :  { %2676 = vrot.lane.b32.xlu0 %v4597_v12, %s4679_s13 }
0x22e0   :  { %v2677_v39 = vpop.permute.xlu0 %2676 }
0x22e1   :  { %v5442_v52 = vmul.f32 %v2677_v39, %v2659_v40 }
0x22e3   :  { %v2690_v53 = vrot.slane %v5442_v52, 3 }
0x22e5   :  { %2691 = vrot.lane.b32.xlu1 %v2690_v53, %s4680_s14 }
0x2357   :  { %v2692_v54 = vpop.permute.xlu1 %2691 }
0x2358   :  { %4163 = vmatmul.mubr.msk.f32.vlgmr.msra.gmra.mrb[24].mxu1 %vm5728_vm3, %v2692_v54  ;;  %vm5736_vm3 = vmor %vm5734_vm4, %vm5735_vm6  ;;  %vm5746_vm4 = vnez %v5688_v51  ;;  %vm5747_vm6 = vnez %v5712_v17 }
0x2359   :  { %4416 = vmatpush3.bf16.msra.mxu1 %v5110_v26  ;;  %4173 = vmatprep.mubr.msk.f32.mxu1 %vm5716_vm15, %v4671_v11 }
0x235a   :  { %4417 = vmatprep.subr.bf16.mxu1 %v4669_v5 }
0x235d   :  { %4419 = vmatpush3.bf16.msra.mxu1 %v5113_v50 }
0x235e   :  { %4426 = vmatprep.subr.bf16.mxu1 %v4669_v5 }
0x242b   :  { %v2761_v62 = vpop.f32.mrb[24].mxu1 }
0x242c   :  { %v2766_v63 = vrot.slane %v2761_v62, 4  ;;  %v4164_v0 = vpop.f32.mrb[25].mxu1 }
0x242e   :  { %v2768_v2 = vadd.f32 %v2766_v63, %v5383_v33 }
0x2430   :  { %v3711_v6 = vmul.f32 -1.442695, %v2768_v2 }
0x2432   :  { %4598 = vpow2.f32 %v3711_v6 }
0x243c   :  { %v4599_v7 = vpop.eup %4598 }
0x243d   :  { %v2772_v18 = vadd.f32 1.0, %v4599_v7 }
0x243f   :  { %4600 = vrcp.f32 %v2772_v18 }
0x2449   :  { %v4601_v19 = vpop.eup %4600 }
0x244a   :  { %v2775_v59 = vmul.f32 %v4601_v19, %v4915_v32 }
0x244c   :  { %v2776_v55 = vadd.f32 %v2775_v59, %v4918_v45 }
0x244e   :  { %2782 = vrot.lane.b32.xlu0 %v2776_v55, %s4679_s13  ;;  %v2780_v14 = vmul.f32 %v2778_v28, %v2776_v55 }
0x24c0   :  { %v2783_v57 = vpop.permute.xlu0 %2782 }
0x24c1   :  { %v2785_v47 = vmul.f32 %v2783_v57, %v2776_v55 }
0x24c3   :  { %2787 = vrot.lane.b32.xlu1 %v2785_v47, %s4680_s14 }
0x2535   :  { %v2788_v16 = vpop.permute.xlu1 %2787 }
0x2536   :  { %v2790_v35 = vadd.f32 %v2788_v16, %v2780_v14 }
0x2538   :  { %4602 = vtanh.f32 %v2790_v35 }
0x2542   :  { %v4603_v44 = vpop.eup %4602 }
0x2543   :  { %2793 = vrot.lane.b32.xlu0 %v4603_v44, %s4679_s13 }
0x25b5   :  { %v2794_v40 = vpop.permute.xlu0 %2793 }
0x25b6   :  { %v5459_v3 = vmul.f32 %v2794_v40, %v2776_v55 }
0x25b8   :  { %v2807_v4 = vrot.slane %v5459_v3, 4 }
0x25ba   :  { %2808 = vrot.lane.b32.xlu1 %v2807_v4, %s4680_s14 }
0x262c   :  { %v2809_v22 = vpop.permute.xlu1 %2808 }
0x262d   :  { %4174 = vmatmul.mubr.msk.f32.vlgmr.msra.gmra.mrb[26].mxu1 %vm5729_vm11, %v2809_v22  ;;  %vm5737_vm11 = vmor %vm5173_vm0, %vm5182_vm5  ;;  %vm5743_vm5 = vnez %v5686_v49  ;;  %v3718_v49 = vld [vmem:[%s5632_s3 + $0x2] ss:$0 sm:$0xff] }
0x262e   :  { %4428 = vmatpush3.bf16.msra.mxu1 %v5110_v26  ;;  %4195 = vmatprep.mubr.msk.f32.mxu1 %vm5716_vm15, %v4671_v11  ;;  %vm5742_vm0 = vmor %vm5256_vm2, %vm5741_vm12  ;;  %vm3654_vm2 = vcmask 23552  }
0x262f   :  { %4429 = vmatprep.subr.bf16.mxu1 %v4669_v5 }
0x2632   :  { %4431 = vmatpush3.bf16.msra.mxu1 %v5113_v50  ;;  %v2895_v50 = vrot.slane %v2790_v35, 7 }
0x2700   :  { %v2878_v8 = vpop.f32.mrb[26].mxu1 }
0x2701   :  { %v2883_v1 = vrot.slane %v2878_v8, 3  ;;  %v4175_v24 = vpop.f32.mrb[27].mxu1 }
0x2703   :  { %v2885_v12 = vadd.f32 %v2883_v1, %v5383_v33 }
0x2705   :  { %v3713_v39 = vmul.f32 -1.442695, %v2885_v12 }
0x2707   :  { %4604 = vpow2.f32 %v3713_v39 }
0x2711   :  { %v4605_v53 = vpop.eup %4604 }
0x2712   :  { %v2889_v54 = vadd.f32 1.0, %v4605_v53 }
0x2714   :  { %4606 = vrcp.f32 %v2889_v54 }
0x271e   :  { %v4607_v62 = vpop.eup %4606 }
0x271f   :  { %v2892_v26 = vmul.f32 %v4607_v62, %v4915_v32 }
0x2721   :  { %v2893_v63 = vadd.f32 %v2892_v26, %v4918_v45 }
0x2723   :  { %2899 = vrot.lane.b32.xlu0 %v2893_v63, %s4679_s13  ;;  %v2897_v6 = vmul.f32 %v2895_v50, %v2893_v63 }
0x2795   :  { %v2900_v0 = vpop.permute.xlu0 %2899 }
0x2796   :  { %v2902_v2 = vmul.f32 %v2900_v0, %v2893_v63 }
0x2798   :  { %2904 = vrot.lane.b32.xlu1 %v2902_v2, %s4680_s14 }
0x280a   :  { %v2905_v7 = vpop.permute.xlu1 %2904 }
0x280b   :  { %v2907_v18 = vadd.f32 %v2905_v7, %v2897_v6 }
0x280d   :  { %4608 = vtanh.f32 %v2907_v18  ;;  %v3012_v39 = vrot.slane %v2907_v18, 7 }
0x2817   :  { %v4609_v19 = vpop.eup %4608 }
0x2818   :  { %2910 = vrot.lane.b32.xlu0 %v4609_v19, %s4679_s13 }
0x288a   :  { %v2911_v59 = vpop.permute.xlu0 %2910 }
0x288b   :  { %v5475_v55 = vmul.f32 %v2911_v59, %v2893_v63 }
0x288d   :  { %v2924_v57 = vrot.slane %v5475_v55, 5 }
0x288f   :  { %2925 = vrot.lane.b32.xlu1 %v2924_v57, %s4680_s14 }
0x2901   :  { %v2926_v47 = vpop.permute.xlu1 %2925 }
0x2902   :  { %4185 = vmatmul.mubr.msk.f32.vlgmr.msra.gmra.mrb[6].mxu0 %vm5730_vm14, %v2926_v47  ;;  %vm5738_vm14 = vnez %v5684_v15 }
0x2903   :  { %4206 = vmatprep.mubr.msk.f32.mxu0 %vm5716_vm15, %v4671_v11  ;;  %vm5739_vm10 = vmor %vm5190_vm9, %vm5738_vm14 }
0x29d5   :  { %v2995_v28 = vpop.f32.mrb[6].mxu0 }
0x29d6   :  { %v3000_v14 = vrot.slane %v2995_v28, 2  ;;  %v4186_v16 = vpop.f32.mrb[7].mxu0 }
0x29d8   :  { %v3002_v35 = vadd.f32 %v3000_v14, %v5383_v33 }
0x29da   :  { %v3715_v44 = vmul.f32 -1.442695, %v3002_v35 }
0x29dc   :  { %4610 = vpow2.f32 %v3715_v44 }
0x29e6   :  { %v4611_v40 = vpop.eup %4610 }
0x29e7   :  { %v3006_v4 = vadd.f32 1.0, %v4611_v40  ;;  %v2566_v40 = vrot.slane %v5425_v10, %v1106_v25  ;;  %v2449_v25 = vrot.slane %v5408_v34, %v984_v37  ;;  %v3158_v10 = vld [vmem:[%s5634_s5] sm:$0xff]  ;;  %v3159_v37 = vld [vmem:[%s5634_s5 + $0x8] sm:$0xff] }
0x29e8   :  { %v3170_v34 = vand.u32 4294901760, %v3158_v10 }
0x29e9   :  { %4612 = vrcp.f32 %v3006_v4 }
0x29f3   :  { %v4613_v22 = vpop.eup %4612 }
0x29f4   :  { %v3009_v8 = vmul.f32 %v4613_v22, %v4915_v32 }
0x29f6   :  { %v3010_v1 = vadd.f32 %v3009_v8, %v4918_v45 }
0x29f8   :  { %3016 = vrot.lane.b32.xlu0 %v3010_v1, %s4679_s13  ;;  %v3014_v53 = vmul.f32 %v3012_v39, %v3010_v1 }
0x2a6a   :  { %v3017_v24 = vpop.permute.xlu0 %3016 }
0x2a6b   :  { %v3019_v12 = vmul.f32 %v3017_v24, %v3010_v1 }
0x2a6d   :  { %3021 = vrot.lane.b32.xlu1 %v3019_v12, %s4680_s14 }
0x2adf   :  { %v3022_v54 = vpop.permute.xlu1 %3021 }
0x2ae0   :  { %v3024_v62 = vadd.f32 %v3022_v54, %v3014_v53 }
0x2ae2   :  { %4614 = vtanh.f32 %v3024_v62 }
0x2aec   :  { %v4615_v26 = vpop.eup %4614 }
0x2aed   :  { %3027 = vrot.lane.b32.xlu0 %v4615_v26, %s4679_s13 }
0x2b5f   :  { %v3028_v63 = vpop.permute.xlu0 %3027 }
0x2b60   :  { %v3030_v0 = vmul.f32 %v3028_v63, %v3010_v1 }
0x2b62   :  { %v3041_v2 = vrot.slane %v3030_v0, 6 }
0x2b64   :  { %3042 = vrot.lane.b32.xlu1 %v3041_v2, %s4680_s14 }
0x2bd6   :  { %v3043_v50 = vpop.permute.xlu1 %3042 }
0x2bd7   :  { %4196 = vmatmul.mubr.msk.f32.vlgmr.msra.gmra.mrb[28].mxu1 %vm5731_vm8, %v3043_v50  ;;  %vm5740_vm8 = vmor %vm5235_vm13, %vm5248_vm7  ;;  %vm5749_vm7 = vcmask 261120  }
0x2bd8   :  { %vm5748_vm13 = vmor %vm5746_vm4, %vm5747_vm6 }
0x2caa   :  { %v3112_v6 = vpop.f32.mrb[28].mxu1 }
0x2cab   :  { %v3117_v7 = vrot.slane %v3112_v6, 1  ;;  %v4197_v19 = vpop.f32.mrb[29].mxu1 }
0x2cad   :  { %v3119_v18 = vadd.f32 %v3117_v7, %v5383_v33  ;;  %v2333_v33 = vrot.slane %v5391_v42, %v863_v23  ;;  %v3129_v23 = vrot.slane %v3024_v62, 7 }
0x2caf   :  { %v3717_v59 = vmul.f32 -1.442695, %v3119_v18 }
0x2cb1   :  { %4616 = vpow2.f32 %v3717_v59 }
0x2cbb   :  { %v4617_v57 = vpop.eup %4616 }
0x2cbc   :  { %v3123_v47 = vadd.f32 1.0, %v4617_v57 }
0x2cbe   :  { %4618 = vrcp.f32 %v3123_v47 }
0x2cc8   :  { %v4619_v28 = vpop.eup %4618 }
0x2cc9   :  { %v3126_v14 = vmul.f32 %v4619_v28, %v4915_v32  ;;  %v2800_v32 = vrot.slane %v5459_v3, %v1348_v38  ;;  %v2683_v38 = vrot.slane %v5442_v52, %v1228_v41  ;;  %v3173_v3 = vand.u32 4294901760, %v3159_v37 }
0x2cca   :  { %v5531_v41 = vsub.f32 %v3158_v10, %v3170_v34 }
0x2ccb   :  { %v3127_v16 = vadd.f32 %v3126_v14, %v4918_v45  ;;  %v3034_v45 = vrot.slane %v3030_v0, %v1588_v30  ;;  %v2917_v30 = vrot.slane %v5475_v55, %v1468_v43  ;;  %v5529_v1 = vpack.c.bf16 %v3173_v3, %v3170_v34  ;;  %v3160_v43 = vld [vmem:[%s5634_s5 + $0x10] sm:$0xff]  ;;  %v3161_v55 = vld [vmem:[%s5634_s5 + $0x18] sm:$0xff] }
0x2ccc   :  { %v5533_v52 = vsub.f32 %v3159_v37, %v3173_v3  ;;  %v3176_v24 = vand.u32 4294901760, %v3160_v43  ;;  %v3179_v12 = vand.u32 4294901760, %v3161_v55  ;;  %v3251_v39 = vand.u32 4294901760, %v5531_v41 }
0x2ccd   :  { %3133 = vrot.lane.b32.xlu0 %v3127_v16, %s4679_s13  ;;  %v3131_v42 = vmul.f32 %v3129_v23, %v3127_v16  ;;  %4434 = vmatpush3.bf16.msra.mxu0 %v5529_v1 }
0x2cce   :  { %v3258_v53 = vand.u32 4294901760, %v5533_v52  ;;  %4435 = vmatprep.subr.bf16.mxu0 %v4669_v5  ;;  %v5545_v62 = vpack.c.bf16 %v3179_v12, %v3176_v24  ;;  %v3264_v26 = vsub.f32 %v3160_v43, %v3176_v24  ;;  %v3271_v63 = vsub.f32 %v3161_v55, %v3179_v12 }
0x2ccf   :  { %v3252_v0 = vsub.f32 %v5531_v41, %v3251_v39 }
0x2cd0   :  { %v3259_v50 = vsub.f32 %v5533_v52, %v3258_v53  ;;  %v3265_v7 = vand.u32 4294901760, %v3264_v26  ;;  %v3272_v19 = vand.u32 4294901760, %v3271_v63 }
0x2cd1   :  { %4437 = vmatpush3.bf16.msra.mxu0 %v5545_v62  ;;  %v3253_v6 = vand.u32 4294901760, %v3252_v0 }
0x2cd2   :  { %4438 = vmatprep.subr.bf16.mxu0 %v4669_v5  ;;  %v3260_v59 = vand.u32 4294901760, %v3259_v50  ;;  %v3266_v57 = vsub.f32 %v3264_v26, %v3265_v7  ;;  %v3273_v47 = vsub.f32 %v3271_v63, %v3272_v19 }
0x2cd4   :  { %v4439_v28 = vpack.c.bf16 %v3260_v59, %v3253_v6  ;;  %v3267_v14 = vand.u32 4294901760, %v3266_v57 }
0x2d3f   :  { %v3134_v35 = vpop.permute.xlu0 %3133 }
0x2d40   :  { %v3136_v44 = vmul.f32 %v3134_v35, %v3127_v16 }
0x2d42   :  { %3138 = vrot.lane.b32.xlu1 %v3136_v44, %s4680_s14  ;;  %v4445_v44 = vpack.c.bf16 %v5533_v52, %v5531_v41 }
0x2d46   :  { %2335 = vrot.lane.b32.xlu1 %v2333_v33, %s4680_s14  ;;  %v4448_v33 = vpack.c.bf16 %v3271_v63, %v3264_v26 }
0x2d4a   :  { %2568 = vrot.lane.b32.xlu1 %v2566_v40, %s4680_s14  ;;  %v4457_v40 = vpack.c.bf16 %v3258_v53, %v3251_v39 }
0x2d4e   :  { %2802 = vrot.lane.b32.xlu1 %v2800_v32, %s4680_s14  ;;  %v4460_v32 = vpack.c.bf16 %v3272_v19, %v3265_v7 }
0x2d52   :  { %3036 = vrot.lane.b32.xlu1 %v3034_v45, %s4680_s14 }
0x2db4   :  { %v3139_v4 = vpop.permute.xlu1 %3138 }
0x2db5   :  { %v3141_v22 = vadd.f32 %v3139_v4, %v3131_v42 }
0x2db7   :  { %4620 = vtanh.f32 %v3141_v22 }
0x2db8   :  { %v2336_v45 = vpop.permute.xlu1 %2335 }
0x2db9   :  { %v2338_v23 = vsel %vm5733_vm1, %v2336_v45, 0.0  ;;  %vm5744_vm1 = vnez %v5707_v27 }
0x2dba   :  { %vm5745_vm9 = vmor %vm5743_vm5, %vm5744_vm1 }
0x2dc1   :  { %v4621_v8 = vpop.eup %4620 }
0x2dc2   :  { %3144 = vrot.lane.b32.xlu0 %v4621_v8, %s4679_s13 }
0x2dc6   :  { %2451 = vrot.lane.b32.xlu0 %v2449_v25, %s4680_s14 }
0x2dca   :  { %2685 = vrot.lane.b32.xlu0 %v2683_v38, %s4680_s14 }
0x2dce   :  { %2919 = vrot.lane.b32.xlu0 %v2917_v30, %s4680_s14 }
0x2e34   :  { %v3145_v54 = vpop.permute.xlu0 %3144 }
0x2e35   :  { %v3147_v2 = vmul.f32 %v3145_v54, %v3127_v16  ;;  %v3274_v16 = vand.u32 4294901760, %v3273_v47 }
0x2e37   :  { %v3151_v18 = vrot.slane %v3147_v2, %v1708_v60  ;;  %v4442_v35 = vpack.c.bf16 %v3274_v16, %v3267_v14  ;;  %v2569_v60 = vpop.permute.xlu1 %2568 }
0x2e38   :  { %v2452_v21 = vpop.permute.xlu0 %2451 }
0x2e39   :  { %3153 = vrot.lane.b32.xlu0 %v3151_v18, %s4680_s14  ;;  %v2454_v4 = vsel %vm5736_vm3, %v2452_v21, %v2338_v23 }
0x2e3a   :  { %v2571_v22 = vsel %vm5737_vm11, %v2569_v60, %v2454_v4 }
0x2e3b   :  { %v2803_v8 = vpop.permute.xlu1 %2802 }
0x2e3c   :  { %v2686_v42 = vpop.permute.xlu0 %2685 }
0x2e3d   :  { %v2688_v31 = vsel %vm5739_vm10, %v2686_v42, %v2571_v22 }
0x2e3e   :  { %v2805_v29 = vsel %vm5740_vm8, %v2803_v8, %v2688_v31 }
0x2e3f   :  { %v3037_v9 = vpop.permute.xlu1 %3036 }
0x2e40   :  { %v2920_v13 = vpop.permute.xlu0 %2919 }
0x2e41   :  { %v2922_v36 = vsel %vm5742_vm0, %v2920_v13, %v2805_v29 }
0x2e42   :  { %v3039_v46 = vsel %vm5745_vm9, %v3037_v9, %v2922_v36 }
0x2eab   :  { %v3154_v48 = vpop.permute.xlu0 %3153 }
0x2eac   :  { %v3156_v15 = vsel %vm5748_vm13, %v3154_v48, %v3039_v46 }
0x2ead   :  { %v3167_v56 = vsel %vm5749_vm7, %v3156_v15, 0 }
0x2eae   :  { %v3238_v58 = vand.u32 4294901760, %v3167_v56 }
0x2eb0   :  { %v3239_v61 = vsub.f32 %v3167_v56, %v3238_v58 }
0x2eb2   :  { %v3240_v20 = vand.u32 4294901760, %v3239_v61 }
0x2eb4   :  { %v3241_v25 = vsub.f32 %v3239_v61, %v3240_v20 }
0x2eb6   :  { %v3242_v38 = vand.u32 4294901760, %v3241_v25 }
0x2eb8   :  { %4207 = vmatmul.mubr.f32.vlgmr.msra.gmra.mrb[8].mxu0 %v3242_v38 }
0x2eb9   :  { %4440 = vmatpush3.bf16.msra.mxu0 %v4439_v28  ;;  %4217 = vmatprep.mubr.msk.f32.mxu0 %vm5716_vm15, %v4671_v11 }
0x2eba   :  { %4441 = vmatprep.subr.bf16.mxu0 %v4669_v5 }
0x2ebd   :  { %4443 = vmatpush3.bf16.msra.mxu0 %v4442_v35 }
0x2ebe   :  { %4444 = vmatprep.subr.bf16.mxu0 %v4669_v5 }
0x2ec0   :  { %4218 = vmatmul.mubr.f32.vlgmr.msra.gmra.mrb[8].mxu0 %v3238_v58 }
0x2ec1   :  { %4446 = vmatpush3.bf16.msra.mxu0 %v4445_v44  ;;  %4228 = vmatprep.mubr.msk.f32.mxu0 %vm5716_vm15, %v4671_v11 }
0x2ec2   :  { %4447 = vmatprep.subr.bf16.mxu0 %v4669_v5 }
0x2ec5   :  { %4449 = vmatpush3.bf16.msra.mxu0 %v4448_v33 }
0x2ec6   :  { %4450 = vmatprep.subr.bf16.mxu0 %v4669_v5 }
0x2ec8   :  { %4229 = vmatmul.mubr.f32.vlgmr.msra.gmra.mrb[8].mxu0 %v3239_v61 }
0x2ec9   :  { %4452 = vmatpush3.bf16.msra.mxu0 %v5529_v1  ;;  %4239 = vmatprep.mubr.msk.f32.mxu0 %vm5716_vm15, %v4671_v11 }
0x2eca   :  { %4453 = vmatprep.subr.bf16.mxu0 %v4669_v5 }
0x2ecd   :  { %4455 = vmatpush3.bf16.msra.mxu0 %v5545_v62 }
0x2ece   :  { %4456 = vmatprep.subr.bf16.mxu0 %v4669_v5 }
0x2ed0   :  { %4240 = vmatmul.mubr.f32.vlgmr.msra.gmra.mrb[8].mxu0 %v3240_v20 }
0x2ed1   :  { %4458 = vmatpush3.bf16.msra.mxu0 %v4457_v40  ;;  %4250 = vmatprep.mubr.msk.f32.mxu0 %vm5716_vm15, %v4671_v11 }
0x2ed2   :  { %4459 = vmatprep.subr.bf16.mxu0 %v4669_v5 }
0x2ed5   :  { %4461 = vmatpush3.bf16.msra.mxu0 %v4460_v32 }
0x2ed6   :  { %4462 = vmatprep.subr.bf16.mxu0 %v4669_v5 }
0x2ed8   :  { %4251 = vmatmul.mubr.f32.vlgmr.msra.gmra.mrb[8].mxu0 %v3238_v58 }
0x2ed9   :  { %4464 = vmatpush3.bf16.msra.mxu0 %v5529_v1  ;;  %4261 = vmatprep.mubr.msk.f32.mxu0 %vm5716_vm15, %v4671_v11 }
0x2eda   :  { %4465 = vmatprep.subr.bf16.mxu0 %v4669_v5 }
0x2edd   :  { %4467 = vmatpush3.bf16.msra.mxu0 %v5545_v62 }
0x2ee0   :  { %4262 = vmatmul.mubr.f32.vlgmr.msra.gmra.mrb[8].mxu0 %v3238_v58 }
0x2fb3   :  { %v3650_v51 = vpop.f32.mrb[8].mxu0 }
0x2fb4   :  { %v4471_v27 = vadd.f32 %v3718_v49, %v3650_v51  ;;  %v4263_v17 = vpop.f32.mrb[9].mxu0 }
0x2fb6   :  { %3655 = vst.msk [vmem:[%s5636_s7] sm:$0xff] %vm3654_vm2, %v4471_v27  ;;  %v3719_v30 = vmul.f32 -1.442695, %v4471_v27 }
0x2fb8   :  { %4622 = vpow2.f32 %v3719_v30 }
0x2fc2   :  { %v4623_v11 = vpop.eup %4622 }
0x2fc3   :  { %v3659_v10 = vadd.f32 1.0, %v4623_v11 }
0x2fc5   :  { %4624 = vrcp.f32 %v3659_v10 }
0x2fcf   :  { %v4625_v5 = vpop.eup %4624 }
0x2fd0   :  { %3662 = vst.msk [vmem:[%s5635_s6] sm:$0xff] %vm3654_vm2, %v4625_v5 }
0x2fd1   :  { %3671 = vsyncpa [#allocation3], 1 }
0x2fd2   :  { %3672 = vsyncpa [#allocation4], 1 }

</bundles_post_ra>
